<compile_context>
chip_gen: v7x
topology: tpu7x:2x2x1
jax: 0.10.0
libtpu: 0.0.40
codegen_flags: <defaults>
</compile_context>

<pallas_src>
import numpy as np
import jax
import jax.numpy as jnp
from jax.experimental import pallas as pl
from jax.experimental.pallas import tpu as pltpu

EPS = 1e-5        # PyTorch BatchNorm1d default eps
_ALIGN = 32       # row alignment inside the packed parameter matrices


def _align(n, a=_ALIGN):
    return ((n + a - 1) // a) * a


# ----------------------------------------------------------------------------
# Host-side constants
# ----------------------------------------------------------------------------
def upsample_matrix(in_len, out_len):
    """nn.Upsample(size=out_len, mode='linear', align_corners=False) as a matrix."""
    u = np.zeros((out_len, in_len), np.float32)
    scale = in_len / out_len
    for i in range(out_len):
        src = (i + 0.5) * scale - 0.5
        if src < 0.0:
            src = 0.0
        i0 = min(int(np.floor(src)), in_len - 1)
        i1 = min(i0 + 1, in_len - 1)
        lam = src - i0
        u[i, i0] += 1.0 - lam
        u[i, i1] += lam
    return u


def _conv_table(in_features, F):
    # (name, cin, cout, kernel_size, bn_name_or_None) in forward order
    return [
        ("enc1", in_features, F, 3, "bn1"),
        ("down1", F, 2 * F, 3, None),
        ("enc2", 2 * F, 2 * F, 3, "bn2"),
        ("down2", 2 * F, 4 * F, 3, None),
        ("enc3", 4 * F, 4 * F, 3, "bn3"),
        ("down3", 4 * F, 8 * F, 3, None),
        ("inner", 8 * F, 8 * F, 3, "bni"),
        ("red3", 12 * F, 4 * F, 1, None),
        ("dec3", 4 * F, 4 * F, 3, "bnd3"),
        ("red2", 6 * F, 2 * F, 1, None),
        ("dec2", 2 * F, 2 * F, 3, "bnd2"),
        ("red1", 3 * F, F, 1, None),
        ("dec1", F, F, 3, "bnd1"),
    ]


# ----------------------------------------------------------------------------
# Deterministic parameter init (PyTorch layouts: conv weight (Cout, Cin, K))
# ----------------------------------------------------------------------------
def init_params(key, in_features, F):
    conv3_specs = {
        "enc1": (in_features, F),
        "down1": (F, 2 * F),
        "enc2": (2 * F, 2 * F),
        "down2": (2 * F, 4 * F),
        "enc3": (4 * F, 4 * F),
        "down3": (4 * F, 8 * F),
        "inner": (8 * F, 8 * F),
        "dec3": (4 * F, 4 * F),
        "dec2": (2 * F, 2 * F),
        "dec1": (F, F),
    }
    conv1_specs = {"red3": (12 * F, 4 * F), "red2": (6 * F, 2 * F), "red1": (3 * F, F)}
    bn_channels = {"bn1": F, "bn2": 2 * F, "bn3": 4 * F, "bni": 8 * F,
                   "bnd3": 4 * F, "bnd2": 2 * F, "bnd1": F}

    params = {}
    keys = jax.random.split(key, len(conv3_specs) + len(conv1_specs) + len(bn_channels))
    ki = 0
    for name, (cin, cout) in conv3_specs.items():
        k1, k2 = jax.random.split(keys[ki]); ki += 1
        bound = 1.0 / np.sqrt(cin * 3)
        params[name] = {
            "w": jax.random.uniform(k1, (cout, cin, 3), jnp.float32, -bound, bound),
            "b": jax.random.uniform(k2, (cout,), jnp.float32, -bound, bound),
        }
    for name, (cin, cout) in conv1_specs.items():
        k1, k2 = jax.random.split(keys[ki]); ki += 1
        bound = 1.0 / np.sqrt(cin)
        params[name] = {
            "w": jax.random.uniform(k1, (cout, cin, 1), jnp.float32, -bound, bound),
            "b": jax.random.uniform(k2, (cout,), jnp.float32, -bound, bound),
        }
    for name, c in bn_channels.items():
        k1, k2, k3, k4 = jax.random.split(keys[ki], 4); ki += 1
        params[name] = {
            "gamma": 1.0 + 0.1 * jax.random.normal(k1, (c,), jnp.float32),
            "beta": 0.1 * jax.random.normal(k2, (c,), jnp.float32),
            "mean": 0.1 * jax.random.normal(k3, (c,), jnp.float32),
            "var": 1.0 + 0.1 * jax.random.uniform(k4, (c,), jnp.float32),
        }
    return params


# ----------------------------------------------------------------------------
# Host-side packing: 4 arrays total (weights / biases / geometry / edge masks)
# ----------------------------------------------------------------------------
def build_packed_params(params, in_features, F, L1, b_tile):
    L2 = L1 // 2
    L3 = L1 // 4 + 1
    L4 = L3 // 2
    lens = (L1, L2, L3, L4)
    convs = _conv_table(in_features, F)
    max_cout = 8 * F

    # ---- im2col conv/reduce weights with BN + bias folded -> one bf16 matrix
    wmeta = {}
    w_blocks, b_rows = [], []
    row = 0
    for bias_idx, (name, cin, cout, k, bn) in enumerate(convs):
        w = np.asarray(params[name]["w"], np.float32)      # (cout, cin, k)
        b = np.asarray(params[name]["b"], np.float32)      # (cout,)
        if k == 3:
            wm = np.concatenate([w[:, :, 0].T, w[:, :, 1].T, w[:, :, 2].T], axis=0)
        else:
            wm = w[:, :, 0].T                               # (cin, cout)
        if bn is not None:
            gma = np.asarray(params[bn]["gamma"], np.float32)
            bta = np.asarray(params[bn]["beta"], np.float32)
            mu = np.asarray(params[bn]["mean"], np.float32)
            var = np.asarray(params[bn]["var"], np.float32)
            scale = gma / np.sqrt(var + EPS)
            wm = wm * scale[None, :]
            b = b * scale + (bta - mu * scale)
        kk = wm.shape[0]
        blk = np.zeros((_align(kk), max_cout), np.float32)
        blk[:kk, :cout] = wm
        w_blocks.append(blk)
        wmeta[name] = (row, kk, cout, bias_idx)
        row += _align(kk)
        br = np.zeros((max_cout,), np.float32)
        br[:cout] = b
        b_rows.append(br)
    w_pack = jnp.asarray(np.concatenate(w_blocks, axis=0), jnp.bfloat16)
    b_np = np.zeros((_align(len(convs), 8), max_cout), np.float32)
    b_np[:len(convs)] = np.stack(b_rows, axis=0)
    b_pack = jnp.asarray(b_np)

    # ---- geometry: block-diagonal (over the batch tile) decimation + upsample
    def blockdiag(m):
        r, c = m.shape
        out = np.zeros((b_tile * r, b_tile * c), np.float32)
        for i in range(b_tile):
            out[i * r:(i + 1) * r, i * c:(i + 1) * c] = m
        return out

    def dec_pair(lin, lout):
        e = np.zeros((lout, lin), np.float32)
        o = np.zeros((lout, lin), np.float32)
        for t in range(lout):
            e[t, 2 * t] = 1.0
            if 2 * t + 1 < lin:
                o[t, 2 * t + 1] = 1.0
        return e, o

    gmeta, g_blocks = {}, []
    grow = 0
    gcols = b_tile * L1

    def add_geom(key, mat):
        nonlocal grow
        bd = blockdiag(mat)
        r, c = bd.shape
        blk = np.zeros((_align(r), gcols), np.float32)
        blk[:r, :c] = bd
        g_blocks.append(blk)
        gmeta[key] = (grow, r, c)
        grow += _align(r)

    for key, (lin, lout) in (("d1", (L1, L2)), ("d2", (L2, L3)), ("d3", (L3, L4))):
        e, o = dec_pair(lin, lout)
        add_geom(key + "e", e)
        add_geom(key + "o", o)
    add_geom("up3", upsample_matrix(L4, L3))
    add_geom("up2", upsample_matrix(L3, L2))
    add_geom("up1", upsample_matrix(L2, L1))
    g_pack = jnp.asarray(np.concatenate(g_blocks, axis=0), jnp.bfloat16)

    # ---- per-row batch-boundary masks: [nf_L1, nl_L1, nf_L2, nl_L2, ...]
    m_np = np.zeros((b_tile * L1, 8), np.float32)
    for j, L in enumerate(lens):
        mm = b_tile * L
        t = np.arange(mm) % L
        m_np[:mm, 2 * j] = (t != 0).astype(np.float32)        # "not first row"
        m_np[:mm, 2 * j + 1] = (t != L - 1).astype(np.float32)  # "not last row"
    m_pack = jnp.asarray(m_np)

    scr_cols = max((3 * cin if k == 3 else cin) for _, cin, _, k, _ in convs)
    meta = {"lens": lens, "F": F, "cin": in_features, "b_tile": b_tile,
            "wmeta": wmeta, "gmeta": gmeta, "scr_cols": scr_cols}
    packed = {"w": w_pack, "b": b_pack, "g": g_pack, "m": m_pack}
    return packed, meta


# ----------------------------------------------------------------------------
# Pallas kernel: full UNet forward for one batch tile (B_TILE sequences).
# Activations live as flat (B_TILE*L, C) slabs; every conv = one bf16 matmul.
# ----------------------------------------------------------------------------
def make_kernel(meta):
    L1, L2, L3, L4 = meta["lens"]
    F = meta["F"]
    bt = meta["b_tile"]
    cin0 = meta["cin"]
    M = (bt * L1, bt * L2, bt * L3, bt * L4)
    WMETA = meta["wmeta"]
    GMETA = meta["gmeta"]
    BF16 = jnp.bfloat16
    F32 = jnp.float32

    def kernel(x_ref, w_ref, b_ref, g_ref, m_ref, o_ref, scr_ref):

        def dense(x, name, relu=False):
            off, k, cout, bidx = WMETA[name]
            w = w_ref[off:off + k, :cout]                       # bf16
            y = jnp.dot(x.astype(BF16), w, preferred_element_type=F32)
            y = y + b_ref[bidx:bidx + 1, :cout]
            return jnp.maximum(y, 0.0) if relu else y

        def geom(x, key):
            off, r, c = GMETA[key]
            g = g_ref[off:off + r, :c]                          # bf16
            return jnp.dot(g, x.astype(BF16), preferred_element_type=F32)

        def edge_masks(level, m):
            nf = m_ref[:m, 2 * level:2 * level + 1]             # (m, 1) 0/1
            nl = m_ref[:m, 2 * level + 1:2 * level + 2]
            return nf, nl

        def zrow(c):
            return jnp.zeros((1, c), F32)

        # im2col for a stride-1 k=3 conv: stage x into 3 shifted column bands
        # of the scratch, read one (m, 3c) slab.  Edge masks zero the taps that
        # would otherwise read the neighbouring sequence in the batch tile.
        def im2col_s1(x, m, c, level):
            nf, nl = edge_masks(level, m)
            scr_ref[2:m + 2, 0:c] = x * nl          # band 0 -> x[t-1]
            scr_ref[1:m + 1, c:2 * c] = x           # band 1 -> x[t]
            scr_ref[0:m, 2 * c:3 * c] = x * nf      # band 2 -> x[t+1]
            scr_ref[1:2, 0:c] = zrow(c)
            scr_ref[m:m + 1, 2 * c:3 * c] = zrow(c)
            return scr_ref[1:m + 1, 0:3 * c]

        # im2col for a stride-2 k=3 conv (xe = x[2t], xo = x[2t+1], OOB = 0)
        def im2col_s2(xe, xo, m, c, level):
            _, nl = edge_masks(level, m)
            scr_ref[2:m + 2, 0:c] = xo * nl         # band 0 -> x[2t-1]
            scr_ref[1:m + 1, c:2 * c] = xe          # band 1 -> x[2t]
            scr_ref[1:m + 1, 2 * c:3 * c] = xo      # band 2 -> x[2t+1]
            scr_ref[1:2, 0:c] = zrow(c)
            return scr_ref[1:m + 1, 0:3 * c]

        # channel-concat of (skip, upsampled) via the scratch (for 1x1 reduce)
        def cat2(a, b, m, ca, cb):
            scr_ref[0:m, 0:ca] = a
            scr_ref[0:m, ca:ca + cb] = b
            return scr_ref[0:m, 0:ca + cb]

        def conv_s1(x, name, m, c, level, relu):
            return dense(im2col_s1(x, m, c, level), name, relu)

        def conv_s2(x, name, gkey, m_out, c, level_out):
            xe = geom(x, gkey + "e")
            xo = geom(x, gkey + "o")
            return dense(im2col_s2(xe, xo, m_out, c, level_out), name, False)

        x = x_ref[...]                                               # (M1, Cin)

        # encoder
        x1 = conv_s1(x, "enc1", M[0], cin0, 0, True)                 # (M1, F)
        x2 = conv_s1(conv_s2(x1, "down1", "d1", M[1], F, 1),
                     "enc2", M[1], 2 * F, 1, True)                   # (M2, 2F)
        x3 = conv_s1(conv_s2(x2, "down2", "d2", M[2], 2 * F, 2),
                     "enc3", M[2], 4 * F, 2, True)                   # (M3, 4F)
        x4 = conv_s1(conv_s2(x3, "down3", "d3", M[3], 4 * F, 3),
                     "inner", M[3], 8 * F, 3, True)                  # (M4, 8F)

        # decoder
        u3 = geom(x4, "up3")                                         # (M3, 8F)
        r3 = dense(cat2(x3, u3, M[2], 4 * F, 8 * F), "red3")         # (M3, 4F)
        x33 = conv_s1(r3, "dec3", M[2], 4 * F, 2, True)

        u2 = geom(x33, "up2")                                        # (M2, 4F)
        r2 = dense(cat2(x2, u2, M[1], 2 * F, 4 * F), "red2")         # (M2, 2F)
        x22 = conv_s1(r2, "dec2", M[1], 2 * F, 1, True)

        u1 = geom(x22, "up1")                                        # (M1, 2F)
        r1 = dense(cat2(x1, u1, M[0], F, 2 * F), "red1")             # (M1, F)
        x11 = conv_s1(r1, "dec1", M[0], F, 0, True)                  # (M1, F)

        o_ref[...] = x11

    return kernel


def unet_forward_pallas(x_ncw, packed, meta):
    L1 = meta["lens"][0]
    F = meta["F"]
    bt = meta["b_tile"]
    B, Cin, L = x_ncw.shape
    assert L == L1 and Cin == meta["cin"]
    M1 = bt * L1
    assert M1 % 8 == 0, "pick b_tile such that b_tile * time_length % 8 == 0"

    Bp = ((B + bt - 1) // bt) * bt
    xp = x_ncw
    if Bp != B:
        xp = jnp.concatenate(
            [xp, jnp.zeros((Bp - B, Cin, L1), x_ncw.dtype)], axis=0)
    # NCW -> flat (B*L, C) slab (channels on lanes, batch*time on sublanes)
    x_flat = jnp.transpose(xp, (0, 2, 1)).reshape(Bp * L1, Cin)

    grid = (Bp // bt,)
    kernel = make_kernel(meta)

    in_specs = [
        pl.BlockSpec((M1, Cin), lambda i: (i, 0)),
        pl.BlockSpec(packed["w"].shape, lambda i: (0, 0)),
        pl.BlockSpec(packed["b"].shape, lambda i: (0, 0)),
        pl.BlockSpec(packed["g"].shape, lambda i: (0, 0)),
        pl.BlockSpec(packed["m"].shape, lambda i: (0, 0)),
    ]
    out_specs = pl.BlockSpec((M1, F), lambda i: (i, 0))

    out_flat = pl.pallas_call(
        kernel,
        out_shape=jax.ShapeDtypeStruct((Bp * L1, F), jnp.float32),
        grid_spec=pltpu.PrefetchScalarGridSpec(
            num_scalar_prefetch=0,
            grid=grid,
            in_specs=in_specs,
            out_specs=out_specs,
            scratch_shapes=[pltpu.VMEM((M1 + 2, meta["scr_cols"]), jnp.float32)],
        ),
        compiler_params=pltpu.CompilerParams(
            dimension_semantics=("parallel",)),
    )(x_flat, packed["w"], packed["b"], packed["g"], packed["m"])

    out = out_flat.reshape(Bp, L1, F).transpose(0, 2, 1)        # back to NCW
    return out[:B]


# ----------------------------------------------------------------------------
# Pure-JAX reference (PyTorch NCW semantics, f32) for correctness checking.
# ----------------------------------------------------------------------------
def _conv1d_ref(x, w, b, stride=1, padding=1):
    out = jax.lax.conv_general_dilated(
        x, w, window_strides=(stride,), padding=[(padding, padding)],
        dimension_numbers=("NCH", "OIH", "NCH"),
        precision=jax.lax.Precision.HIGHEST)
    return out + b[None, :, None]


def _bn_relu_ref(x, p):
    scale = p["gamma"] / jnp.sqrt(p["var"] + EPS)
    shift = p["beta"] - p["mean"] * scale
    return jnp.maximum(x * scale[None, :, None] + shift[None, :, None], 0.0)


def _upsample_ref(x, out_len):
    u = jnp.asarray(upsample_matrix(x.shape[-1], out_len))
    return jnp.einsum("ol,bcl->bco", u, x, precision=jax.lax.Precision.HIGHEST)


def unet_forward_ref(x, p, L1):
    L2, L3 = L1 // 2, L1 // 4 + 1
    x1 = _bn_relu_ref(_conv1d_ref(x, p["enc1"]["w"], p["enc1"]["b"]), p["bn1"])
    x2 = _bn_relu_ref(_conv1d_ref(_conv1d_ref(x1, p["down1"]["w"], p["down1"]["b"], 2),
                                  p["enc2"]["w"], p["enc2"]["b"]), p["bn2"])
    x3 = _bn_relu_ref(_conv1d_ref(_conv1d_ref(x2, p["down2"]["w"], p["down2"]["b"], 2),
                                  p["enc3"]["w"], p["enc3"]["b"]), p["bn3"])
    x4 = _bn_relu_ref(_conv1d_ref(_conv1d_ref(x3, p["down3"]["w"], p["down3"]["b"], 2),
                                  p["inner"]["w"], p["inner"]["b"]), p["bni"])
    x33 = jnp.concatenate([x3, _upsample_ref(x4, L3)], axis=1)
    x33 = _conv1d_ref(x33, p["red3"]["w"], p["red3"]["b"], 1, 0)
    x33 = _bn_relu_ref(_conv1d_ref(x33, p["dec3"]["w"], p["dec3"]["b"]), p["bnd3"])
    x22 = jnp.concatenate([x2, _upsample_ref(x33, L2)], axis=1)
    x22 = _conv1d_ref(x22, p["red2"]["w"], p["red2"]["b"], 1, 0)
    x22 = _bn_relu_ref(_conv1d_ref(x22, p["dec2"]["w"], p["dec2"]["b"]), p["bnd2"])
    x11 = jnp.concatenate([x1, _upsample_ref(x22, L1)], axis=1)
    x11 = _conv1d_ref(x11, p["red1"]["w"], p["red1"]["b"], 1, 0)
    x11 = _bn_relu_ref(_conv1d_ref(x11, p["dec1"]["w"], p["dec1"]["b"]), p["bnd1"])
    return x11


# ----------------------------------------------------------------------------
if __name__ == "__main__":
    key = jax.random.PRNGKey(0)
    in_features, out_features, time_length = 4, 8, 30
    batch = 8
    b_tile = 4          # (b_tile * time_length) % 8 == 0 ; grid = 2 parallel steps

    p_key, x_key = jax.random.split(key)
    params = init_params(p_key, in_features, out_features)
    packed, meta = build_packed_params(params, in_features, out_features,
                                       time_length, b_tile)

    # Input matches the PyTorch module's NCW convention: (B, in_features, T)
    x = jax.random.normal(x_key, (batch, in_features, time_length), jnp.float32)

    out = unet_forward_pallas(x, packed, meta)
    out = jax.block_until_ready(out)
    assert out.shape == (batch, out_features, time_length)

    ref = unet_forward_ref(x, params, time_length)
    err = jnp.abs(out - ref)
    max_err = float(jnp.max(err))
    mean_err = float(jnp.mean(err))
    # Tolerance sized for bf16 MXU operands (f32 accumulation) over ~16 chained
    # matmuls; a structural/indexing bug produces errors 10-100x larger.
    ok = bool(jnp.allclose(out, ref, atol=5e-2, rtol=5e-2)) and mean_err < 1e-2
    if not ok:
        raise AssertionError(
            f"Pallas kernel mismatch vs reference: max={max_err} mean={mean_err}")
    print("KERNEL_OK")
</pallas_src>

<mosaic_0001>
module attributes {stable_mosaic.version = 11 : i64} {
  func.func @kernel(%arg0: i32, %arg1: memref<120x4xf32, #tpu.memory_space<vmem>>, %arg2: memref<960x64xbf16, #tpu.memory_space<vmem>>, %arg3: memref<16x64xf32, #tpu.memory_space<vmem>>, %arg4: memref<480x120xbf16, #tpu.memory_space<vmem>>, %arg5: memref<120x8xf32, #tpu.memory_space<vmem>>, %arg6: memref<120x8xf32, #tpu.memory_space<vmem>>, %arg7: memref<122x192xf32, #tpu.memory_space<vmem>>) attributes {dimension_semantics = [#tpu.dimension_semantics<parallel>], iteration_bounds = array<i64: 2>, scalar_prefetch = 0 : i64, scratch_operands = 1 : i64, tpu.core_type = #tpu.core_type<tc>, window_params = [{transform_indices = @transform_0, window_bounds = array<i64: 120, 4>}, {pipeline_mode = #tpu.pipeline_mode<synchronous>, transform_indices = @transform_1, window_bounds = array<i64: 960, 64>}, {pipeline_mode = #tpu.pipeline_mode<synchronous>, transform_indices = @transform_2, window_bounds = array<i64: 16, 64>}, {pipeline_mode = #tpu.pipeline_mode<synchronous>, transform_indices = @transform_3, window_bounds = array<i64: 480, 120>}, {pipeline_mode = #tpu.pipeline_mode<synchronous>, transform_indices = @transform_4, window_bounds = array<i64: 120, 8>}, {transform_indices = @transform_5, window_bounds = array<i64: 120, 8>}]} {
    %c0 = arith.constant 0 : index
    %c0_0 = arith.constant 0 : index
    %0 = vector.load %arg1[%c0, %c0_0] : memref<120x4xf32, #tpu.memory_space<vmem>>, vector<120x4xf32>
    %c0_1 = arith.constant 0 : index
    %c0_2 = arith.constant 0 : index
    %1 = vector.load %arg5[%c0_1, %c0_2] : memref<120x8xf32, #tpu.memory_space<vmem>>, vector<120x1xf32>
    %c0_3 = arith.constant 0 : index
    %c1 = arith.constant 1 : index
    %2 = vector.load %arg5[%c0_3, %c1] : memref<120x8xf32, #tpu.memory_space<vmem>>, vector<120x1xf32>
    %3 = vector.broadcast %2 : vector<120x1xf32> to vector<120x4xf32>
    %4 = arith.mulf %0, %3 : vector<120x4xf32>
    %c2 = arith.constant 2 : index
    %c0_4 = arith.constant 0 : index
    %5 = vector.load %arg7[%c2, %c0_4] : memref<122x192xf32, #tpu.memory_space<vmem>>, vector<120x4xf32>
    tpu.vector_store %arg7[%c2, %c0_4], %4 {strides = array<i32>} : memref<122x192xf32, #tpu.memory_space<vmem>>, vector<120x4xf32>,
    %c1_5 = arith.constant 1 : index
    %c4 = arith.constant 4 : index
    %6 = vector.load %arg7[%c1_5, %c4] : memref<122x192xf32, #tpu.memory_space<vmem>>, vector<120x4xf32>
    tpu.vector_store %arg7[%c1_5, %c4], %0 {strides = array<i32>} : memref<122x192xf32, #tpu.memory_space<vmem>>, vector<120x4xf32>,
    %7 = vector.broadcast %1 : vector<120x1xf32> to vector<120x4xf32>
    %8 = arith.mulf %0, %7 : vector<120x4xf32>
    %c0_6 = arith.constant 0 : index
    %c8 = arith.constant 8 : index
    %9 = vector.load %arg7[%c0_6, %c8] : memref<122x192xf32, #tpu.memory_space<vmem>>, vector<120x4xf32>
    tpu.vector_store %arg7[%c0_6, %c8], %8 {strides = array<i32>} : memref<122x192xf32, #tpu.memory_space<vmem>>, vector<120x4xf32>,
    %cst = arith.constant 0.000000e+00 : f32
    %10 = vector.broadcast %cst : f32 to vector<1x4xf32>
    %c1_7 = arith.constant 1 : index
    %c0_8 = arith.constant 0 : index
    %11 = vector.load %arg7[%c1_7, %c0_8] : memref<122x192xf32, #tpu.memory_space<vmem>>, vector<1x4xf32>
    tpu.vector_store %arg7[%c1_7, %c0_8], %10 {strides = array<i32>} : memref<122x192xf32, #tpu.memory_space<vmem>>, vector<1x4xf32>,
    %cst_9 = arith.constant 0.000000e+00 : f32
    %12 = vector.broadcast %cst_9 : f32 to vector<1x4xf32>
    %c120 = arith.constant 120 : index
    %c8_10 = arith.constant 8 : index
    %13 = vector.load %arg7[%c120, %c8_10] : memref<122x192xf32, #tpu.memory_space<vmem>>, vector<1x4xf32>
    tpu.vector_store %arg7[%c120, %c8_10], %12 {strides = array<i32>} : memref<122x192xf32, #tpu.memory_space<vmem>>, vector<1x4xf32>,
    %c1_11 = arith.constant 1 : index
    %c0_12 = arith.constant 0 : index
    %14 = vector.load %arg7[%c1_11, %c0_12] : memref<122x192xf32, #tpu.memory_space<vmem>>, vector<120x12xf32>
    %c0_13 = arith.constant 0 : index
    %c0_14 = arith.constant 0 : index
    %15 = vector.load %arg2[%c0_13, %c0_14] : memref<960x64xbf16, #tpu.memory_space<vmem>>, vector<12x8xbf16>
    %16 = arith.truncf %14 : vector<120x12xf32> to vector<120x12xbf16>
    %cst_15 = arith.constant dense<0.000000e+00> : vector<120x8xf32>
    %17 = tpu.matmul %16, %15, %cst_15 {dimension_numbers = #tpu.dot_dimension_numbers<[1], [0], [0], [1], [0, 0, 1, 1], [], []>} : vector<120x12xbf16>, vector<12x8xbf16>, vector<120x8xf32> -> vector<120x8xf32>
    %c0_16 = arith.constant 0 : index
    %c0_17 = arith.constant 0 : index
    %18 = vector.load %arg3[%c0_16, %c0_17] : memref<16x64xf32, #tpu.memory_space<vmem>>, vector<1x8xf32>
    %19 = vector.broadcast %18 : vector<1x8xf32> to vector<120x8xf32>
    %20 = arith.addf %17, %19 : vector<120x8xf32>
    %cst_18 = arith.constant 0.000000e+00 : f32
    %21 = vector.broadcast %cst_18 : f32 to vector<120x8xf32>
    %22 = arith.maximumf %20, %21 : vector<120x8xf32>
    %c0_19 = arith.constant 0 : index
    %c0_20 = arith.constant 0 : index
    %23 = vector.load %arg4[%c0_19, %c0_20] : memref<480x120xbf16, #tpu.memory_space<vmem>>, vector<60x120xbf16>
    %24 = arith.truncf %22 : vector<120x8xf32> to vector<120x8xbf16>
    %cst_21 = arith.constant dense<0.000000e+00> : vector<60x8xf32>
    %25 = tpu.matmul %23, %24, %cst_21 {dimension_numbers = #tpu.dot_dimension_numbers<[1], [0], [0], [1], [0, 0, 1, 1], [], []>} : vector<60x120xbf16>, vector<120x8xbf16>, vector<60x8xf32> -> vector<60x8xf32>
    %c64 = arith.constant 64 : index
    %c0_22 = arith.constant 0 : index
    %26 = vector.load %arg4[%c64, %c0_22] : memref<480x120xbf16, #tpu.memory_space<vmem>>, vector<60x120xbf16>
    %27 = arith.truncf %22 : vector<120x8xf32> to vector<120x8xbf16>
    %cst_23 = arith.constant dense<0.000000e+00> : vector<60x8xf32>
    %28 = tpu.matmul %26, %27, %cst_23 {dimension_numbers = #tpu.dot_dimension_numbers<[1], [0], [0], [1], [0, 0, 1, 1], [], []>} : vector<60x120xbf16>, vector<120x8xbf16>, vector<60x8xf32> -> vector<60x8xf32>
    %c0_24 = arith.constant 0 : index
    %c3 = arith.constant 3 : index
    %29 = vector.load %arg5[%c0_24, %c3] : memref<120x8xf32, #tpu.memory_space<vmem>>, vector<60x1xf32>
    %30 = vector.broadcast %29 : vector<60x1xf32> to vector<60x8xf32>
    %31 = arith.mulf %28, %30 : vector<60x8xf32>
    %c2_25 = arith.constant 2 : index
    %c0_26 = arith.constant 0 : index
    %32 = vector.load %arg7[%c2_25, %c0_26] : memref<122x192xf32, #tpu.memory_space<vmem>>, vector<60x8xf32>
    tpu.vector_store %arg7[%c2_25, %c0_26], %31 {strides = array<i32>} : memref<122x192xf32, #tpu.memory_space<vmem>>, vector<60x8xf32>,
    %c1_27 = arith.constant 1 : index
    %c8_28 = arith.constant 8 : index
    %33 = vector.load %arg7[%c1_27, %c8_28] : memref<122x192xf32, #tpu.memory_space<vmem>>, vector<60x8xf32>
    tpu.vector_store %arg7[%c1_27, %c8_28], %25 {strides = array<i32>} : memref<122x192xf32, #tpu.memory_space<vmem>>, vector<60x8xf32>,
    %c1_29 = arith.constant 1 : index
    %c16 = arith.constant 16 : index
    %34 = vector.load %arg7[%c1_29, %c16] : memref<122x192xf32, #tpu.memory_space<vmem>>, vector<60x8xf32>
    tpu.vector_store %arg7[%c1_29, %c16], %28 {strides = array<i32>} : memref<122x192xf32, #tpu.memory_space<vmem>>, vector<60x8xf32>,
    %cst_30 = arith.constant 0.000000e+00 : f32
    %35 = vector.broadcast %cst_30 : f32 to vector<1x8xf32>
    %c1_31 = arith.constant 1 : index
    %c0_32 = arith.constant 0 : index
    %36 = vector.load %arg7[%c1_31, %c0_32] : memref<122x192xf32, #tpu.memory_space<vmem>>, vector<1x8xf32>
    tpu.vector_store %arg7[%c1_31, %c0_32], %35 {strides = array<i32>} : memref<122x192xf32, #tpu.memory_space<vmem>>, vector<1x8xf32>,
    %c1_33 = arith.constant 1 : index
    %c0_34 = arith.constant 0 : index
    %37 = vector.load %arg7[%c1_33, %c0_34] : memref<122x192xf32, #tpu.memory_space<vmem>>, vector<60x24xf32>
    %c32 = arith.constant 32 : index
    %c0_35 = arith.constant 0 : index
    %38 = vector.load %arg2[%c32, %c0_35] : memref<960x64xbf16, #tpu.memory_space<vmem>>, vector<24x16xbf16>
    %39 = arith.truncf %37 : vector<60x24xf32> to vector<60x24xbf16>
    %cst_36 = arith.constant dense<0.000000e+00> : vector<60x16xf32>
    %40 = tpu.matmul %39, %38, %cst_36 {dimension_numbers = #tpu.dot_dimension_numbers<[1], [0], [0], [1], [0, 0, 1, 1], [], []>} : vector<60x24xbf16>, vector<24x16xbf16>, vector<60x16xf32> -> vector<60x16xf32>
    %c1_37 = arith.constant 1 : index
    %c0_38 = arith.constant 0 : index
    %41 = vector.load %arg3[%c1_37, %c0_38] : memref<16x64xf32, #tpu.memory_space<vmem>>, vector<1x16xf32>
    %42 = vector.broadcast %41 : vector<1x16xf32> to vector<60x16xf32>
    %43 = arith.addf %40, %42 : vector<60x16xf32>
    %c0_39 = arith.constant 0 : index
    %c2_40 = arith.constant 2 : index
    %44 = vector.load %arg5[%c0_39, %c2_40] : memref<120x8xf32, #tpu.memory_space<vmem>>, vector<60x1xf32>
    %c0_41 = arith.constant 0 : index
    %c3_42 = arith.constant 3 : index
    %45 = vector.load %arg5[%c0_41, %c3_42] : memref<120x8xf32, #tpu.memory_space<vmem>>, vector<60x1xf32>
    %46 = vector.broadcast %45 : vector<60x1xf32> to vector<60x16xf32>
    %47 = arith.mulf %43, %46 : vector<60x16xf32>
    %c2_43 = arith.constant 2 : index
    %c0_44 = arith.constant 0 : index
    %48 = vector.load %arg7[%c2_43, %c0_44] : memref<122x192xf32, #tpu.memory_space<vmem>>, vector<60x16xf32>
    tpu.vector_store %arg7[%c2_43, %c0_44], %47 {strides = array<i32>} : memref<122x192xf32, #tpu.memory_space<vmem>>, vector<60x16xf32>,
    %c1_45 = arith.constant 1 : index
    %c16_46 = arith.constant 16 : index
    %49 = vector.load %arg7[%c1_45, %c16_46] : memref<122x192xf32, #tpu.memory_space<vmem>>, vector<60x16xf32>
    tpu.vector_store %arg7[%c1_45, %c16_46], %43 {strides = array<i32>} : memref<122x192xf32, #tpu.memory_space<vmem>>, vector<60x16xf32>,
    %50 = vector.broadcast %44 : vector<60x1xf32> to vector<60x16xf32>
    %51 = arith.mulf %43, %50 : vector<60x16xf32>
    %c0_47 = arith.constant 0 : index
    %c32_48 = arith.constant 32 : index
    %52 = vector.load %arg7[%c0_47, %c32_48] : memref<122x192xf32, #tpu.memory_space<vmem>>, vector<60x16xf32>
    tpu.vector_store %arg7[%c0_47, %c32_48], %51 {strides = array<i32>} : memref<122x192xf32, #tpu.memory_space<vmem>>, vector<60x16xf32>,
    %cst_49 = arith.constant 0.000000e+00 : f32
    %53 = vector.broadcast %cst_49 : f32 to vector<1x16xf32>
    %c1_50 = arith.constant 1 : index
    %c0_51 = arith.constant 0 : index
    %54 = vector.load %arg7[%c1_50, %c0_51] : memref<122x192xf32, #tpu.memory_space<vmem>>, vector<1x16xf32>
    tpu.vector_store %arg7[%c1_50, %c0_51], %53 {strides = array<i32>} : memref<122x192xf32, #tpu.memory_space<vmem>>, vector<1x16xf32>,
    %cst_52 = arith.constant 0.000000e+00 : f32
    %55 = vector.broadcast %cst_52 : f32 to vector<1x16xf32>
    %c60 = arith.constant 60 : index
    %c32_53 = arith.constant 32 : index
    %56 = vector.load %arg7[%c60, %c32_53] : memref<122x192xf32, #tpu.memory_space<vmem>>, vector<1x16xf32>
    tpu.vector_store %arg7[%c60, %c32_53], %55 {strides = array<i32>} : memref<122x192xf32, #tpu.memory_space<vmem>>, vector<1x16xf32>,
    %c1_54 = arith.constant 1 : index
    %c0_55 = arith.constant 0 : index
    %57 = vector.load %arg7[%c1_54, %c0_55] : memref<122x192xf32, #tpu.memory_space<vmem>>, vector<60x48xf32>
    %c64_56 = arith.constant 64 : index
    %c0_57 = arith.constant 0 : index
    %58 = vector.load %arg2[%c64_56, %c0_57] : memref<960x64xbf16, #tpu.memory_space<vmem>>, vector<48x16xbf16>
    %59 = arith.truncf %57 : vector<60x48xf32> to vector<60x48xbf16>
    %cst_58 = arith.constant dense<0.000000e+00> : vector<60x16xf32>
    %60 = tpu.matmul %59, %58, %cst_58 {dimension_numbers = #tpu.dot_dimension_numbers<[1], [0], [0], [1], [0, 0, 1, 1], [], []>} : vector<60x48xbf16>, vector<48x16xbf16>, vector<60x16xf32> -> vector<60x16xf32>
    %c2_59 = arith.constant 2 : index
    %c0_60 = arith.constant 0 : index
    %61 = vector.load %arg3[%c2_59, %c0_60] : memref<16x64xf32, #tpu.memory_space<vmem>>, vector<1x16xf32>
    %62 = vector.broadcast %61 : vector<1x16xf32> to vector<60x16xf32>
    %63 = arith.addf %60, %62 : vector<60x16xf32>
    %cst_61 = arith.constant 0.000000e+00 : f32
    %64 = vector.broadcast %cst_61 : f32 to vector<60x16xf32>
    %65 = arith.maximumf %63, %64 : vector<60x16xf32>
    %c128 = arith.constant 128 : index
    %c0_62 = arith.constant 0 : index
    %66 = vector.load %arg4[%c128, %c0_62] : memref<480x120xbf16, #tpu.memory_space<vmem>>, vector<32x60xbf16>
    %67 = arith.truncf %65 : vector<60x16xf32> to vector<60x16xbf16>
    %cst_63 = arith.constant dense<0.000000e+00> : vector<32x16xf32>
    %68 = tpu.matmul %66, %67, %cst_63 {dimension_numbers = #tpu.dot_dimension_numbers<[1], [0], [0], [1], [0, 0, 1, 1], [], []>} : vector<32x60xbf16>, vector<60x16xbf16>, vector<32x16xf32> -> vector<32x16xf32>
    %c160 = arith.constant 160 : index
    %c0_64 = arith.constant 0 : index
    %69 = vector.load %arg4[%c160, %c0_64] : memref<480x120xbf16, #tpu.memory_space<vmem>>, vector<32x60xbf16>
    %70 = arith.truncf %65 : vector<60x16xf32> to vector<60x16xbf16>
    %cst_65 = arith.constant dense<0.000000e+00> : vector<32x16xf32>
    %71 = tpu.matmul %69, %70, %cst_65 {dimension_numbers = #tpu.dot_dimension_numbers<[1], [0], [0], [1], [0, 0, 1, 1], [], []>} : vector<32x60xbf16>, vector<60x16xbf16>, vector<32x16xf32> -> vector<32x16xf32>
    %c0_66 = arith.constant 0 : index
    %c5 = arith.constant 5 : index
    %72 = vector.load %arg5[%c0_66, %c5] : memref<120x8xf32, #tpu.memory_space<vmem>>, vector<32x1xf32>
    %73 = vector.broadcast %72 : vector<32x1xf32> to vector<32x16xf32>
    %74 = arith.mulf %71, %73 : vector<32x16xf32>
    %c2_67 = arith.constant 2 : index
    %c0_68 = arith.constant 0 : index
    %75 = vector.load %arg7[%c2_67, %c0_68] : memref<122x192xf32, #tpu.memory_space<vmem>>, vector<32x16xf32>
    tpu.vector_store %arg7[%c2_67, %c0_68], %74 {strides = array<i32>} : memref<122x192xf32, #tpu.memory_space<vmem>>, vector<32x16xf32>,
    %c1_69 = arith.constant 1 : index
    %c16_70 = arith.constant 16 : index
    %76 = vector.load %arg7[%c1_69, %c16_70] : memref<122x192xf32, #tpu.memory_space<vmem>>, vector<32x16xf32>
    tpu.vector_store %arg7[%c1_69, %c16_70], %68 {strides = array<i32>} : memref<122x192xf32, #tpu.memory_space<vmem>>, vector<32x16xf32>,
    %c1_71 = arith.constant 1 : index
    %c32_72 = arith.constant 32 : index
    %77 = vector.load %arg7[%c1_71, %c32_72] : memref<122x192xf32, #tpu.memory_space<vmem>>, vector<32x16xf32>
    tpu.vector_store %arg7[%c1_71, %c32_72], %71 {strides = array<i32>} : memref<122x192xf32, #tpu.memory_space<vmem>>, vector<32x16xf32>,
    %cst_73 = arith.constant 0.000000e+00 : f32
    %78 = vector.broadcast %cst_73 : f32 to vector<1x16xf32>
    %c1_74 = arith.constant 1 : index
    %c0_75 = arith.constant 0 : index
    %79 = vector.load %arg7[%c1_74, %c0_75] : memref<122x192xf32, #tpu.memory_space<vmem>>, vector<1x16xf32>
    tpu.vector_store %arg7[%c1_74, %c0_75], %78 {strides = array<i32>} : memref<122x192xf32, #tpu.memory_space<vmem>>, vector<1x16xf32>,
    %c1_76 = arith.constant 1 : index
    %c0_77 = arith.constant 0 : index
    %80 = vector.load %arg7[%c1_76, %c0_77] : memref<122x192xf32, #tpu.memory_space<vmem>>, vector<32x48xf32>
    %c128_78 = arith.constant 128 : index
    %c0_79 = arith.constant 0 : index
    %81 = vector.load %arg2[%c128_78, %c0_79] : memref<960x64xbf16, #tpu.memory_space<vmem>>, vector<48x32xbf16>
    %82 = arith.truncf %80 : vector<32x48xf32> to vector<32x48xbf16>
    %cst_80 = arith.constant dense<0.000000e+00> : vector<32x32xf32>
    %83 = tpu.matmul %82, %81, %cst_80 {dimension_numbers = #tpu.dot_dimension_numbers<[1], [0], [0], [1], [0, 0, 1, 1], [], []>} : vector<32x48xbf16>, vector<48x32xbf16>, vector<32x32xf32> -> vector<32x32xf32>
    %c3_81 = arith.constant 3 : index
    %c0_82 = arith.constant 0 : index
    %84 = vector.load %arg3[%c3_81, %c0_82] : memref<16x64xf32, #tpu.memory_space<vmem>>, vector<1x32xf32>
    %85 = vector.broadcast %84 : vector<1x32xf32> to vector<32x32xf32>
    %86 = arith.addf %83, %85 : vector<32x32xf32>
    %c0_83 = arith.constant 0 : index
    %c4_84 = arith.constant 4 : index
    %87 = vector.load %arg5[%c0_83, %c4_84] : memref<120x8xf32, #tpu.memory_space<vmem>>, vector<32x1xf32>
    %c0_85 = arith.constant 0 : index
    %c5_86 = arith.constant 5 : index
    %88 = vector.load %arg5[%c0_85, %c5_86] : memref<120x8xf32, #tpu.memory_space<vmem>>, vector<32x1xf32>
    %89 = vector.broadcast %88 : vector<32x1xf32> to vector<32x32xf32>
    %90 = arith.mulf %86, %89 : vector<32x32xf32>
    %c2_87 = arith.constant 2 : index
    %c0_88 = arith.constant 0 : index
    %91 = vector.load %arg7[%c2_87, %c0_88] : memref<122x192xf32, #tpu.memory_space<vmem>>, vector<32x32xf32>
    tpu.vector_store %arg7[%c2_87, %c0_88], %90 {strides = array<i32>} : memref<122x192xf32, #tpu.memory_space<vmem>>, vector<32x32xf32>,
    %c1_89 = arith.constant 1 : index
    %c32_90 = arith.constant 32 : index
    %92 = vector.load %arg7[%c1_89, %c32_90] : memref<122x192xf32, #tpu.memory_space<vmem>>, vector<32x32xf32>
    tpu.vector_store %arg7[%c1_89, %c32_90], %86 {strides = array<i32>} : memref<122x192xf32, #tpu.memory_space<vmem>>, vector<32x32xf32>,
    %93 = vector.broadcast %87 : vector<32x1xf32> to vector<32x32xf32>
    %94 = arith.mulf %86, %93 : vector<32x32xf32>
    %c0_91 = arith.constant 0 : index
    %c64_92 = arith.constant 64 : index
    %95 = vector.load %arg7[%c0_91, %c64_92] : memref<122x192xf32, #tpu.memory_space<vmem>>, vector<32x32xf32>
    tpu.vector_store %arg7[%c0_91, %c64_92], %94 {strides = array<i32>} : memref<122x192xf32, #tpu.memory_space<vmem>>, vector<32x32xf32>,
    %cst_93 = arith.constant 0.000000e+00 : f32
    %96 = vector.broadcast %cst_93 : f32 to vector<1x32xf32>
    %c1_94 = arith.constant 1 : index
    %c0_95 = arith.constant 0 : index
    %97 = vector.load %arg7[%c1_94, %c0_95] : memref<122x192xf32, #tpu.memory_space<vmem>>, vector<1x32xf32>
    tpu.vector_store %arg7[%c1_94, %c0_95], %96 {strides = array<i32>} : memref<122x192xf32, #tpu.memory_space<vmem>>, vector<1x32xf32>,
    %cst_96 = arith.constant 0.000000e+00 : f32
    %98 = vector.broadcast %cst_96 : f32 to vector<1x32xf32>
    %c32_97 = arith.constant 32 : index
    %c64_98 = arith.constant 64 : index
    %99 = vector.load %arg7[%c32_97, %c64_98] : memref<122x192xf32, #tpu.memory_space<vmem>>, vector<1x32xf32>
    tpu.vector_store %arg7[%c32_97, %c64_98], %98 {strides = array<i32>} : memref<122x192xf32, #tpu.memory_space<vmem>>, vector<1x32xf32>,
    %c1_99 = arith.constant 1 : index
    %c0_100 = arith.constant 0 : index
    %100 = vector.load %arg7[%c1_99, %c0_100] : memref<122x192xf32, #tpu.memory_space<vmem>>, vector<32x96xf32>
    %c192 = arith.constant 192 : index
    %c0_101 = arith.constant 0 : index
    %101 = vector.load %arg2[%c192, %c0_101] : memref<960x64xbf16, #tpu.memory_space<vmem>>, vector<96x32xbf16>
    %102 = arith.truncf %100 : vector<32x96xf32> to vector<32x96xbf16>
    %cst_102 = arith.constant dense<0.000000e+00> : vector<32x32xf32>
    %103 = tpu.matmul %102, %101, %cst_102 {dimension_numbers = #tpu.dot_dimension_numbers<[1], [0], [0], [1], [0, 0, 1, 1], [], []>} : vector<32x96xbf16>, vector<96x32xbf16>, vector<32x32xf32> -> vector<32x32xf32>
    %c4_103 = arith.constant 4 : index
    %c0_104 = arith.constant 0 : index
    %104 = vector.load %arg3[%c4_103, %c0_104] : memref<16x64xf32, #tpu.memory_space<vmem>>, vector<1x32xf32>
    %105 = vector.broadcast %104 : vector<1x32xf32> to vector<32x32xf32>
    %106 = arith.addf %103, %105 : vector<32x32xf32>
    %cst_105 = arith.constant 0.000000e+00 : f32
    %107 = vector.broadcast %cst_105 : f32 to vector<32x32xf32>
    %108 = arith.maximumf %106, %107 : vector<32x32xf32>
    %c192_106 = arith.constant 192 : index
    %c0_107 = arith.constant 0 : index
    %109 = vector.load %arg4[%c192_106, %c0_107] : memref<480x120xbf16, #tpu.memory_space<vmem>>, vector<16x32xbf16>
    %110 = arith.truncf %108 : vector<32x32xf32> to vector<32x32xbf16>
    %cst_108 = arith.constant dense<0.000000e+00> : vector<16x32xf32>
    %111 = tpu.matmul %109, %110, %cst_108 {dimension_numbers = #tpu.dot_dimension_numbers<[1], [0], [0], [1], [0, 0, 1, 1], [], []>} : vector<16x32xbf16>, vector<32x32xbf16>, vector<16x32xf32> -> vector<16x32xf32>
    %c224 = arith.constant 224 : index
    %c0_109 = arith.constant 0 : index
    %112 = vector.load %arg4[%c224, %c0_109] : memref<480x120xbf16, #tpu.memory_space<vmem>>, vector<16x32xbf16>
    %113 = arith.truncf %108 : vector<32x32xf32> to vector<32x32xbf16>
    %cst_110 = arith.constant dense<0.000000e+00> : vector<16x32xf32>
    %114 = tpu.matmul %112, %113, %cst_110 {dimension_numbers = #tpu.dot_dimension_numbers<[1], [0], [0], [1], [0, 0, 1, 1], [], []>} : vector<16x32xbf16>, vector<32x32xbf16>, vector<16x32xf32> -> vector<16x32xf32>
    %c0_111 = arith.constant 0 : index
    %c7 = arith.constant 7 : index
    %115 = vector.load %arg5[%c0_111, %c7] : memref<120x8xf32, #tpu.memory_space<vmem>>, vector<16x1xf32>
    %116 = vector.broadcast %115 : vector<16x1xf32> to vector<16x32xf32>
    %117 = arith.mulf %114, %116 : vector<16x32xf32>
    %c2_112 = arith.constant 2 : index
    %c0_113 = arith.constant 0 : index
    %118 = vector.load %arg7[%c2_112, %c0_113] : memref<122x192xf32, #tpu.memory_space<vmem>>, vector<16x32xf32>
    tpu.vector_store %arg7[%c2_112, %c0_113], %117 {strides = array<i32>} : memref<122x192xf32, #tpu.memory_space<vmem>>, vector<16x32xf32>,
    %c1_114 = arith.constant 1 : index
    %c32_115 = arith.constant 32 : index
    %119 = vector.load %arg7[%c1_114, %c32_115] : memref<122x192xf32, #tpu.memory_space<vmem>>, vector<16x32xf32>
    tpu.vector_store %arg7[%c1_114, %c32_115], %111 {strides = array<i32>} : memref<122x192xf32, #tpu.memory_space<vmem>>, vector<16x32xf32>,
    %c1_116 = arith.constant 1 : index
    %c64_117 = arith.constant 64 : index
    %120 = vector.load %arg7[%c1_116, %c64_117] : memref<122x192xf32, #tpu.memory_space<vmem>>, vector<16x32xf32>
    tpu.vector_store %arg7[%c1_116, %c64_117], %114 {strides = array<i32>} : memref<122x192xf32, #tpu.memory_space<vmem>>, vector<16x32xf32>,
    %cst_118 = arith.constant 0.000000e+00 : f32
    %121 = vector.broadcast %cst_118 : f32 to vector<1x32xf32>
    %c1_119 = arith.constant 1 : index
    %c0_120 = arith.constant 0 : index
    %122 = vector.load %arg7[%c1_119, %c0_120] : memref<122x192xf32, #tpu.memory_space<vmem>>, vector<1x32xf32>
    tpu.vector_store %arg7[%c1_119, %c0_120], %121 {strides = array<i32>} : memref<122x192xf32, #tpu.memory_space<vmem>>, vector<1x32xf32>,
    %c1_121 = arith.constant 1 : index
    %c0_122 = arith.constant 0 : index
    %123 = vector.load %arg7[%c1_121, %c0_122] : memref<122x192xf32, #tpu.memory_space<vmem>>, vector<16x96xf32>
    %c288 = arith.constant 288 : index
    %c0_123 = arith.constant 0 : index
    %124 = vector.load %arg2[%c288, %c0_123] : memref<960x64xbf16, #tpu.memory_space<vmem>>, vector<96x64xbf16>
    %125 = arith.truncf %123 : vector<16x96xf32> to vector<16x96xbf16>
    %cst_124 = arith.constant dense<0.000000e+00> : vector<16x64xf32>
    %126 = tpu.matmul %125, %124, %cst_124 {dimension_numbers = #tpu.dot_dimension_numbers<[1], [0], [0], [1], [0, 0, 1, 1], [], []>} : vector<16x96xbf16>, vector<96x64xbf16>, vector<16x64xf32> -> vector<16x64xf32>
    %c5_125 = arith.constant 5 : index
    %c0_126 = arith.constant 0 : index
    %127 = vector.load %arg3[%c5_125, %c0_126] : memref<16x64xf32, #tpu.memory_space<vmem>>, vector<1x64xf32>
    %128 = vector.broadcast %127 : vector<1x64xf32> to vector<16x64xf32>
    %129 = arith.addf %126, %128 : vector<16x64xf32>
    %c0_127 = arith.constant 0 : index
    %c6 = arith.constant 6 : index
    %130 = vector.load %arg5[%c0_127, %c6] : memref<120x8xf32, #tpu.memory_space<vmem>>, vector<16x1xf32>
    %c0_128 = arith.constant 0 : index
    %c7_129 = arith.constant 7 : index
    %131 = vector.load %arg5[%c0_128, %c7_129] : memref<120x8xf32, #tpu.memory_space<vmem>>, vector<16x1xf32>
    %132 = vector.broadcast %131 : vector<16x1xf32> to vector<16x64xf32>
    %133 = arith.mulf %129, %132 : vector<16x64xf32>
    %c2_130 = arith.constant 2 : index
    %c0_131 = arith.constant 0 : index
    %134 = vector.load %arg7[%c2_130, %c0_131] : memref<122x192xf32, #tpu.memory_space<vmem>>, vector<16x64xf32>
    tpu.vector_store %arg7[%c2_130, %c0_131], %133 {strides = array<i32>} : memref<122x192xf32, #tpu.memory_space<vmem>>, vector<16x64xf32>,
    %c1_132 = arith.constant 1 : index
    %c64_133 = arith.constant 64 : index
    %135 = vector.load %arg7[%c1_132, %c64_133] : memref<122x192xf32, #tpu.memory_space<vmem>>, vector<16x64xf32>
    tpu.vector_store %arg7[%c1_132, %c64_133], %129 {strides = array<i32>} : memref<122x192xf32, #tpu.memory_space<vmem>>, vector<16x64xf32>,
    %136 = vector.broadcast %130 : vector<16x1xf32> to vector<16x64xf32>
    %137 = arith.mulf %129, %136 : vector<16x64xf32>
    %c0_134 = arith.constant 0 : index
    %c128_135 = arith.constant 128 : index
    %138 = vector.load %arg7[%c0_134, %c128_135] : memref<122x192xf32, #tpu.memory_space<vmem>>, vector<16x64xf32>
    tpu.vector_store %arg7[%c0_134, %c128_135], %137 {strides = array<i32>} : memref<122x192xf32, #tpu.memory_space<vmem>>, vector<16x64xf32>,
    %cst_136 = arith.constant 0.000000e+00 : f32
    %139 = vector.broadcast %cst_136 : f32 to vector<1x64xf32>
    %c1_137 = arith.constant 1 : index
    %c0_138 = arith.constant 0 : index
    %140 = vector.load %arg7[%c1_137, %c0_138] : memref<122x192xf32, #tpu.memory_space<vmem>>, vector<1x64xf32>
    tpu.vector_store %arg7[%c1_137, %c0_138], %139 {strides = array<i32>} : memref<122x192xf32, #tpu.memory_space<vmem>>, vector<1x64xf32>,
    %cst_139 = arith.constant 0.000000e+00 : f32
    %141 = vector.broadcast %cst_139 : f32 to vector<1x64xf32>
    %c16_140 = arith.constant 16 : index
    %c128_141 = arith.constant 128 : index
    %142 = vector.load %arg7[%c16_140, %c128_141] : memref<122x192xf32, #tpu.memory_space<vmem>>, vector<1x64xf32>
    tpu.vector_store %arg7[%c16_140, %c128_141], %141 {strides = array<i32>} : memref<122x192xf32, #tpu.memory_space<vmem>>, vector<1x64xf32>,
    %c1_142 = arith.constant 1 : index
    %c0_143 = arith.constant 0 : index
    %143 = vector.load %arg7[%c1_142, %c0_143] : memref<122x192xf32, #tpu.memory_space<vmem>>, vector<16x192xf32>
    %c384 = arith.constant 384 : index
    %c0_144 = arith.constant 0 : index
    %144 = vector.load %arg2[%c384, %c0_144] : memref<960x64xbf16, #tpu.memory_space<vmem>>, vector<192x64xbf16>
    %145 = arith.truncf %143 : vector<16x192xf32> to vector<16x192xbf16>
    %cst_145 = arith.constant dense<0.000000e+00> : vector<16x64xf32>
    %146 = tpu.matmul %145, %144, %cst_145 {dimension_numbers = #tpu.dot_dimension_numbers<[1], [0], [0], [1], [0, 0, 1, 1], [], []>} : vector<16x192xbf16>, vector<192x64xbf16>, vector<16x64xf32> -> vector<16x64xf32>
    %c6_146 = arith.constant 6 : index
    %c0_147 = arith.constant 0 : index
    %147 = vector.load %arg3[%c6_146, %c0_147] : memref<16x64xf32, #tpu.memory_space<vmem>>, vector<1x64xf32>
    %148 = vector.broadcast %147 : vector<1x64xf32> to vector<16x64xf32>
    %149 = arith.addf %146, %148 : vector<16x64xf32>
    %cst_148 = arith.constant 0.000000e+00 : f32
    %150 = vector.broadcast %cst_148 : f32 to vector<16x64xf32>
    %151 = arith.maximumf %149, %150 : vector<16x64xf32>
    %c256 = arith.constant 256 : index
    %c0_149 = arith.constant 0 : index
    %152 = vector.load %arg4[%c256, %c0_149] : memref<480x120xbf16, #tpu.memory_space<vmem>>, vector<32x16xbf16>
    %153 = arith.truncf %151 : vector<16x64xf32> to vector<16x64xbf16>
    %cst_150 = arith.constant dense<0.000000e+00> : vector<32x64xf32>
    %154 = tpu.matmul %152, %153, %cst_150 {dimension_numbers = #tpu.dot_dimension_numbers<[1], [0], [0], [1], [0, 0, 1, 1], [], []>} : vector<32x16xbf16>, vector<16x64xbf16>, vector<32x64xf32> -> vector<32x64xf32>
    %c0_151 = arith.constant 0 : index
    %c0_152 = arith.constant 0 : index
    %155 = vector.load %arg7[%c0_151, %c0_152] : memref<122x192xf32, #tpu.memory_space<vmem>>, vector<32x32xf32>
    tpu.vector_store %arg7[%c0_151, %c0_152], %108 {strides = array<i32>} : memref<122x192xf32, #tpu.memory_space<vmem>>, vector<32x32xf32>,
    %c0_153 = arith.constant 0 : index
    %c32_154 = arith.constant 32 : index
    %156 = vector.load %arg7[%c0_153, %c32_154] : memref<122x192xf32, #tpu.memory_space<vmem>>, vector<32x64xf32>
    tpu.vector_store %arg7[%c0_153, %c32_154], %154 {strides = array<i32>} : memref<122x192xf32, #tpu.memory_space<vmem>>, vector<32x64xf32>,
    %c0_155 = arith.constant 0 : index
    %c0_156 = arith.constant 0 : index
    %157 = vector.load %arg7[%c0_155, %c0_156] : memref<122x192xf32, #tpu.memory_space<vmem>>, vector<32x96xf32>
    %c576 = arith.constant 576 : index
    %c0_157 = arith.constant 0 : index
    %158 = vector.load %arg2[%c576, %c0_157] : memref<960x64xbf16, #tpu.memory_space<vmem>>, vector<96x32xbf16>
    %159 = arith.truncf %157 : vector<32x96xf32> to vector<32x96xbf16>
    %cst_158 = arith.constant dense<0.000000e+00> : vector<32x32xf32>
    %160 = tpu.matmul %159, %158, %cst_158 {dimension_numbers = #tpu.dot_dimension_numbers<[1], [0], [0], [1], [0, 0, 1, 1], [], []>} : vector<32x96xbf16>, vector<96x32xbf16>, vector<32x32xf32> -> vector<32x32xf32>
    %c7_159 = arith.constant 7 : index
    %c0_160 = arith.constant 0 : index
    %161 = vector.load %arg3[%c7_159, %c0_160] : memref<16x64xf32, #tpu.memory_space<vmem>>, vector<1x32xf32>
    %162 = vector.broadcast %161 : vector<1x32xf32> to vector<32x32xf32>
    %163 = arith.addf %160, %162 : vector<32x32xf32>
    %c0_161 = arith.constant 0 : index
    %c4_162 = arith.constant 4 : index
    %164 = vector.load %arg5[%c0_161, %c4_162] : memref<120x8xf32, #tpu.memory_space<vmem>>, vector<32x1xf32>
    %c0_163 = arith.constant 0 : index
    %c5_164 = arith.constant 5 : index
    %165 = vector.load %arg5[%c0_163, %c5_164] : memref<120x8xf32, #tpu.memory_space<vmem>>, vector<32x1xf32>
    %166 = vector.broadcast %165 : vector<32x1xf32> to vector<32x32xf32>
    %167 = arith.mulf %163, %166 : vector<32x32xf32>
    %c2_165 = arith.constant 2 : index
    %c0_166 = arith.constant 0 : index
    %168 = vector.load %arg7[%c2_165, %c0_166] : memref<122x192xf32, #tpu.memory_space<vmem>>, vector<32x32xf32>
    tpu.vector_store %arg7[%c2_165, %c0_166], %167 {strides = array<i32>} : memref<122x192xf32, #tpu.memory_space<vmem>>, vector<32x32xf32>,
    %c1_167 = arith.constant 1 : index
    %c32_168 = arith.constant 32 : index
    %169 = vector.load %arg7[%c1_167, %c32_168] : memref<122x192xf32, #tpu.memory_space<vmem>>, vector<32x32xf32>
    tpu.vector_store %arg7[%c1_167, %c32_168], %163 {strides = array<i32>} : memref<122x192xf32, #tpu.memory_space<vmem>>, vector<32x32xf32>,
    %170 = vector.broadcast %164 : vector<32x1xf32> to vector<32x32xf32>
    %171 = arith.mulf %163, %170 : vector<32x32xf32>
    %c0_169 = arith.constant 0 : index
    %c64_170 = arith.constant 64 : index
    %172 = vector.load %arg7[%c0_169, %c64_170] : memref<122x192xf32, #tpu.memory_space<vmem>>, vector<32x32xf32>
    tpu.vector_store %arg7[%c0_169, %c64_170], %171 {strides = array<i32>} : memref<122x192xf32, #tpu.memory_space<vmem>>, vector<32x32xf32>,
    %cst_171 = arith.constant 0.000000e+00 : f32
    %173 = vector.broadcast %cst_171 : f32 to vector<1x32xf32>
    %c1_172 = arith.constant 1 : index
    %c0_173 = arith.constant 0 : index
    %174 = vector.load %arg7[%c1_172, %c0_173] : memref<122x192xf32, #tpu.memory_space<vmem>>, vector<1x32xf32>
    tpu.vector_store %arg7[%c1_172, %c0_173], %173 {strides = array<i32>} : memref<122x192xf32, #tpu.memory_space<vmem>>, vector<1x32xf32>,
    %cst_174 = arith.constant 0.000000e+00 : f32
    %175 = vector.broadcast %cst_174 : f32 to vector<1x32xf32>
    %c32_175 = arith.constant 32 : index
    %c64_176 = arith.constant 64 : index
    %176 = vector.load %arg7[%c32_175, %c64_176] : memref<122x192xf32, #tpu.memory_space<vmem>>, vector<1x32xf32>
    tpu.vector_store %arg7[%c32_175, %c64_176], %175 {strides = array<i32>} : memref<122x192xf32, #tpu.memory_space<vmem>>, vector<1x32xf32>,
    %c1_177 = arith.constant 1 : index
    %c0_178 = arith.constant 0 : index
    %177 = vector.load %arg7[%c1_177, %c0_178] : memref<122x192xf32, #tpu.memory_space<vmem>>, vector<32x96xf32>
    %c672 = arith.constant 672 : index
    %c0_179 = arith.constant 0 : index
    %178 = vector.load %arg2[%c672, %c0_179] : memref<960x64xbf16, #tpu.memory_space<vmem>>, vector<96x32xbf16>
    %179 = arith.truncf %177 : vector<32x96xf32> to vector<32x96xbf16>
    %cst_180 = arith.constant dense<0.000000e+00> : vector<32x32xf32>
    %180 = tpu.matmul %179, %178, %cst_180 {dimension_numbers = #tpu.dot_dimension_numbers<[1], [0], [0], [1], [0, 0, 1, 1], [], []>} : vector<32x96xbf16>, vector<96x32xbf16>, vector<32x32xf32> -> vector<32x32xf32>
    %c8_181 = arith.constant 8 : index
    %c0_182 = arith.constant 0 : index
    %181 = vector.load %arg3[%c8_181, %c0_182] : memref<16x64xf32, #tpu.memory_space<vmem>>, vector<1x32xf32>
    %182 = vector.broadcast %181 : vector<1x32xf32> to vector<32x32xf32>
    %183 = arith.addf %180, %182 : vector<32x32xf32>
    %cst_183 = arith.constant 0.000000e+00 : f32
    %184 = vector.broadcast %cst_183 : f32 to vector<32x32xf32>
    %185 = arith.maximumf %183, %184 : vector<32x32xf32>
    %c288_184 = arith.constant 288 : index
    %c0_185 = arith.constant 0 : index
    %186 = vector.load %arg4[%c288_184, %c0_185] : memref<480x120xbf16, #tpu.memory_space<vmem>>, vector<60x32xbf16>
    %187 = arith.truncf %185 : vector<32x32xf32> to vector<32x32xbf16>
    %cst_186 = arith.constant dense<0.000000e+00> : vector<60x32xf32>
    %188 = tpu.matmul %186, %187, %cst_186 {dimension_numbers = #tpu.dot_dimension_numbers<[1], [0], [0], [1], [0, 0, 1, 1], [], []>} : vector<60x32xbf16>, vector<32x32xbf16>, vector<60x32xf32> -> vector<60x32xf32>
    %c0_187 = arith.constant 0 : index
    %c0_188 = arith.constant 0 : index
    %189 = vector.load %arg7[%c0_187, %c0_188] : memref<122x192xf32, #tpu.memory_space<vmem>>, vector<60x16xf32>
    tpu.vector_store %arg7[%c0_187, %c0_188], %65 {strides = array<i32>} : memref<122x192xf32, #tpu.memory_space<vmem>>, vector<60x16xf32>,
    %c0_189 = arith.constant 0 : index
    %c16_190 = arith.constant 16 : index
    %190 = vector.load %arg7[%c0_189, %c16_190] : memref<122x192xf32, #tpu.memory_space<vmem>>, vector<60x32xf32>
    tpu.vector_store %arg7[%c0_189, %c16_190], %188 {strides = array<i32>} : memref<122x192xf32, #tpu.memory_space<vmem>>, vector<60x32xf32>,
    %c0_191 = arith.constant 0 : index
    %c0_192 = arith.constant 0 : index
    %191 = vector.load %arg7[%c0_191, %c0_192] : memref<122x192xf32, #tpu.memory_space<vmem>>, vector<60x48xf32>
    %c768 = arith.constant 768 : index
    %c0_193 = arith.constant 0 : index
    %192 = vector.load %arg2[%c768, %c0_193] : memref<960x64xbf16, #tpu.memory_space<vmem>>, vector<48x16xbf16>
    %193 = arith.truncf %191 : vector<60x48xf32> to vector<60x48xbf16>
    %cst_194 = arith.constant dense<0.000000e+00> : vector<60x16xf32>
    %194 = tpu.matmul %193, %192, %cst_194 {dimension_numbers = #tpu.dot_dimension_numbers<[1], [0], [0], [1], [0, 0, 1, 1], [], []>} : vector<60x48xbf16>, vector<48x16xbf16>, vector<60x16xf32> -> vector<60x16xf32>
    %c9 = arith.constant 9 : index
    %c0_195 = arith.constant 0 : index
    %195 = vector.load %arg3[%c9, %c0_195] : memref<16x64xf32, #tpu.memory_space<vmem>>, vector<1x16xf32>
    %196 = vector.broadcast %195 : vector<1x16xf32> to vector<60x16xf32>
    %197 = arith.addf %194, %196 : vector<60x16xf32>
    %c0_196 = arith.constant 0 : index
    %c2_197 = arith.constant 2 : index
    %198 = vector.load %arg5[%c0_196, %c2_197] : memref<120x8xf32, #tpu.memory_space<vmem>>, vector<60x1xf32>
    %c0_198 = arith.constant 0 : index
    %c3_199 = arith.constant 3 : index
    %199 = vector.load %arg5[%c0_198, %c3_199] : memref<120x8xf32, #tpu.memory_space<vmem>>, vector<60x1xf32>
    %200 = vector.broadcast %199 : vector<60x1xf32> to vector<60x16xf32>
    %201 = arith.mulf %197, %200 : vector<60x16xf32>
    %c2_200 = arith.constant 2 : index
    %c0_201 = arith.constant 0 : index
    %202 = vector.load %arg7[%c2_200, %c0_201] : memref<122x192xf32, #tpu.memory_space<vmem>>, vector<60x16xf32>
    tpu.vector_store %arg7[%c2_200, %c0_201], %201 {strides = array<i32>} : memref<122x192xf32, #tpu.memory_space<vmem>>, vector<60x16xf32>,
    %c1_202 = arith.constant 1 : index
    %c16_203 = arith.constant 16 : index
    %203 = vector.load %arg7[%c1_202, %c16_203] : memref<122x192xf32, #tpu.memory_space<vmem>>, vector<60x16xf32>
    tpu.vector_store %arg7[%c1_202, %c16_203], %197 {strides = array<i32>} : memref<122x192xf32, #tpu.memory_space<vmem>>, vector<60x16xf32>,
    %204 = vector.broadcast %198 : vector<60x1xf32> to vector<60x16xf32>
    %205 = arith.mulf %197, %204 : vector<60x16xf32>
    %c0_204 = arith.constant 0 : index
    %c32_205 = arith.constant 32 : index
    %206 = vector.load %arg7[%c0_204, %c32_205] : memref<122x192xf32, #tpu.memory_space<vmem>>, vector<60x16xf32>
    tpu.vector_store %arg7[%c0_204, %c32_205], %205 {strides = array<i32>} : memref<122x192xf32, #tpu.memory_space<vmem>>, vector<60x16xf32>,
    %cst_206 = arith.constant 0.000000e+00 : f32
    %207 = vector.broadcast %cst_206 : f32 to vector<1x16xf32>
    %c1_207 = arith.constant 1 : index
    %c0_208 = arith.constant 0 : index
    %208 = vector.load %arg7[%c1_207, %c0_208] : memref<122x192xf32, #tpu.memory_space<vmem>>, vector<1x16xf32>
    tpu.vector_store %arg7[%c1_207, %c0_208], %207 {strides = array<i32>} : memref<122x192xf32, #tpu.memory_space<vmem>>, vector<1x16xf32>,
    %cst_209 = arith.constant 0.000000e+00 : f32
    %209 = vector.broadcast %cst_209 : f32 to vector<1x16xf32>
    %c60_210 = arith.constant 60 : index
    %c32_211 = arith.constant 32 : index
    %210 = vector.load %arg7[%c60_210, %c32_211] : memref<122x192xf32, #tpu.memory_space<vmem>>, vector<1x16xf32>
    tpu.vector_store %arg7[%c60_210, %c32_211], %209 {strides = array<i32>} : memref<122x192xf32, #tpu.memory_space<vmem>>, vector<1x16xf32>,
    %c1_212 = arith.constant 1 : index
    %c0_213 = arith.constant 0 : index
    %211 = vector.load %arg7[%c1_212, %c0_213] : memref<122x192xf32, #tpu.memory_space<vmem>>, vector<60x48xf32>
    %c832 = arith.constant 832 : index
    %c0_214 = arith.constant 0 : index
    %212 = vector.load %arg2[%c832, %c0_214] : memref<960x64xbf16, #tpu.memory_space<vmem>>, vector<48x16xbf16>
    %213 = arith.truncf %211 : vector<60x48xf32> to vector<60x48xbf16>
    %cst_215 = arith.constant dense<0.000000e+00> : vector<60x16xf32>
    %214 = tpu.matmul %213, %212, %cst_215 {dimension_numbers = #tpu.dot_dimension_numbers<[1], [0], [0], [1], [0, 0, 1, 1], [], []>} : vector<60x48xbf16>, vector<48x16xbf16>, vector<60x16xf32> -> vector<60x16xf32>
    %c10 = arith.constant 10 : index
    %c0_216 = arith.constant 0 : index
    %215 = vector.load %arg3[%c10, %c0_216] : memref<16x64xf32, #tpu.memory_space<vmem>>, vector<1x16xf32>
    %216 = vector.broadcast %215 : vector<1x16xf32> to vector<60x16xf32>
    %217 = arith.addf %214, %216 : vector<60x16xf32>
    %cst_217 = arith.constant 0.000000e+00 : f32
    %218 = vector.broadcast %cst_217 : f32 to vector<60x16xf32>
    %219 = arith.maximumf %217, %218 : vector<60x16xf32>
    %c352 = arith.constant 352 : index
    %c0_218 = arith.constant 0 : index
    %220 = vector.load %arg4[%c352, %c0_218] : memref<480x120xbf16, #tpu.memory_space<vmem>>, vector<120x60xbf16>
    %221 = arith.truncf %219 : vector<60x16xf32> to vector<60x16xbf16>
    %cst_219 = arith.constant dense<0.000000e+00> : vector<120x16xf32>
    %222 = tpu.matmul %220, %221, %cst_219 {dimension_numbers = #tpu.dot_dimension_numbers<[1], [0], [0], [1], [0, 0, 1, 1], [], []>} : vector<120x60xbf16>, vector<60x16xbf16>, vector<120x16xf32> -> vector<120x16xf32>
    %c0_220 = arith.constant 0 : index
    %c0_221 = arith.constant 0 : index
    %223 = vector.load %arg7[%c0_220, %c0_221] : memref<122x192xf32, #tpu.memory_space<vmem>>, vector<120x8xf32>
    tpu.vector_store %arg7[%c0_220, %c0_221], %22 {strides = array<i32>} : memref<122x192xf32, #tpu.memory_space<vmem>>, vector<120x8xf32>,
    %c0_222 = arith.constant 0 : index
    %c8_223 = arith.constant 8 : index
    %224 = vector.load %arg7[%c0_222, %c8_223] : memref<122x192xf32, #tpu.memory_space<vmem>>, vector<120x16xf32>
    tpu.vector_store %arg7[%c0_222, %c8_223], %222 {strides = array<i32>} : memref<122x192xf32, #tpu.memory_space<vmem>>, vector<120x16xf32>,
    %c0_224 = arith.constant 0 : index
    %c0_225 = arith.constant 0 : index
    %225 = vector.load %arg7[%c0_224, %c0_225] : memref<122x192xf32, #tpu.memory_space<vmem>>, vector<120x24xf32>
    %c896 = arith.constant 896 : index
    %c0_226 = arith.constant 0 : index
    %226 = vector.load %arg2[%c896, %c0_226] : memref<960x64xbf16, #tpu.memory_space<vmem>>, vector<24x8xbf16>
    %227 = arith.truncf %225 : vector<120x24xf32> to vector<120x24xbf16>
    %cst_227 = arith.constant dense<0.000000e+00> : vector<120x8xf32>
    %228 = tpu.matmul %227, %226, %cst_227 {dimension_numbers = #tpu.dot_dimension_numbers<[1], [0], [0], [1], [0, 0, 1, 1], [], []>} : vector<120x24xbf16>, vector<24x8xbf16>, vector<120x8xf32> -> vector<120x8xf32>
    %c11 = arith.constant 11 : index
    %c0_228 = arith.constant 0 : index
    %229 = vector.load %arg3[%c11, %c0_228] : memref<16x64xf32, #tpu.memory_space<vmem>>, vector<1x8xf32>
    %230 = vector.broadcast %229 : vector<1x8xf32> to vector<120x8xf32>
    %231 = arith.addf %228, %230 : vector<120x8xf32>
    %c0_229 = arith.constant 0 : index
    %c0_230 = arith.constant 0 : index
    %232 = vector.load %arg5[%c0_229, %c0_230] : memref<120x8xf32, #tpu.memory_space<vmem>>, vector<120x1xf32>
    %c0_231 = arith.constant 0 : index
    %c1_232 = arith.constant 1 : index
    %233 = vector.load %arg5[%c0_231, %c1_232] : memref<120x8xf32, #tpu.memory_space<vmem>>, vector<120x1xf32>
    %234 = vector.broadcast %233 : vector<120x1xf32> to vector<120x8xf32>
    %235 = arith.mulf %231, %234 : vector<120x8xf32>
    %c2_233 = arith.constant 2 : index
    %c0_234 = arith.constant 0 : index
    %236 = vector.load %arg7[%c2_233, %c0_234] : memref<122x192xf32, #tpu.memory_space<vmem>>, vector<120x8xf32>
    tpu.vector_store %arg7[%c2_233, %c0_234], %235 {strides = array<i32>} : memref<122x192xf32, #tpu.memory_space<vmem>>, vector<120x8xf32>,
    %c1_235 = arith.constant 1 : index
    %c8_236 = arith.constant 8 : index
    %237 = vector.load %arg7[%c1_235, %c8_236] : memref<122x192xf32, #tpu.memory_space<vmem>>, vector<120x8xf32>
    tpu.vector_store %arg7[%c1_235, %c8_236], %231 {strides = array<i32>} : memref<122x192xf32, #tpu.memory_space<vmem>>, vector<120x8xf32>,
    %238 = vector.broadcast %232 : vector<120x1xf32> to vector<120x8xf32>
    %239 = arith.mulf %231, %238 : vector<120x8xf32>
    %c0_237 = arith.constant 0 : index
    %c16_238 = arith.constant 16 : index
    %240 = vector.load %arg7[%c0_237, %c16_238] : memref<122x192xf32, #tpu.memory_space<vmem>>, vector<120x8xf32>
    tpu.vector_store %arg7[%c0_237, %c16_238], %239 {strides = array<i32>} : memref<122x192xf32, #tpu.memory_space<vmem>>, vector<120x8xf32>,
    %cst_239 = arith.constant 0.000000e+00 : f32
    %241 = vector.broadcast %cst_239 : f32 to vector<1x8xf32>
    %c1_240 = arith.constant 1 : index
    %c0_241 = arith.constant 0 : index
    %242 = vector.load %arg7[%c1_240, %c0_241] : memref<122x192xf32, #tpu.memory_space<vmem>>, vector<1x8xf32>
    tpu.vector_store %arg7[%c1_240, %c0_241], %241 {strides = array<i32>} : memref<122x192xf32, #tpu.memory_space<vmem>>, vector<1x8xf32>,
    %cst_242 = arith.constant 0.000000e+00 : f32
    %243 = vector.broadcast %cst_242 : f32 to vector<1x8xf32>
    %c120_243 = arith.constant 120 : index
    %c16_244 = arith.constant 16 : index
    %244 = vector.load %arg7[%c120_243, %c16_244] : memref<122x192xf32, #tpu.memory_space<vmem>>, vector<1x8xf32>
    tpu.vector_store %arg7[%c120_243, %c16_244], %243 {strides = array<i32>} : memref<122x192xf32, #tpu.memory_space<vmem>>, vector<1x8xf32>,
    %c1_245 = arith.constant 1 : index
    %c0_246 = arith.constant 0 : index
    %245 = vector.load %arg7[%c1_245, %c0_246] : memref<122x192xf32, #tpu.memory_space<vmem>>, vector<120x24xf32>
    %c928 = arith.constant 928 : index
    %c0_247 = arith.constant 0 : index
    %246 = vector.load %arg2[%c928, %c0_247] : memref<960x64xbf16, #tpu.memory_space<vmem>>, vector<24x8xbf16>
    %247 = arith.truncf %245 : vector<120x24xf32> to vector<120x24xbf16>
    %cst_248 = arith.constant dense<0.000000e+00> : vector<120x8xf32>
    %248 = tpu.matmul %247, %246, %cst_248 {dimension_numbers = #tpu.dot_dimension_numbers<[1], [0], [0], [1], [0, 0, 1, 1], [], []>} : vector<120x24xbf16>, vector<24x8xbf16>, vector<120x8xf32> -> vector<120x8xf32>
    %c12 = arith.constant 12 : index
    %c0_249 = arith.constant 0 : index
    %249 = vector.load %arg3[%c12, %c0_249] : memref<16x64xf32, #tpu.memory_space<vmem>>, vector<1x8xf32>
    %250 = vector.broadcast %249 : vector<1x8xf32> to vector<120x8xf32>
    %251 = arith.addf %248, %250 : vector<120x8xf32>
    %cst_250 = arith.constant 0.000000e+00 : f32
    %252 = vector.broadcast %cst_250 : f32 to vector<120x8xf32>
    %253 = arith.maximumf %251, %252 : vector<120x8xf32>
    %c0_251 = arith.constant 0 : index
    %c0_252 = arith.constant 0 : index
    %254 = vector.load %arg6[%c0_251, %c0_252] : memref<120x8xf32, #tpu.memory_space<vmem>>, vector<120x8xf32>
    tpu.vector_store %arg6[%c0_251, %c0_252], %253 {strides = array<i32>} : memref<120x8xf32, #tpu.memory_space<vmem>>, vector<120x8xf32>,
    return
  }
  func.func @transform_0(%arg0: i32) -> (i32, i32) {
    %c0_i32 = arith.constant 0 : i32
    %c0_i32_0 = arith.constant 0 : i32
    return %arg0, %c0_i32 : i32, i32
  }
  func.func @transform_1(%arg0: i32) -> (i32, i32) {
    %c0_i32 = arith.constant 0 : i32
    %c0_i32_0 = arith.constant 0 : i32
    %c0_i32_1 = arith.constant 0 : i32
    return %c0_i32, %c0_i32_0 : i32, i32
  }
  func.func @transform_2(%arg0: i32) -> (i32, i32) {
    %c0_i32 = arith.constant 0 : i32
    %c0_i32_0 = arith.constant 0 : i32
    %c0_i32_1 = arith.constant 0 : i32
    return %c0_i32, %c0_i32_0 : i32, i32
  }
  func.func @transform_3(%arg0: i32) -> (i32, i32) {
    %c0_i32 = arith.constant 0 : i32
    %c0_i32_0 = arith.constant 0 : i32
    %c0_i32_1 = arith.constant 0 : i32
    return %c0_i32, %c0_i32_0 : i32, i32
  }
  func.func @transform_4(%arg0: i32) -> (i32, i32) {
    %c0_i32 = arith.constant 0 : i32
    %c0_i32_0 = arith.constant 0 : i32
    %c0_i32_1 = arith.constant 0 : i32
    return %c0_i32, %c0_i32_0 : i32, i32
  }
  func.func @transform_5(%arg0: i32) -> (i32, i32) {
    %c0_i32 = arith.constant 0 : i32
    %c0_i32_0 = arith.constant 0 : i32
    return %arg0, %c0_i32 : i32, i32
  }
}

</mosaic_0001>

<bundles_post_ra>
// kernel: tpu_custom_call.1
= control target key start
LH: loop header
LB: loop body
LE: loop exit
PB: predicated region body
PF: predicated region fallthrough
CT: control target
= control target key end

     0   :  { %s6271_s18 = smov 0   ;;  %s8005_s0 = inlined_call_operand.vmem [shape: f32[240,4], index: 0, kind: input, shape index: {}]   ;;  %s8006_s1 = inlined_call_operand.vmem [shape: bf16[960,64], index: 1, kind: input, shape index: {}]   ;;  %s8007_s2 = inlined_call_operand.vmem [shape: f32[16,64], index: 2, kind: input, shape index: {}]   ;;  %s8008_s3 = inlined_call_operand.vmem [shape: bf16[480,120], index: 3, kind: input, shape index: {}]   ;;  %s8009_s4 = inlined_call_operand.vmem [shape: f32[120,8], index: 4, kind: input, shape index: {}]   ;;  %s8010_s5 = inlined_call_operand.vmem [shape: f32[240,8], index: 5, kind: output, shape index: {}]  }
   0x1 LB: > { %s5412_s19 = sadd.s32 4294967295, %s6224_s18   ;;  %p5416_p0 = scmp.ge.s32.totalorder %s6224_s18, 1  ;;  %s6224_s18 = sphi %s6271_s18, %s15_s18  }
   0x2   : > { %p188_p1 = scmp.lt.s32.totalorder %s6224_s18, 3 }
   0x4   : > { %p189_p2 = pnand %p5416_p0, %p188_p1 }
   0x5   : > { %v246_v0 = vld [vmem:[%s8009_s4 + $0x10] sm:$0xff] (!%p189_p2)  ;;  %v244_v1 = vld [vmem:[%s8009_s4] sm:$0xff] (!%p189_p2)  ;;  %s216_s24 = smul.u32 (!%p189_p2), 15, %s5412_s19  ;;  %v6226_v2 = vmov (!%p189_p2), 0   ;;  %v247_v3 = vld [vmem:[%s8009_s4 + $0x18] sm:$0xff] (!%p189_p2)  ;;  %vm444_vm0 = vcmask (!%p189_p2), 1040384  }
   0x6   : > { %192 = sbr.rel (%p189_p2) target bundleno = 6255 (0x186f), region = 40  ;;  %6099 = vset.pattern.permute.xlu1 (!%p189_p2), %v6226_v2  ;;  %6098 = vset.pattern.permute.xlu0 (!%p189_p2), %v6226_v2  ;;  %v245_v4 = vld [vmem:[%s8009_s4 + $0x8] sm:$0xff] (!%p189_p2)  ;;  %v248_v6 = vld [vmem:[%s8009_s4 + $0x20] sm:$0xff] (!%p189_p2)  ;;  %v251_v7 = vld [vmem:[%s8009_s4 + $0x38] sm:$0xff] (!%p189_p2)  ;;  %v6227_v27 = vmov (!%p189_p2), 1   ;;  %s6228_s7 = smov (!%p189_p2), 4  }
   0x7   : > { %550 = vperm.xlu1 (!%p189_p2), %6099, %v246_v0   ;;  %542 = vperm.xlu0 (!%p189_p2), %6098, %v244_v1   ;;  %p217_p3 = scmp.lt.s32.totalorder (!%p189_p2), %s216_s24, 29  ;;  %v249_v5 = vld [vmem:[%s8009_s4 + $0x28] sm:$0xff] (!%p189_p2)  ;;  %v250_v8 = vld [vmem:[%s8009_s4 + $0x30] sm:$0xff] (!%p189_p2)  ;;  %v252_v14 = vld [vmem:[%s8009_s4 + $0x40] sm:$0xff] (!%p189_p2)  ;;  %s6229_s9 = smov (!%p189_p2), 8   ;;  %vm8020_vm1 = vcmask (!%p189_p2), 1045504  }
   0x8   : > { %v253_v13 = vld [vmem:[%s8009_s4 + $0x48] sm:$0xff] (!%p189_p2)  ;;  %v255_v19 = vld [vmem:[%s8009_s4 + $0x58] sm:$0xff] (!%p189_p2)  ;;  %v254_v20 = vld [vmem:[%s8009_s4 + $0x50] sm:$0xff] (!%p189_p2)  ;;  %vm410_vm2 = vcmask (!%p189_p2), 31746   ;;  %vm364_vm3 = vcmask (!%p189_p2), 1041408   ;;  %vm412_vm4 = vcmask (!%p189_p2), 31744  }
   0x9   : > { %v257_v21 = vld [vmem:[%s8009_s4 + $0x68] sm:$0xff] (!%p189_p2)  ;;  %v256_v22 = vld [vmem:[%s8009_s4 + $0x60] sm:$0xff] (!%p189_p2)  ;;  %v258_v24 = vld [vmem:[%s8009_s4 + $0x70] sm:$0xff] (!%p189_p2)  ;;  %vm522_vm5 = vcmask (!%p189_p2), 64545   ;;  %vm524_vm6 = vcmask (!%p189_p2), 64544   ;;  %vm427_vm7 = vcmask (!%p189_p2), 25600  }
   0xa   : > { %vm676_vm8 = vcmask (!%p189_p2), 97344   ;;  %vm692_vm9 = vcmask (!%p189_p2), 24576   ;;  %vm727_vm10 = vsmask.f32 (!%p189_p2), 7424  ;;  %vm796_vm11 = vcmask (!%p189_p2), 97280   ;;  %s6232_s27 = smov (!%p189_p2), 16  }
   0xb   : > { %554 = vperm.xlu1 (!%p189_p2), %6099, %v247_v3   ;;  %546 = vperm.xlu0 (!%p189_p2), %6098, %v245_v4   ;;  %vm539_vm12 = vcmask (!%p189_p2), 57376   ;;  %vm694_vm13 = vcmask (!%p189_p2), 90176   ;;  %vm972_vm14 = vcmask (!%p189_p2), 982016   ;;  %vm8023_vm15 = vcmask (!%p189_p2), 64512   ;;  %s6234_s15 = smov (!%p189_p2), 32   ;;  %s6237_s19 = smov (!%p189_p2), 64  }
   0xd   : > { %s8165_s24 = smov (!%p217_p3, %s216_s24), 29 }
   0xe   : > { %s5417_s8 = sshll.u32 %s8165_s24, 3 }
   0xf   : > { %s6307_s11 = scalar_lea.vmem %s8005_s0, %s5417_s8  ;;  %562 = vperm.xlu1 %6099, %v249_v5   ;;  %558 = vperm.xlu0 %6098, %v248_v6   ;;  %s7970_s22 = scalar_lea.vmem %s8010_s5, %s5417_s8 }
  0x10   : > { %v6316_v9 = vld [vmem:[%s6307_s11] sm:$0xff]  ;;  %v6319_v10 = vld [vmem:[%s6307_s11 + $0x10] sm:$0xff]  ;;  %v6322_v11 = vld [vmem:[%s6307_s11 + $0x18] sm:$0xff] }
  0x11   : > { %v6325_v12 = vld [vmem:[%s6307_s11 + $0x8] sm:$0xff]  ;;  %v445_v15 = vrot.slane %v6316_v9, 7  ;;  %v448_v16 = vrot.slane %v6319_v10, 7  ;;  %v450_v17 = vrot.slane %v6322_v11, 7  ;;  %v6350_v23 = vld [vmem:[%s6307_s11 + $0x20] sm:$0xff]  ;;  %v6361_v28 = vld [vmem:[%s6307_s11 + $0x70] sm:$0xff] }
  0x12   : > { %v446_v18 = vrot.slane %v6325_v12, 7  ;;  %v452_v25 = vrot.slane %v6350_v23, 7  ;;  %v6357_v26 = vld [vmem:[%s6307_s11 + $0x68] sm:$0xff]  ;;  %v472_v30 = vrot.slane %v6361_v28, 7  ;;  %v6378_v35 = vld [vmem:[%s6307_s11 + $0x30] sm:$0xff]  ;;  %v6391_v41 = vld [vmem:[%s6307_s11 + $0x38] sm:$0xff] }
  0x13   : > { %570 = vperm.xlu1 %6099, %v251_v7   ;;  %566 = vperm.xlu0 %6098, %v250_v8   ;;  %v470_v29 = vrot.slane %v6357_v26, 7  ;;  %v6372_v32 = vld [vmem:[%s6307_s11 + $0x28] sm:$0xff]  ;;  %v451_v33 = vsel %vm444_vm0, %v448_v16, %v450_v17  ;;  %v456_v39 = vrot.slane %v6378_v35, 7  ;;  %v6394_v42 = vld [vmem:[%s6307_s11 + $0x40] sm:$0xff]  ;;  %v458_v44 = vrot.slane %v6391_v41, 7  ;;  %v6407_v50 = vld [vmem:[%s6307_s11 + $0x50] sm:$0xff] }
  0x14   : > { %v447_v34 = vsel %vm444_vm0, %v445_v15, %v446_v18  ;;  %v454_v36 = vrot.slane %v6372_v32, 7  ;;  %v453_v37 = vsel %vm444_vm0, %v450_v17, %v452_v25  ;;  %v449_v38 = vsel %vm444_vm0, %v446_v18, %v448_v16  ;;  %v6400_v46 = vld [vmem:[%s6307_s11 + $0x48] sm:$0xff]  ;;  %v6410_v51 = vld [vmem:[%s6307_s11 + $0x58] sm:$0xff]  ;;  %v6418_v55 = vld [vmem:[%s6307_s11 + $0x60] sm:$0xff] }
  0x15   : > { %v6369_v31 = vsel %vm444_vm0, %v470_v29, %v472_v30  ;;  %v460_v45 = vrot.slane %v6394_v42, 7  ;;  %v459_v48 = vsel %vm444_vm0, %v456_v39, %v458_v44  ;;  %v462_v49 = vrot.slane %v6400_v46, 7 }
  0x16   : > { %v455_v40 = vsel %vm444_vm0, %v452_v25, %v454_v36  ;;  %v457_v43 = vsel %vm444_vm0, %v454_v36, %v456_v39  ;;  %v464_v52 = vrot.slane %v6407_v50, 7  ;;  %v466_v53 = vrot.slane %v6410_v51, 7 }
  0x17   : > { %578 = vperm.xlu1 %6099, %v253_v13   ;;  %574 = vperm.xlu0 %6098, %v252_v14   ;;  %v461_v47 = vsel %vm444_vm0, %v458_v44, %v460_v45  ;;  %v463_v54 = vsel %vm444_vm0, %v460_v45, %v462_v49  ;;  %v468_v57 = vrot.slane %v6418_v55, 7 }
  0x18   : > { %v467_v56 = vsel %vm444_vm0, %v464_v52, %v466_v53  ;;  %v465_v58 = vsel %vm444_vm0, %v462_v49, %v464_v52 }
  0x19   : > { %v471_v59 = vsel %vm444_vm0, %v468_v57, %v470_v29  ;;  %v469_v60 = vsel %vm444_vm0, %v466_v53, %v468_v57 }
  0x1b   : > { %586 = vperm.xlu1 %6099, %v255_v19   ;;  %582 = vperm.xlu0 %6098, %v254_v20  }
  0x1f   : > { %594 = vperm.xlu1 %6099, %v257_v21   ;;  %590 = vperm.xlu0 %6098, %v256_v22  }
  0x23   : > { %6100 = vset.pattern.permute.xlu1 %v6227_v27  ;;  %598 = vperm.xlu0 %6098, %v258_v24  }
  0x24   : > { %261 = vperm.xlu1 %6100, %v244_v1  }
  0x27   : > { %6101 = vset.pattern.permute.xlu0 %v6227_v27 }
  0x28   : > { %271 = vperm.xlu1 %6100, %v246_v0   ;;  %266 = vperm.xlu0 %6101, %v245_v4  }
  0x2c   : > { %276 = vperm.xlu1 %6100, %v247_v3   ;;  %281 = vperm.xlu0 %6101, %v248_v6  }
  0x30   : > { %286 = vperm.xlu1 %6100, %v249_v5   ;;  %291 = vperm.xlu0 %6101, %v250_v8  }
  0x34   : > { %296 = vperm.xlu1 %6100, %v251_v7   ;;  %301 = vperm.xlu0 %6101, %v252_v14  }
  0x38   : > { %306 = vperm.xlu1 %6100, %v253_v13   ;;  %474 = vrot.lane.b32.xlu0 %v445_v15, %s6228_s7  ;;  %v6131_v13 = vld [vmem:[%s8006_s1] sm:$0x3f]  }
  0x39   : > { %6066 = vmatprep.subr.msk.bf16.mxu0 %vm8020_vm1, %v6131_v13  ;;  %v823_v18 = vsel %vm8020_vm1, %v6131_v13, 0 }
  0x3a   : > { %5751 = vmatpush3.bf16.msra.mxu0 %v823_v18 }
  0x3c   : > { %480 = vrot.lane.b32.xlu0 %v451_v33, %s6228_s7  ;;  %476 = vrot.lane.b32.xlu1 %v447_v34, %s6228_s7 }
  0x40   : > { %482 = vrot.lane.b32.xlu0 %v453_v37, %s6228_s7  ;;  %478 = vrot.lane.b32.xlu1 %v449_v38, %s6228_s7 }
  0x44   : > { %311 = vperm.xlu0 %6101, %v254_v20   ;;  %484 = vrot.lane.b32.xlu1 %v455_v40, %s6228_s7 }
  0x48   : > { %321 = vperm.xlu0 %6101, %v256_v22   ;;  %316 = vperm.xlu1 %6100, %v255_v19  }
  0x4c   : > { %486 = vrot.lane.b32.xlu0 %v457_v43, %s6228_s7  ;;  %326 = vperm.xlu1 %6100, %v257_v21  }
  0x50   : > { %490 = vrot.lane.b32.xlu0 %v461_v47, %s6228_s7  ;;  %488 = vrot.lane.b32.xlu1 %v459_v48, %s6228_s7 }
  0x54   : > { %331 = vperm.xlu0 %6101, %v258_v24   ;;  %492 = vrot.lane.b32.xlu1 %v463_v54, %s6228_s7 }
  0x58   : > { %496 = vrot.lane.b32.xlu0 %v467_v56, %s6228_s7  ;;  %494 = vrot.lane.b32.xlu1 %v465_v58, %s6228_s7 }
  0x5c   : > { %500 = vrot.lane.b32.xlu0 %v471_v59, %s6228_s7  ;;  %498 = vrot.lane.b32.xlu1 %v469_v60, %s6228_s7 }
  0x86   : > { %v551_v61 = vpop.permute.xlu1 %550  ;;  %v543_v62 = vpop.permute.xlu0 %542 }
  0x87   : > { %v601_v63 = vmul.f32 %v543_v62, %v6316_v9  ;;  %v603_v0 = vmul.f32 %v551_v61, %v6319_v10 }
  0x89   : > { %631 = vrot.lane.b32.xlu0 %v601_v63, %s6229_s9 }
  0x8a   : > { %v555_v1 = vpop.permute.xlu1 %554  ;;  %v547_v3 = vpop.permute.xlu0 %546 }
  0x8b   : > { %v602_v4 = vmul.f32 %v547_v3, %v6325_v12  ;;  %v604_v7 = vmul.f32 %v555_v1, %v6322_v11 }
  0x8d   : > { %635 = vrot.lane.b32.xlu0 %v603_v0, %s6229_s9  ;;  %633 = vrot.lane.b32.xlu1 %v602_v4, %s6229_s9 }
  0x8e   : > { %v563_v5 = vpop.permute.xlu1 %562  ;;  %v559_v6 = vpop.permute.xlu0 %558 }
  0x8f   : > { %v605_v8 = vmul.f32 %v559_v6, %v6350_v23  ;;  %v606_v16 = vmul.f32 %v563_v5, %v6372_v32 }
  0x91   : > { %639 = vrot.lane.b32.xlu0 %v605_v8, %s6229_s9  ;;  %637 = vrot.lane.b32.xlu1 %v604_v7, %s6229_s9 }
  0x92   : > { %v571_v14 = vpop.permute.xlu1 %570  ;;  %v567_v15 = vpop.permute.xlu0 %566 }
  0x93   : > { %v607_v17 = vmul.f32 %v567_v15, %v6378_v35  ;;  %v608_v21 = vmul.f32 %v571_v14, %v6391_v41 }
  0x95   : > { %643 = vrot.lane.b32.xlu0 %v607_v17, %s6229_s9  ;;  %641 = vrot.lane.b32.xlu1 %v606_v16, %s6229_s9 }
  0x96   : > { %v579_v19 = vpop.permute.xlu1 %578  ;;  %v575_v20 = vpop.permute.xlu0 %574 }
  0x97   : > { %v609_v22 = vmul.f32 %v575_v20, %v6394_v42  ;;  %v610_v29 = vmul.f32 %v579_v19, %v6400_v46 }
  0x99   : > { %647 = vrot.lane.b32.xlu0 %v609_v22, %s6229_s9  ;;  %645 = vrot.lane.b32.xlu1 %v608_v21, %s6229_s9 }
  0x9a   : > { %v587_v24 = vpop.permute.xlu1 %586  ;;  %v583_v25 = vpop.permute.xlu0 %582 }
  0x9b   : > { %v612_v33 = vmul.f32 %v587_v24, %v6410_v51  ;;  %v611_v37 = vmul.f32 %v583_v25, %v6407_v50 }
  0x9d   : > { %653 = vrot.lane.b32.xlu0 %v612_v33, %s6229_s9  ;;  %649 = vrot.lane.b32.xlu1 %v610_v29, %s6229_s9 }
  0x9e   : > { %v595_v34 = vpop.permute.xlu1 %594  ;;  %v591_v36 = vpop.permute.xlu0 %590 }
  0x9f   : > { %v614_v38 = vmul.f32 %v595_v34, %v6357_v26  ;;  %v613_v40 = vmul.f32 %v591_v36, %v6418_v55 }
  0xa1   : > { %657 = vrot.lane.b32.xlu0 %v614_v38, %s6229_s9  ;;  %651 = vrot.lane.b32.xlu1 %v611_v37, %s6229_s9 }
  0xa2   : > { %v599_v39 = vpop.permute.xlu0 %598 }
  0xa3   : > { %v262_v43 = vpop.permute.xlu1 %261  ;;  %v615_v54 = vmul.f32 %v599_v39, %v6361_v28 }
  0xa4   : > { %v334_v44 = vmul.f32 %v262_v43, %v6316_v9 }
  0xa5   : > { %655 = vrot.lane.b32.xlu1 %v613_v40, %s6229_s9  ;;  %504 = vrot.lane.b32.xlu0 %v472_v30, %s6228_s7 }
  0xa6   : > { %v365_v45 = vrot.slane %v334_v44, 6 }
  0xa7   : > { %v272_v47 = vpop.permute.xlu1 %271  ;;  %v267_v48 = vpop.permute.xlu0 %266 }
  0xa8   : > { %v336_v49 = vmul.f32 %v272_v47, %v6319_v10  ;;  %v335_v52 = vmul.f32 %v267_v48, %v6325_v12  ;;  %411 = vst.msk [vmem:[#allocation2] sm:$0xfc] %vm410_vm2, %v365_v45  ;;  %vm8017_vm2 = vcmask 1043456  }
  0xa9   : > { %502 = vrot.lane.b32.xlu1 %v6369_v31, %s6228_s7 }
  0xaa   : > { %v368_v9 = vrot.slane %v336_v49, 6  ;;  %v366_v53 = vrot.slane %v335_v52, 6 }
  0xab   : > { %v277_v56 = vpop.permute.xlu1 %276  ;;  %v282_v30 = vpop.permute.xlu0 %281 }
  0xac   : > { %v337_v57 = vmul.f32 %v277_v56, %v6322_v11  ;;  %v338_v58 = vmul.f32 %v282_v30, %v6350_v23  ;;  %v367_v10 = vsel %vm364_vm3, %v365_v45, %v366_v53  ;;  %v369_v12 = vsel %vm364_vm3, %v366_v53, %v368_v9 }
  0xad   : > { %659 = vrot.lane.b32.xlu1 %v615_v54, %s6229_s9  ;;  %413 = vst.msk [vmem:[#allocation2 + $0x10] sm:$0xff] %vm412_vm4, %v367_v10  ;;  %414 = vst.msk [vmem:[#allocation2 + $0x20] sm:$0xff] %vm412_vm4, %v369_v12 }
  0xae   : > { %v370_v31 = vrot.slane %v337_v57, 6  ;;  %v372_v59 = vrot.slane %v338_v58, 6  ;;  %v6230_v58 = vmov 0.0  }
  0xaf   : > { %v287_v60 = vpop.permute.xlu1 %286  ;;  %v292_v61 = vpop.permute.xlu0 %291 }
  0xb0   : > { %v339_v62 = vmul.f32 %v287_v60, %v6372_v32  ;;  %v340_v11 = vmul.f32 %v292_v61, %v6378_v35  ;;  %v371_v23 = vsel %vm364_vm3, %v368_v9, %v370_v31  ;;  %v373_v63 = vsel %vm364_vm3, %v370_v31, %v372_v59 }
  0xb1   : > { %415 = vst.msk [vmem:[#allocation2 + $0x30] sm:$0xff] %vm412_vm4, %v371_v23  ;;  %416 = vst.msk [vmem:[#allocation2 + $0x40] sm:$0xff] %vm412_vm4, %v373_v63 }
  0xb2   : > { %v374_v0 = vrot.slane %v339_v62, 6  ;;  %v376_v1 = vrot.slane %v340_v11, 6 }
  0xb3   : > { %v297_v3 = vpop.permute.xlu1 %296  ;;  %v302_v4 = vpop.permute.xlu0 %301 }
  0xb4   : > { %v341_v5 = vmul.f32 %v297_v3, %v6391_v41  ;;  %v342_v6 = vmul.f32 %v302_v4, %v6394_v42  ;;  %v375_v32 = vsel %vm364_vm3, %v372_v59, %v374_v0  ;;  %v377_v35 = vsel %vm364_vm3, %v374_v0, %v376_v1 }
  0xb5   : > { %417 = vst.msk [vmem:[#allocation2 + $0x50] sm:$0xff] %vm412_vm4, %v375_v32  ;;  %418 = vst.msk [vmem:[#allocation2 + $0x60] sm:$0xff] %vm412_vm4, %v377_v35 }
  0xb6   : > { %v378_v7 = vrot.slane %v341_v5, 6  ;;  %v380_v8 = vrot.slane %v342_v6, 6 }
  0xb7   : > { %v307_v13 = vpop.permute.xlu1 %306  ;;  %v475_v14 = vpop.permute.xlu0 %474 }
  0xb8   : > { %v343_v15 = vmul.f32 %v307_v13, %v6400_v46  ;;  %523 = vst.msk [vmem:[#allocation2] sm:$0xfe] %vm522_vm5, %v475_v14  ;;  %v381_v41 = vsel %vm364_vm3, %v378_v7, %v380_v8  ;;  %v379_v42 = vsel %vm364_vm3, %v376_v1, %v378_v7  ;;  %vm1255_vm5 = vcmask 62464  }
  0xb9   : > { %420 = vst.msk [vmem:[#allocation2 + $0x80] sm:$0xff] %vm412_vm4, %v381_v41  ;;  %419 = vst.msk [vmem:[#allocation2 + $0x70] sm:$0xff] %vm412_vm4, %v379_v42 }
  0xba   : > { %v382_v16 = vrot.slane %v343_v15, 6 }
  0xbb   : > { %v481_v17 = vpop.permute.xlu0 %480  ;;  %v477_v18 = vpop.permute.xlu1 %476 }
  0xbc   : > { %527 = vst.msk [vmem:[#allocation2 + $0x30] sm:$0xff] %vm524_vm6, %v481_v17  ;;  %525 = vst.msk [vmem:[#allocation2 + $0x10] sm:$0xff] %vm524_vm6, %v477_v18  ;;  %v383_v19 = vsel %vm364_vm3, %v380_v8, %v382_v16 }
  0xbd   : > { %421 = vst.msk [vmem:[#allocation2 + $0x90] sm:$0xff] %vm412_vm4, %v383_v19 }
  0xbf   : > { %v483_v46 = vpop.permute.xlu0 %482  ;;  %v479_v20 = vpop.permute.xlu1 %478 }
  0xc0   : > { %528 = vst.msk [vmem:[#allocation2 + $0x40] sm:$0xff] %vm524_vm6, %v483_v46  ;;  %526 = vst.msk [vmem:[#allocation2 + $0x20] sm:$0xff] %vm524_vm6, %v479_v20 }
  0xc3   : > { %v312_v21 = vpop.permute.xlu0 %311  ;;  %v485_v22 = vpop.permute.xlu1 %484 }
  0xc4   : > { %v344_v24 = vmul.f32 %v312_v21, %v6407_v50  ;;  %529 = vst.msk [vmem:[#allocation2 + $0x50] sm:$0xff] %vm524_vm6, %v485_v22 }
  0xc6   : > { %v384_v25 = vrot.slane %v344_v24, 6 }
  0xc7   : > { %v322_v29 = vpop.permute.xlu0 %321  ;;  %v317_v33 = vpop.permute.xlu1 %316 }
  0xc8   : > { %v346_v34 = vmul.f32 %v322_v29, %v6418_v55  ;;  %v345_v36 = vmul.f32 %v317_v33, %v6410_v51  ;;  %v385_v37 = vsel %vm364_vm3, %v382_v16, %v384_v25 }
  0xc9   : > { %422 = vst.msk [vmem:[#allocation2 + $0xa0] sm:$0xff] %vm412_vm4, %v385_v37 }
  0xca   : > { %v388_v38 = vrot.slane %v346_v34, 6  ;;  %v386_v39 = vrot.slane %v345_v36, 6 }
  0xcb   : > { %v487_v40 = vpop.permute.xlu0 %486  ;;  %v327_v43 = vpop.permute.xlu1 %326 }
  0xcc   : > { %530 = vst.msk [vmem:[#allocation2 + $0x60] sm:$0xff] %vm524_vm6, %v487_v40  ;;  %v347_v50 = vmul.f32 %v327_v43, %v6357_v26  ;;  %v387_v44 = vsel %vm364_vm3, %v384_v25, %v386_v39  ;;  %v389_v45 = vsel %vm364_vm3, %v386_v39, %v388_v38 }
  0xcd   : > { %423 = vst.msk [vmem:[#allocation2 + $0xb0] sm:$0xff] %vm412_vm4, %v387_v44  ;;  %424 = vst.msk [vmem:[#allocation2 + $0xc0] sm:$0xff] %vm412_vm4, %v389_v45 }
  0xce   : > { %v390_v51 = vrot.slane %v347_v50, 6 }
  0xcf   : > { %v491_v55 = vpop.permute.xlu0 %490  ;;  %v489_v47 = vpop.permute.xlu1 %488 }
  0xd0   : > { %532 = vst.msk [vmem:[#allocation2 + $0x80] sm:$0xff] %vm524_vm6, %v491_v55  ;;  %531 = vst.msk [vmem:[#allocation2 + $0x70] sm:$0xff] %vm524_vm6, %v489_v47  ;;  %v391_v48 = vsel %vm364_vm3, %v388_v38, %v390_v51 }
  0xd1   : > { %425 = vst.msk [vmem:[#allocation2 + $0xd0] sm:$0xff] %vm412_vm4, %v391_v48 }
  0xd3   : > { %v332_v26 = vpop.permute.xlu0 %331  ;;  %v493_v49 = vpop.permute.xlu1 %492 }
  0xd4   : > { %v348_v52 = vmul.f32 %v332_v26, %v6361_v28  ;;  %533 = vst.msk [vmem:[#allocation2 + $0x90] sm:$0xff] %vm524_vm6, %v493_v49 }
  0xd6   : > { %v392_v9 = vrot.slane %v348_v52, 6 }
  0xd7   : > { %v497_v53 = vpop.permute.xlu0 %496  ;;  %v495_v54 = vpop.permute.xlu1 %494 }
  0xd8   : > { %535 = vst.msk [vmem:[#allocation2 + $0xb0] sm:$0xff] %vm524_vm6, %v497_v53  ;;  %534 = vst.msk [vmem:[#allocation2 + $0xa0] sm:$0xff] %vm524_vm6, %v495_v54  ;;  %v393_v56 = vsel %vm364_vm3, %v390_v51, %v392_v9 }
  0xd9   : > { %428 = vst.msk [vmem:[#allocation2 + $0xf0] sm:$0x3] %vm427_vm7, %v392_v9  ;;  %vm1362_vm7 = vcmask 195713  }
  0xda   : > { %426 = vst.msk [vmem:[#allocation2 + $0xe0] sm:$0xff] %vm412_vm4, %v393_v56  ;;  %vm8015_vm4 = vcmask 64514  }
  0xdb   : > { %v501_v30 = vpop.permute.xlu0 %500  ;;  %v499_v57 = vpop.permute.xlu1 %498 }
  0xdc   : > { %537 = vst.msk [vmem:[#allocation2 + $0xd0] sm:$0xff] %vm524_vm6, %v501_v30  ;;  %536 = vst.msk [vmem:[#allocation2 + $0xc0] sm:$0xff] %vm524_vm6, %v499_v57 }
  0xfb   : > { %v632_v28 = vpop.permute.xlu0 %631 }
  0xfc   : > { %677 = vst.msk [vmem:[#allocation2] sm:$0xff] %vm676_vm8, %v632_v28 }
  0xfd   : > { %693 = vst.msk [vmem:[#allocation2 + $0x1] sm:$0x1] %vm692_vm9, %v6230_v58  ;;  %vm8011_vm9 = vcmask 130112  }
  0xff   : > { %v636_v10 = vpop.permute.xlu0 %635  ;;  %v634_v12 = vpop.permute.xlu1 %633 }
 0x100   : > { %679 = vst.msk [vmem:[#allocation2 + $0x20] sm:$0xff] %vm676_vm8, %v636_v10  ;;  %678 = vst.msk [vmem:[#allocation2 + $0x10] sm:$0xff] %vm676_vm8, %v634_v12 }
 0x103   : > { %v640_v31 = vpop.permute.xlu0 %639  ;;  %v638_v59 = vpop.permute.xlu1 %637 }
 0x104   : > { %681 = vst.msk [vmem:[#allocation2 + $0x40] sm:$0xff] %vm676_vm8, %v640_v31  ;;  %680 = vst.msk [vmem:[#allocation2 + $0x30] sm:$0xff] %vm676_vm8, %v638_v59  ;;  %v696_v60 = vld [vmem:[#allocation2] sm:$0xfe] }
 0x107   : > { %v644_v61 = vpop.permute.xlu0 %643  ;;  %v642_v62 = vpop.permute.xlu1 %641  ;;  %v697_v11 = vld [vmem:[#allocation2 + $0x10] sm:$0xff]  ;;  %v698_v3 = vld [vmem:[#allocation2 + $0x20] sm:$0xff] }
 0x108   : > { %683 = vst.msk [vmem:[#allocation2 + $0x60] sm:$0xff] %vm676_vm8, %v644_v61  ;;  %682 = vst.msk [vmem:[#allocation2 + $0x50] sm:$0xff] %vm676_vm8, %v642_v62  ;;  %v714_v23 = vpack.c.bf16 %v697_v11, %v696_v60 }
 0x10a   : > { %v731_v63 = vshll.u32 %v714_v23, 16  ;;  %v729_v32 = vshrl.u32 %v714_v23, 16 }
 0x10b   : > { %v648_v0 = vpop.permute.xlu0 %647  ;;  %v646_v1 = vpop.permute.xlu1 %645  ;;  %v699_v4 = vld [vmem:[#allocation2 + $0x30] sm:$0xff]  ;;  %v700_v13 = vld [vmem:[#allocation2 + $0x40] sm:$0xff] }
 0x10c   : > { %685 = vst.msk [vmem:[#allocation2 + $0x80] sm:$0xff] %vm676_vm8, %v648_v0  ;;  %684 = vst.msk [vmem:[#allocation2 + $0x70] sm:$0xff] %vm676_vm8, %v646_v1  ;;  %v715_v5 = vpack.c.bf16 %v699_v4, %v698_v3  ;;  %v733_v6 = vrot.slane %v731_v63, 1 }
 0x10e   : > { %v736_v35 = vshll.u32 %v715_v5, 16  ;;  %v734_v15 = vor.u32 %v733_v6, %v729_v32  ;;  %v740_v17 = vshrl.u32 %v715_v5, 16 }
 0x10f   : > { %v654_v7 = vpop.permute.xlu0 %653  ;;  %v650_v8 = vpop.permute.xlu1 %649  ;;  %v701_v14 = vld [vmem:[#allocation2 + $0x50] sm:$0xff]  ;;  %v702_v21 = vld [vmem:[#allocation2 + $0x60] sm:$0xff] }
 0x110   : > { %688 = vst.msk [vmem:[#allocation2 + $0xb0] sm:$0xff] %vm676_vm8, %v654_v7  ;;  %686 = vst.msk [vmem:[#allocation2 + $0x90] sm:$0xff] %vm676_vm8, %v650_v8  ;;  %v738_v41 = vrot.slane %v736_v35, 1  ;;  %v716_v42 = vpack.c.bf16 %v701_v14, %v700_v13  ;;  %v6132_v7 = vld [vmem:[%s8008_s3] sm:$0xff]   ;;  %v6231_v14 = vmov 3  }
 0x111   : > { %v6133_v8 = vld [vmem:[%s8008_s3 + $0x20] sm:$0xff]   ;;  %5784 = vmatprep.mubr.msk.bf16.mxu1 %vm972_vm14, %v6132_v7  ;;  %6103 = vset.pattern.permute.xlu1 %v6231_v14 }
 0x112   : > { %v739_v16 = vsel %vm727_vm10, %v734_v15, %v738_v41  ;;  %v744_v18 = vshll.u32 %v716_v42, 16  ;;  %v742_v22 = vor.u32 %v740_v17, %v738_v41  ;;  %v748_v33 = vshrl.u32 %v716_v42, 16  ;;  %v6570_v13 = vld [vmem:[%s8009_s4] sm:$0xff]  ;;  %6102 = vset.pattern.permute.xlu0 %v6231_v14  ;;  %v6214_v15 = vld [vmem:[%s8009_s4 + $0x8] sm:$0xff]  ;;  %v6581_v41 = vld [vmem:[%s8009_s4 + $0x10] sm:$0xff] }
 0x113   : > { %v703_v19 = vld [vmem:[#allocation2 + $0x70] sm:$0xff]  ;;  %v658_v46 = vpop.permute.xlu0 %657  ;;  %v652_v20 = vpop.permute.xlu1 %651  ;;  %5752 = vmatprep.mubr.msk.bf16.mxu0 %vm796_vm11, %v739_v16  ;;  %v704_v38 = vld [vmem:[#allocation2 + $0x80] sm:$0xff]  ;;  %1174 = vperm.xlu1 %6103, %v6214_v15   ;;  %v6586_v42 = vld [vmem:[%s8009_s4 + $0x18] sm:$0xff] }
 0x114   : > { %690 = vst.msk [vmem:[#allocation2 + $0xd0] sm:$0xff] %vm676_vm8, %v658_v46  ;;  %687 = vst.msk [vmem:[#allocation2 + $0xa0] sm:$0xff] %vm676_vm8, %v652_v20  ;;  %v746_v24 = vrot.slane %v744_v18, 1  ;;  %v717_v25 = vpack.c.bf16 %v703_v19, %v702_v21  ;;  %1169 = vperm.xlu0 %6102, %v6570_v13   ;;  %v6593_v16 = vld [vmem:[%s8009_s4 + $0x20] sm:$0xff]  ;;  %v6598_v17 = vld [vmem:[%s8009_s4 + $0x28] sm:$0xff] }
 0x115   : > { %v1166_v18 = vld [vmem:[%s8009_s4 + $0x38] sm:$0xf]  ;;  %v6608_v19 = vld [vmem:[%s8009_s4 + $0x30] sm:$0xff]  ;;  %v6614_v46 = vld [vmem:[%s8007_s2] ss:$0 sm:$0xff] }
 0x116   : > { %v747_v29 = vsel %vm727_vm10, %v742_v22, %v746_v24  ;;  %v752_v34 = vshll.u32 %v717_v25, 16  ;;  %v750_v40 = vor.u32 %v748_v33, %v746_v24  ;;  %v756_v45 = vshrl.u32 %v717_v25, 16 }
 0x117   : > { %v656_v36 = vpop.permute.xlu1 %655  ;;  %5753 = vmatmul.mubr.msk.bf16.vlgmr.msra.gmra.mrb[0].mxu0 %vm796_vm11, %v747_v29  ;;  %v505_v37 = vpop.permute.xlu0 %504  ;;  %v705_v39 = vld [vmem:[#allocation2 + $0x90] sm:$0xff]  ;;  %1179 = vperm.xlu1 %6103, %v6581_v41  }
 0x118   : > { %689 = vst.msk [vmem:[#allocation2 + $0xc0] sm:$0xff] %vm676_vm8, %v656_v36  ;;  %v754_v43 = vrot.slane %v752_v34, 1  ;;  %v718_v50 = vpack.c.bf16 %v705_v39, %v704_v38  ;;  %v707_v48 = vld [vmem:[#allocation2 + $0xb0] sm:$0xff]  ;;  %1184 = vperm.xlu0 %6102, %v6586_v42  }
 0x119   : > { %540 = vst.msk [vmem:[#allocation2 + $0xf0] sm:$0x1] %vm539_vm12, %v505_v37  ;;  %vm1313_vm12 = vcmask 127040  }
 0x11a   : > { %695 = vst.msk [vmem:[#allocation2 + $0xf0] sm:$0x1] %vm694_vm13, %v6230_v58  ;;  %v755_v44 = vsel %vm727_vm10, %v750_v40, %v754_v43  ;;  %v760_v51 = vshll.u32 %v718_v50, 16  ;;  %v758_v26 = vor.u32 %v756_v45, %v754_v43  ;;  %v764_v53 = vshrl.u32 %v718_v50, 16 }
 0x11b   : > { %v503_v55 = vpop.permute.xlu1 %502  ;;  %5756 = vmatprep.mubr.msk.bf16.mxu0 %vm796_vm11, %v755_v44  ;;  %v706_v47 = vld [vmem:[#allocation2 + $0xa0] sm:$0xff]  ;;  %v709_v57 = vld [vmem:[#allocation2 + $0xd0] sm:$0xff]  ;;  %1189 = vperm.xlu1 %6103, %v6593_v16   ;;  %vm1371_vm13 = vcmask 192640  }
 0x11c   : > { %538 = vst.msk [vmem:[#allocation2 + $0xe0] sm:$0xff] %vm524_vm6, %v503_v55  ;;  %v762_v49 = vrot.slane %v760_v51, 1  ;;  %v719_v52 = vpack.c.bf16 %v707_v48, %v706_v47  ;;  %1194 = vperm.xlu0 %6102, %v6598_v17   ;;  %vm8014_vm6 = vcmask 130113  }
 0x11e   : > { %v763_v9 = vsel %vm727_vm10, %v758_v26, %v762_v49  ;;  %v768_v54 = vshll.u32 %v719_v52, 16  ;;  %v766_v28 = vor.u32 %v764_v53, %v762_v49  ;;  %v772_v59 = vshrl.u32 %v719_v52, 16 }
 0x11f   : > { %v660_v56 = vpop.permute.xlu1 %659  ;;  %5757 = vmatmul.mubr.msk.bf16.gmra.mrb[4].mxu0 %vm796_vm11, %v763_v9  ;;  %v708_v30 = vld [vmem:[#allocation2 + $0xc0] sm:$0xff]  ;;  %1199 = vperm.xlu1 %6103, %v6608_v19  }
 0x120   : > { %691 = vst.msk [vmem:[#allocation2 + $0xe0] sm:$0xff] %vm676_vm8, %v660_v56  ;;  %v770_v10 = vrot.slane %v768_v54, 1  ;;  %v720_v12 = vpack.c.bf16 %v709_v57, %v708_v30  ;;  %1204 = vperm.xlu0 %6102, %v1166_v18   ;;  %vm8012_vm8 = vcmask 57344  }
 0x121   : > { %v711_v11 = vld [vmem:[#allocation2 + $0xf0] sm:$0x1] }
 0x122   : > { %v771_v31 = vsel %vm727_vm10, %v766_v28, %v770_v10  ;;  %v776_v60 = vshll.u32 %v720_v12, 16  ;;  %v774_v61 = vor.u32 %v772_v59, %v770_v10  ;;  %v780_v1 = vshrl.u32 %v720_v12, 16 }
 0x123   : > { %5760 = vmatprep.mubr.msk.bf16.mxu0 %vm796_vm11, %v771_v31 }
 0x124   : > { %v778_v62 = vrot.slane %v776_v60, 1 }
 0x126   : > { %v779_v23 = vsel %vm727_vm10, %v774_v61, %v778_v62  ;;  %v782_v4 = vor.u32 %v780_v1, %v778_v62 }
 0x127   : > { %5761 = vmatmul.mubr.msk.bf16.gmra.mrb[8].mxu0 %vm796_vm11, %v779_v23  ;;  %v710_v63 = vld [vmem:[#allocation2 + $0xe0] sm:$0xff] }
 0x128   : > { %v721_v0 = vpack.c.bf16 %v711_v11, %v710_v63 }
 0x12a   : > { %v784_v3 = vshll.u32 %v721_v0, 16  ;;  %v788_v6 = vshrl.u32 %v721_v0, 16 }
 0x12c   : > { %v786_v5 = vrot.slane %v784_v3, 1 }
 0x12e   : > { %v787_v32 = vsel %vm727_vm10, %v782_v4, %v786_v5  ;;  %v790_v35 = vor.u32 %v788_v6, %v786_v5 }
 0x12f   : > { %5764 = vmatprep.mubr.msk.bf16.mxu0 %vm796_vm11, %v787_v32 }
 0x130   : > { %5765 = vmatmul.mubr.msk.bf16.gmra.mrb[12].mxu0 %vm796_vm11, %v790_v35  ;;  %vm8013_vm11 = vcmask 195712  }
 0x131   : > { %5808 = vmatprep.mubr.msk.bf16.mxu0 %vm972_vm14, %v6133_v8 }
 0x1ea   : > { %v5754_v20 = vpop.f32.mrb[0].mxu0 }
 0x1eb   : > { %v859_v21 = vpop.f32.mrb[1].mxu0  ;;  %v6623_v33 = vadd.f32 %v5754_v20, %v6614_v46 }
 0x1ec   : > { %v6617_v22 = vadd.f32 %v6614_v46, %v859_v21  ;;  %v5755_v24 = vpop.f32.mrb[2].mxu0  ;;  %v6134_v21 = vld [vmem:[%s8008_s3 + $0x8] sm:$0xff]  }
 0x1ed   : > { %v6620_v25 = vadd.f32 %v5755_v24, %v6614_v46  ;;  %v862_v29 = vpop.f32.mrb[3].mxu0  ;;  %v923_v39 = vmax.f32 %v6623_v33, 0.0  ;;  %v6135_v24 = vld [vmem:[%s8008_s3 + $0x28] sm:$0xff]  }
 0x1ee   : > { %v6626_v34 = vadd.f32 %v6614_v46, %v862_v29  ;;  %v921_v36 = vmax.f32 %v6617_v22, 0.0  ;;  %v6136_v29 = vld [vmem:[%s8008_s3 + $0x10] sm:$0xff]  }
 0x1ef   : > { %v924_v37 = vmax.f32 %v6620_v25, 0.0 }
 0x1f0   : > { %v922_v38 = vmax.f32 %v6626_v34, 0.0 }
 0x1f1   : > { %v945_v44 = vpack.c.bf16 %v924_v37, %v923_v39 }
 0x1f2   : > { %v944_v40 = vpack.c.bf16 %v922_v38, %v921_v36  ;;  %v5758_v43 = vpop.f32.mrb[4].mxu0 }
 0x1f3   : > { %v875_v50 = vpop.f32.mrb[5].mxu0  ;;  %v6647_v48 = vadd.f32 %v5758_v43, %v6614_v46  ;;  %v6138_v43 = vld [vmem:[%s8008_s3 + $0x18] sm:$0x3f]  }
 0x1f4   : > { %v6641_v45 = vadd.f32 %v6614_v46, %v875_v50  ;;  %v5759_v51 = vpop.f32.mrb[6].mxu0  ;;  %5768 = vmatprep.subr.bf16.mxu1 %v944_v40  ;;  %5792 = vmatprep.subr.bf16.mxu0 %v944_v40  ;;  %v6139_v50 = vld [vmem:[%s8008_s3 + $0x38] sm:$0x3f]  }
 0x1f5   : > { %v6644_v55 = vadd.f32 %v5759_v51, %v6614_v46  ;;  %v878_v47 = vpop.f32.mrb[7].mxu0  ;;  %5769 = vmatpush3.bf16.msra.mxu1 %v944_v40  ;;  %5793 = vmatpush3.bf16.msra.mxu0 %v944_v40  ;;  %v927_v53 = vmax.f32 %v6647_v48, 0.0  ;;  %v6137_v40 = vld [vmem:[%s8008_s3 + $0x30] sm:$0xff]   ;;  %v1170_v51 = vpop.permute.xlu0 %1169 }
 0x1f6   : > { %v6650_v26 = vadd.f32 %v6614_v46, %v878_v47  ;;  %5770 = vmatprep.subr.bf16.mxu1 %v945_v44  ;;  %5794 = vmatprep.subr.bf16.mxu0 %v945_v44  ;;  %v925_v49 = vmax.f32 %v6641_v45, 0.0 }
 0x1f7   : > { %v928_v52 = vmax.f32 %v6644_v55, 0.0  ;;  %v5547_v55 = vld [vmem:[%s8007_s2 + $0xa] ss:$0 sm:$0xff] }
 0x1f8   : > { %v926_v9 = vmax.f32 %v6650_v26, 0.0 }
 0x1f9   : > { %5771 = vmatpush3.bf16.msra.mxu1 %v945_v44  ;;  %5795 = vmatpush3.bf16.msra.mxu0 %v945_v44  ;;  %v947_v28 = vpack.c.bf16 %v928_v52, %v927_v53  ;;  %v1175_v44 = vpop.permute.xlu1 %1174 }
 0x1fa   : > { %v946_v54 = vpack.c.bf16 %v926_v9, %v925_v49  ;;  %v5762_v56 = vpop.f32.mrb[8].mxu0 }
 0x1fb   : > { %v900_v30 = vadd.f32 %v5762_v56, %v6614_v46  ;;  %v891_v57 = vpop.f32.mrb[9].mxu0 }
 0x1fc   : > { %v892_v10 = vadd.f32 %v6614_v46, %v891_v57  ;;  %v5763_v12 = vpop.f32.mrb[10].mxu0  ;;  %5772 = vmatprep.subr.bf16.mxu1 %v946_v54  ;;  %5796 = vmatprep.subr.bf16.mxu0 %v946_v54 }
 0x1fd   : > { %v931_v31 = vmax.f32 %v900_v30, 0.0  ;;  %v903_v59 = vadd.f32 %v5763_v12, %v6614_v46  ;;  %v894_v60 = vpop.f32.mrb[11].mxu0  ;;  %5773 = vmatpush3.bf16.msra.mxu1 %v946_v54  ;;  %5797 = vmatpush3.bf16.msra.mxu0 %v946_v54  ;;  %v1180_v47 = vpop.permute.xlu1 %1179 }
 0x1fe   : > { %v929_v61 = vmax.f32 %v892_v10, 0.0  ;;  %v895_v62 = vadd.f32 %v6614_v46, %v894_v60  ;;  %5774 = vmatprep.subr.bf16.mxu1 %v947_v28  ;;  %5798 = vmatprep.subr.bf16.mxu0 %v947_v28  ;;  %v1185_v54 = vpop.permute.xlu0 %1184 }
 0x1ff   : > { %v932_v11 = vmax.f32 %v903_v59, 0.0  ;;  %4411 = vst.msk [vmem:[#allocation2 + $0xa0] sm:$0xff] %vm8023_vm15, %v931_v31 }
 0x200   : > { %v930_v23 = vmax.f32 %v895_v62, 0.0  ;;  %4409 = vst.msk [vmem:[#allocation2 + $0x80] sm:$0xff] %vm8023_vm15, %v929_v61 }
 0x201   : > { %v949_v63 = vpack.c.bf16 %v932_v11, %v931_v31  ;;  %5775 = vmatpush3.bf16.msra.mxu1 %v947_v28  ;;  %5799 = vmatpush3.bf16.msra.mxu0 %v947_v28  ;;  %4412 = vst.msk [vmem:[#allocation2 + $0xb0] sm:$0xff] %vm8023_vm15, %v932_v11  ;;  %v1190_v56 = vpop.permute.xlu1 %1189 }
 0x202   : > { %v948_v0 = vpack.c.bf16 %v930_v23, %v929_v61  ;;  %4410 = vst.msk [vmem:[#allocation2 + $0x90] sm:$0xff] %vm8023_vm15, %v930_v23  ;;  %v6705_v30 = vpop.permute.xlu0 %1194 }
 0x203   : > { %v5766_v1 = vpop.f32.mrb[12].mxu0 }
 0x204   : > { %v916_v3 = vadd.f32 %v5766_v1, %v6614_v46  ;;  %v907_v4 = vpop.f32.mrb[13].mxu0  ;;  %5776 = vmatprep.subr.bf16.mxu1 %v948_v0  ;;  %5800 = vmatprep.subr.bf16.mxu0 %v948_v0 }
 0x205   : > { %v908_v5 = vadd.f32 %v6614_v46, %v907_v4  ;;  %v5767_v6 = vpop.f32.mrb[14].mxu0  ;;  %5777 = vmatpush3.bf16.msra.mxu1 %v948_v0  ;;  %5801 = vmatpush3.bf16.msra.mxu0 %v948_v0 }
 0x206   : > { %v935_v32 = vmax.f32 %v916_v3, 0.0  ;;  %v910_v35 = vpop.f32.mrb[15].mxu0  ;;  %5778 = vmatprep.subr.bf16.mxu1 %v949_v63  ;;  %5802 = vmatprep.subr.bf16.mxu0 %v949_v63 }
 0x207   : > { %v933_v7 = vmax.f32 %v908_v5, 0.0  ;;  %v911_v8 = vadd.f32 %v6614_v46, %v910_v35 }
 0x208   : > { %4415 = vst.msk [vmem:[#allocation2 + $0xe0] sm:$0xff] %vm8023_vm15, %v935_v32  ;;  %v951_v20 = vpack.c.bf16 %v935_v32, %v935_v32 }
 0x209   : > { %v934_v15 = vmax.f32 %v911_v8, 0.0  ;;  %5779 = vmatpush3.bf16.msra.mxu1 %v949_v63  ;;  %5803 = vmatpush3.bf16.msra.mxu0 %v949_v63  ;;  %4413 = vst.msk [vmem:[#allocation2 + $0xc0] sm:$0xff] %vm8023_vm15, %v933_v7 }
 0x20a   : > { %v987_v46 = vsel %vm8017_vm2, %v951_v20, 0 }
 0x20b   : > { %v950_v18 = vpack.c.bf16 %v934_v15, %v933_v7  ;;  %4414 = vst.msk [vmem:[#allocation2 + $0xd0] sm:$0xff] %vm8023_vm15, %v934_v15 }
 0x20d   : > { %5780 = vmatprep.subr.bf16.mxu1 %v950_v18  ;;  %5804 = vmatprep.subr.bf16.mxu0 %v950_v18 }
 0x20e   : > { %5781 = vmatpush3.bf16.msra.mxu1 %v950_v18  ;;  %5805 = vmatpush3.bf16.msra.mxu0 %v950_v18 }
 0x20f   : > { %6067 = vmatprep.subr.msk.bf16.mxu1 %vm8017_vm2, %v951_v20  ;;  %6068 = vmatprep.subr.msk.bf16.mxu0 %vm8017_vm2, %v951_v20 }
 0x212   : > { %5783 = vmatpush3.bf16.msra.mxu1 %v987_v46  ;;  %5807 = vmatpush3.bf16.msra.mxu0 %v987_v46 }
 0x215   : > { %5785 = vmatmul.mubr.msk.bf16.vlgmr.msra.gmra.mrb[0].mxu1 %vm972_vm14, %v6134_v21  ;;  %5809 = vmatmul.mubr.msk.bf16.vlgmr.msra.gmra.mrb[16].mxu0 %vm972_vm14, %v6135_v24 }
 0x216   : > { %5788 = vmatprep.mubr.msk.bf16.mxu1 %vm972_vm14, %v6136_v29  ;;  %5812 = vmatprep.mubr.msk.bf16.mxu0 %vm972_vm14, %v6137_v40  ;;  %v1200_v40 = vpop.permute.xlu1 %1199 }
 0x21d   : > { %5789 = vmatmul.mubr.msk.bf16.gmra.mrb[4].mxu1 %vm972_vm14, %v6138_v43  ;;  %5813 = vmatmul.mubr.msk.bf16.gmra.mrb[20].mxu0 %vm972_vm14, %v6139_v50  ;;  %vm8016_vm14 = vcmask 195584  }
 0x2e8   : > { %v5786_v57 = vpop.f32.mrb[0].mxu1  ;;  %v5810_v28 = vpop.f32.mrb[16].mxu0 }
 0x2e9   : > { %v1268_v10 = vrot.slane %v5786_v57, 7  ;;  %v1209_v12 = vmul.f32 %v5810_v28, %v1180_v47  ;;  %v1023_v31 = vpop.f32.mrb[1].mxu1  ;;  %v1128_v59 = vpop.f32.mrb[17].mxu0  ;;  %v1326_v60 = vrot.slane %v5810_v28, 7 }
 0x2ea   : > { %v1265_v61 = vrot.slane %v1023_v31, 7  ;;  %v1207_v62 = vmul.f32 %v1170_v51, %v1128_v59  ;;  %v5787_v11 = vpop.f32.mrb[2].mxu1  ;;  %v5811_v23 = vpop.f32.mrb[18].mxu0  ;;  %v1323_v63 = vrot.slane %v1128_v59, 7 }
 0x2eb   : > { %v1270_v0 = vrot.slane %v5787_v11, 7  ;;  %v1210_v1 = vmul.f32 %v5811_v23, %v1185_v54  ;;  %v1328_v3 = vrot.slane %v5811_v23, 7  ;;  %v1026_v4 = vpop.f32.mrb[3].mxu1  ;;  %v1131_v5 = vpop.f32.mrb[19].mxu0  ;;  %v1226_v8 = vrot.slane %v1209_v12, 6 }
 0x2ec   : > { %v1223_v6 = vrot.slane %v1207_v62, 6  ;;  %v1266_v32 = vrot.slane %v1026_v4, 7  ;;  %v1208_v35 = vmul.f32 %v1175_v44, %v1131_v5  ;;  %v1324_v7 = vrot.slane %v1131_v5, 7  ;;  %1280 = vrot.lane.b32.xlu1 %v1265_v61, %s6229_s9  ;;  %v1205_v44 = vpop.permute.xlu0 %1204 }
 0x2ed   : > { %v1228_v15 = vrot.slane %v1210_v1, 6  ;;  %v1329_v18 = vsel %vm444_vm0, %v1326_v60, %v1328_v3  ;;  %v1271_v20 = vsel %vm444_vm0, %v1268_v10, %v1270_v0 }
 0x2ee   : > { %1247 = vst.msk [vmem:[#allocation2] sm:$0xfc] %vm8015_vm4, %v1223_v6  ;;  %v1224_v46 = vrot.slane %v1208_v35, 6  ;;  %1344 = vrot.lane.b32.xlu0 %v1329_v18, %s6232_s27  ;;  %v1267_v21 = vsel %vm444_vm0, %v1265_v61, %v1266_v32  ;;  %v1269_v24 = vsel %vm444_vm0, %v1266_v32, %v1268_v10  ;;  %v1327_v29 = vsel %vm444_vm0, %v1324_v7, %v1326_v60 }
 0x2ef   : > { %v1229_v43 = vsel %vm364_vm3, %v1226_v8, %v1228_v15  ;;  %v1325_v50 = vsel %vm444_vm0, %v1323_v63, %v1324_v7  ;;  %vm8022_vm4 = vcmask 385280  }
 0x2f0   : > { %v1225_v51 = vsel %vm364_vm3, %v1223_v6, %v1224_v46  ;;  %v1227_v47 = vsel %vm364_vm3, %v1224_v46, %v1226_v8  ;;  %v5814_v54 = vpop.f32.mrb[20].mxu0  ;;  %1338 = vrot.lane.b32.xlu1 %v1323_v63, %s6232_s27  ;;  %v5790_v57 = vpop.f32.mrb[4].mxu1  ;;  %1251 = vst.msk [vmem:[#allocation2 + $0x30] sm:$0xff] %vm8023_vm15, %v1229_v43 }
 0x2f1   : > { %v1276_v28 = vrot.slane %v5790_v57, 7  ;;  %v1039_v10 = vpop.f32.mrb[5].mxu1  ;;  %v1144_v12 = vpop.f32.mrb[21].mxu0  ;;  %v1213_v31 = vmul.f32 %v5814_v54, %v1200_v40  ;;  %1249 = vst.msk [vmem:[#allocation2 + $0x10] sm:$0xff] %vm8023_vm15, %v1225_v51  ;;  %1250 = vst.msk [vmem:[#allocation2 + $0x20] sm:$0xff] %vm8023_vm15, %v1227_v47  ;;  %v1334_v59 = vrot.slane %v5814_v54, 7 }
 0x2f2   : > { %v1272_v60 = vrot.slane %v1039_v10, 7  ;;  %v1211_v61 = vmul.f32 %v1190_v56, %v1144_v12  ;;  %v1330_v62 = vrot.slane %v1144_v12, 7  ;;  %1282 = vrot.lane.b32.xlu0 %v1267_v21, %s6229_s9  ;;  %v5791_v11 = vpop.f32.mrb[6].mxu1  ;;  %v5815_v23 = vpop.f32.mrb[22].mxu0  ;;  %v1523_v10 = vld [vmem:[%s8009_s4 + $0x38] sm:$0xf] }
 0x2f3   : > { %v1278_v63 = vrot.slane %v5791_v11, 7  ;;  %v1042_v1 = vpop.f32.mrb[7].mxu1  ;;  %v1336_v4 = vrot.slane %v5815_v23, 7  ;;  %v1214_v5 = vmul.f32 %v5815_v23, %v1205_v44  ;;  %v1234_v6 = vrot.slane %v1213_v31, 6  ;;  %v1147_v32 = vpop.f32.mrb[23].mxu0 }
 0x2f4   : > { %v1230_v35 = vrot.slane %v1211_v61, 6  ;;  %1286 = vrot.lane.b32.xlu1 %v1271_v20, %s6229_s9  ;;  %v1274_v7 = vrot.slane %v1042_v1, 7  ;;  %v1212_v8 = vmul.f32 %v6705_v30, %v1147_v32  ;;  %v1332_v18 = vrot.slane %v1147_v32, 7 }
 0x2f5   : > { %v1236_v46 = vrot.slane %v1214_v5, 6  ;;  %v1273_v56 = vsel %vm444_vm0, %v1270_v0, %v1272_v60  ;;  %v1331_v21 = vsel %vm444_vm0, %v1328_v3, %v1330_v62  ;;  %v1279_v40 = vsel %vm444_vm0, %v1276_v28, %v1278_v63  ;;  %v6140_v3 = vld [vmem:[%s8006_s1 + $0x10] sm:$0xff]  }
 0x2f6   : > { %v1231_v43 = vsel %vm364_vm3, %v1228_v15, %v1230_v35  ;;  %1284 = vrot.lane.b32.xlu0 %v1269_v24, %s6229_s9  ;;  %v1232_v44 = vrot.slane %v1212_v8, 6  ;;  %v1275_v51 = vsel %vm444_vm0, %v1272_v60, %v1274_v7  ;;  %v1333_v20 = vsel %vm444_vm0, %v1330_v62, %v1332_v18  ;;  %5816 = vmatprep.subr.bf16.mxu1 %v6140_v3 }
 0x2f7   : > { %v1237_v47 = vsel %vm364_vm3, %v1234_v6, %v1236_v46  ;;  %v1277_v30 = vsel %vm444_vm0, %v1274_v7, %v1276_v28  ;;  %v1335_v54 = vsel %vm444_vm0, %v1332_v18, %v1334_v59  ;;  %v1337_v0 = vsel %vm444_vm0, %v1334_v59, %v1336_v4  ;;  %1252 = vst.msk [vmem:[#allocation2 + $0x40] sm:$0xff] %vm8023_vm15, %v1231_v43 }
 0x2f8   : > { %1342 = vrot.lane.b32.xlu1 %v1327_v29, %s6232_s27  ;;  %v1233_v15 = vsel %vm364_vm3, %v1230_v35, %v1232_v44  ;;  %v1235_v24 = vsel %vm364_vm3, %v1232_v44, %v1234_v6  ;;  %1256 = vst.msk [vmem:[#allocation2 + $0x70] sm:$0x3f] %vm1255_vm5, %v1237_v47  ;;  %5817 = vmatpush3.bf16.msra.mxu1 %v6140_v3  ;;  %v6141_v29 = vld [vmem:[%s8006_s1 + $0x18] ss:$0 sps:$4 sm:$0xff]   ;;  %v6233_v28 = vmov 2   ;;  %vm8029_vm5 = vcmask 130050  }
 0x2f9   : > { %1253 = vst.msk [vmem:[#allocation2 + $0x50] sm:$0xff] %vm8023_vm15, %v1233_v15  ;;  %1254 = vst.msk [vmem:[#allocation2 + $0x60] sm:$0xff] %vm8023_vm15, %v1235_v24  ;;  %6069 = vmatprep.subr.msk.bf16.mxu1 %vm8017_vm2, %v6141_v29  ;;  %v1449_v57 = vsel %vm8017_vm2, %v6141_v29, 0  ;;  %6104 = vset.pattern.permute.xlu1 %v6233_v28  ;;  %vm8030_vm2 = vcmask 392192   ;;  %vm2369_vm15 = vcmask 523520  }
 0x2fa   : > { %1340 = vrot.lane.b32.xlu0 %v1325_v50, %s6232_s27  ;;  %v6764_v50 = vld [vmem:[%s8009_s4 + $0x8] sm:$0xff] }
 0x2fb   : > { %6105 = vset.pattern.permute.xlu0 %v6233_v28 }
 0x2fc   : > { %1288 = vrot.lane.b32.xlu1 %v1273_v56, %s6229_s9  ;;  %5819 = vmatpush3.bf16.msra.mxu1 %v1449_v57 }
 0x2fe   : > { %1290 = vrot.lane.b32.xlu0 %v1275_v51, %s6229_s9 }
 0x300   : > { %1346 = vrot.lane.b32.xlu1 %v1331_v21, %s6232_s27 }
 0x302   : > { %1348 = vrot.lane.b32.xlu0 %v1333_v20, %s6232_s27 }
 0x304   : > { %1292 = vrot.lane.b32.xlu1 %v1277_v30, %s6229_s9 }
 0x306   : > { %1294 = vrot.lane.b32.xlu0 %v1279_v40, %s6229_s9 }
 0x308   : > { %1350 = vrot.lane.b32.xlu1 %v1335_v54, %s6232_s27 }
 0x30a   : > { %1352 = vrot.lane.b32.xlu0 %v1337_v0, %s6232_s27 }
 0x30c   : > { %1673 = vperm.xlu1 %6104, %v6570_v13  }
 0x30e   : > { %1677 = vperm.xlu0 %6105, %v6764_v50  }
 0x310   : > { %1681 = vperm.xlu1 %6104, %v6581_v41  }
 0x312   : > { %1689 = vperm.xlu0 %6105, %v6593_v16  }
 0x314   : > { %1685 = vperm.xlu1 %6104, %v6586_v42  }
 0x316   : > { %1697 = vperm.xlu0 %6105, %v6608_v19  }
 0x318   : > { %1693 = vperm.xlu1 %6104, %v6598_v17  }
 0x31a   : > { %6106 = vset.pattern.permute.xlu0 %v6231_v14 }
 0x31b   : > { %1526 = vperm.xlu0 %6106, %v6570_v13  }
 0x31c   : > { %1701 = vperm.xlu1 %6104, %v1523_v10  }
 0x31f   : > { %1541 = vperm.xlu0 %6106, %v6586_v42  }
 0x320   : > { %6107 = vset.pattern.permute.xlu1 %v6231_v14 }
 0x321   : > { %1531 = vperm.xlu1 %6107, %v6764_v50  }
 0x323   : > { %1551 = vperm.xlu0 %6106, %v6598_v17  }
 0x325   : > { %1536 = vperm.xlu1 %6107, %v6581_v41  }
 0x327   : > { %1561 = vperm.xlu0 %6106, %v1523_v10  }
 0x329   : > { %1546 = vperm.xlu1 %6107, %v6593_v16  }
 0x32d   : > { %1556 = vperm.xlu1 %6107, %v6608_v19  }
 0x35e   : > { %v1281_v12 = vpop.permute.xlu1 %1280 }
 0x35f   : > { %1305 = vst.msk [vmem:[#allocation2] sm:$0xfe] %vm8014_vm6, %v1281_v12  ;;  %vm8019_vm6 = vcmask 258176  }
 0x360   : > { %v1345_v13 = vpop.permute.xlu0 %1344 }
 0x362   : > { %v1339_v42 = vpop.permute.xlu1 %1338 }
 0x363   : > { %1363 = vst.msk [vmem:[#allocation2] sm:$0xfe] %vm1362_vm7, %v1339_v42  ;;  %vm1605_vm7 = vcmask 130048  }
 0x364   : > { %1374 = vst.msk [vmem:[#allocation2 + $0x1] sm:$0x1] %vm8012_vm8, %v6230_v58  ;;  %v1283_v17 = vpop.permute.xlu0 %1282  ;;  %vm8025_vm8 = vcmask 122880  }
 0x365   : > { %1307 = vst.msk [vmem:[#allocation2 + $0x10] sm:$0xff] %vm8011_vm9, %v1283_v17 }
 0x366   : > { %v1287_v41 = vpop.permute.xlu1 %1286 }
 0x367   : > { %1309 = vst.msk [vmem:[#allocation2 + $0x30] sm:$0xff] %vm8011_vm9, %v1287_v41 }
 0x368   : > { %1367 = vst.msk [vmem:[#allocation2 + $0x30] sm:$0xff] %vm8013_vm11, %v1345_v13  ;;  %v1285_v16 = vpop.permute.xlu0 %1284 }
 0x369   : > { %1308 = vst.msk [vmem:[#allocation2 + $0x20] sm:$0xff] %vm8011_vm9, %v1285_v16 }
 0x36a   : > { %v1343_v19 = vpop.permute.xlu1 %1342 }
 0x36b   : > { %1366 = vst.msk [vmem:[#allocation2 + $0x20] sm:$0xff] %vm8013_vm11, %v1343_v19  ;;  %v1375_v63 = vld [vmem:[#allocation2] sm:$0xfe] }
 0x36c   : > { %v1341_v31 = vpop.permute.xlu0 %1340 }
 0x36d   : > { %1365 = vst.msk [vmem:[#allocation2 + $0x10] sm:$0xff] %vm8013_vm11, %v1341_v31 }
 0x36e   : > { %v1289_v59 = vpop.permute.xlu1 %1288 }
 0x36f   : > { %1310 = vst.msk [vmem:[#allocation2 + $0x40] sm:$0xff] %vm8011_vm9, %v1289_v59  ;;  %v1378_v11 = vld [vmem:[#allocation2 + $0x30] sm:$0xff] }
 0x370   : > { %v1291_v60 = vpop.permute.xlu0 %1290 }
 0x371   : > { %1311 = vst.msk [vmem:[#allocation2 + $0x50] sm:$0xff] %vm8011_vm9, %v1291_v60 }
 0x372   : > { %v1347_v61 = vpop.permute.xlu1 %1346  ;;  %v1377_v62 = vld [vmem:[#allocation2 + $0x20] sm:$0xff] }
 0x373   : > { %1368 = vst.msk [vmem:[#allocation2 + $0x40] sm:$0xff] %vm8013_vm11, %v1347_v61  ;;  %v1387_v23 = vpack.c.bf16 %v1378_v11, %v1377_v62 }
 0x374   : > { %v1349_v1 = vpop.permute.xlu0 %1348  ;;  %v1376_v4 = vld [vmem:[#allocation2 + $0x10] sm:$0xff] }
 0x375   : > { %1369 = vst.msk [vmem:[#allocation2 + $0x50] sm:$0xff] %vm8013_vm11, %v1349_v1  ;;  %v1386_v5 = vpack.c.bf16 %v1376_v4, %v1375_v63  ;;  %v1403_v35 = vshll.u32 %v1387_v23, 16  ;;  %v1407_v47 = vshrl.u32 %v1387_v23, 16  ;;  %v5445_v4 = vld [vmem:[%s8007_s2 + $0x1] ss:$0 sm:$0xff] }
 0x376   : > { %v1293_v6 = vpop.permute.xlu1 %1292 }
 0x377   : > { %1312 = vst.msk [vmem:[#allocation2 + $0x60] sm:$0xff] %vm8011_vm9, %v1293_v6  ;;  %v1398_v32 = vshll.u32 %v1386_v5, 16  ;;  %v1396_v8 = vshrl.u32 %v1386_v5, 16  ;;  %v1405_v21 = vrot.slane %v1403_v35, 1  ;;  %vm8026_vm9 = vcmask 392448  }
 0x378   : > { %v1295_v7 = vpop.permute.xlu0 %1294 }
 0x379   : > { %1314 = vst.msk [vmem:[#allocation2 + $0x70] sm:$0x1f] %vm1313_vm12, %v1295_v7  ;;  %v1400_v18 = vrot.slane %v1398_v32, 1  ;;  %v1409_v54 = vor.u32 %v1407_v47, %v1405_v21  ;;  %vm8028_vm12 = vcmask 128000  }
 0x37a   : > { %v1351_v46 = vpop.permute.xlu1 %1350  ;;  %v1379_v43 = vld [vmem:[#allocation2 + $0x40] sm:$0xff] }
 0x37b   : > { %1370 = vst.msk [vmem:[#allocation2 + $0x60] sm:$0xff] %vm8013_vm11, %v1351_v46  ;;  %v1401_v56 = vor.u32 %v1400_v18, %v1396_v8  ;;  %vm8024_vm11 = vcmask 261248  }
 0x37c   : > { %v1353_v40 = vpop.permute.xlu0 %1352  ;;  %v1380_v44 = vld [vmem:[#allocation2 + $0x50] sm:$0xff] }
 0x37d   : > { %1372 = vst.msk [vmem:[#allocation2 + $0x70] sm:$0x1f] %vm1371_vm13, %v1353_v40  ;;  %v1406_v51 = vsel %vm727_vm10, %v1401_v56, %v1405_v21  ;;  %v1388_v20 = vpack.c.bf16 %v1380_v44, %v1379_v43  ;;  %vm8027_vm13 = vcmask 261249  }
 0x37e   : > { %5820 = vmatprep.mubr.msk.bf16.mxu1 %vm8016_vm14, %v1406_v51 }
 0x37f   : > { %v1411_v30 = vshll.u32 %v1388_v20, 16  ;;  %v1415_v57 = vshrl.u32 %v1388_v20, 16 }
 0x381   : > { %v1413_v0 = vrot.slane %v1411_v30, 1 }
 0x382   : > { %v1381_v24 = vld [vmem:[#allocation2 + $0x60] sm:$0xff] }
 0x383   : > { %v1414_v3 = vsel %vm727_vm10, %v1409_v54, %v1413_v0  ;;  %v1417_v12 = vor.u32 %v1415_v57, %v1413_v0 }
 0x384   : > { %v1382_v15 = vld [vmem:[#allocation2 + $0x70] sm:$0x1f]  ;;  %5821 = vmatmul.mubr.msk.bf16.vlgmr.msra.gmra.mrb[8].mxu1 %vm8016_vm14, %v1414_v3 }
 0x385   : > { %v1389_v29 = vpack.c.bf16 %v1382_v15, %v1381_v24 }
 0x387   : > { %v1419_v10 = vshll.u32 %v1389_v29, 16  ;;  %v1423_v42 = vshrl.u32 %v1389_v29, 16 }
 0x389   : > { %v1421_v13 = vrot.slane %v1419_v10, 1 }
 0x38b   : > { %v1422_v17 = vsel %vm727_vm10, %v1417_v12, %v1421_v13  ;;  %v1425_v41 = vor.u32 %v1423_v42, %v1421_v13  ;;  %v1674_v16 = vpop.permute.xlu1 %1673 }
 0x38c   : > { %5824 = vmatprep.mubr.msk.bf16.mxu1 %vm8016_vm14, %v1422_v17 }
 0x38d   : > { %5825 = vmatmul.mubr.msk.bf16.gmra.mrb[12].mxu1 %vm8016_vm14, %v1425_v41  ;;  %v1678_v59 = vpop.permute.xlu0 %1677  ;;  %vm8018_vm14 = vcmask 388352  }
 0x38f   : > { %v1682_v19 = vpop.permute.xlu1 %1681 }
 0x391   : > { %v6811_v61 = vpop.permute.xlu0 %1689 }
 0x393   : > { %v1686_v31 = vpop.permute.xlu1 %1685 }
 0x395   : > { %v6815_v11 = vpop.permute.xlu0 %1697 }
 0x397   : > { %v6809_v60 = vpop.permute.xlu1 %1693 }
 0x39a   : > { %v1527_v63 = vpop.permute.xlu0 %1526 }
 0x39b   : > { %v6813_v62 = vpop.permute.xlu1 %1701 }
 0x39e   : > { %v1542_v5 = vpop.permute.xlu0 %1541 }
 0x3a0   : > { %v1532_v23 = vpop.permute.xlu1 %1531 }
 0x3a2   : > { %v1552_v54 = vpop.permute.xlu0 %1551 }
 0x3a4   : > { %v1537_v1 = vpop.permute.xlu1 %1536 }
 0x3a8   : > { %v1547_v40 = vpop.permute.xlu1 %1546 }
 0x457   : > { %v5822_v6 = vpop.f32.mrb[8].mxu1 }
 0x458   : > { %v1494_v32 = vadd.f32 %v5822_v6, %v5445_v4  ;;  %v1485_v35 = vpop.f32.mrb[9].mxu1 }
 0x459   : > { %v1486_v7 = vadd.f32 %v5445_v4, %v1485_v35  ;;  %v5823_v8 = vpop.f32.mrb[10].mxu1 }
 0x45a   : > { %v1706_v18 = vmul.f32 %v1682_v19, %v1494_v32  ;;  %v1566_v46 = vmul.f32 %v1537_v1, %v1494_v32  ;;  %v1497_v56 = vadd.f32 %v5823_v8, %v5445_v4  ;;  %v1488_v21 = vpop.f32.mrb[11].mxu1  ;;  %v1625_v51 = vrot.slane %v1494_v32, 7 }
 0x45b   : > { %v1564_v43 = vmul.f32 %v1527_v63, %v1486_v7  ;;  %v1489_v44 = vadd.f32 %v5445_v4, %v1488_v21  ;;  %v1622_v3 = vrot.slane %v1486_v7, 7  ;;  %v1704_v6 = vmul.f32 %v1674_v16, %v1486_v7 }
 0x45c   : > { %v1627_v20 = vrot.slane %v1497_v56, 7  ;;  %v1707_v47 = vmul.f32 %v1686_v31, %v1497_v56  ;;  %v1567_v30 = vmul.f32 %v1542_v5, %v1497_v56  ;;  %1724 = vrot.lane.b32.xlu1 %v1706_v18, %s6234_s15  ;;  %v1583_v29 = vrot.slane %v1566_v46, 6  ;;  %v1557_v31 = vpop.permute.xlu1 %1556 }
 0x45d   : > { %v1580_v0 = vrot.slane %v1564_v43, 6  ;;  %v1565_v15 = vmul.f32 %v1532_v23, %v1489_v44  ;;  %v1623_v24 = vrot.slane %v1489_v44, 7  ;;  %v1705_v17 = vmul.f32 %v1678_v59, %v1489_v44  ;;  %v1562_v59 = vpop.permute.xlu0 %1561 }
 0x45e   : > { %v1585_v57 = vrot.slane %v1567_v30, 6  ;;  %1726 = vrot.lane.b32.xlu0 %v1707_v47, %s6234_s15  ;;  %v1628_v10 = vsel %vm444_vm0, %v1625_v51, %v1627_v20 }
 0x45f   : > { %v1581_v12 = vrot.slane %v1565_v15, 6  ;;  %v1624_v13 = vsel %vm444_vm0, %v1622_v3, %v1623_v24  ;;  %v1626_v42 = vsel %vm444_vm0, %v1623_v24, %v1625_v51  ;;  %1604 = vst.msk [vmem:[#allocation2] sm:$0xfc] %vm8029_vm5, %v1580_v0 }
 0x460   : > { %v1586_v41 = vsel %vm364_vm3, %v1583_v29, %v1585_v57  ;;  %1637 = vrot.lane.b32.xlu1 %v1622_v3, %s6232_s27  ;;  %v5826_v19 = vpop.f32.mrb[12].mxu1 }
 0x461   : > { %v1510_v23 = vadd.f32 %v5826_v19, %v5445_v4  ;;  %v1501_v63 = vpop.f32.mrb[13].mxu1  ;;  %v1582_v1 = vsel %vm364_vm3, %v1580_v0, %v1581_v12  ;;  %1608 = vst.msk [vmem:[#allocation2 + $0x30] sm:$0xff] %vm1605_vm7, %v1586_v41  ;;  %v1584_v5 = vsel %vm364_vm3, %v1581_v12, %v1583_v29 }
 0x462   : > { %v1502_v32 = vadd.f32 %v5445_v4, %v1501_v63  ;;  %v5827_v35 = vpop.f32.mrb[14].mxu1  ;;  %1722 = vrot.lane.b32.xlu0 %v1705_v17, %s6234_s15  ;;  %1606 = vst.msk [vmem:[#allocation2 + $0x10] sm:$0xff] %vm1605_vm7, %v1582_v1  ;;  %1607 = vst.msk [vmem:[#allocation2 + $0x20] sm:$0xff] %vm1605_vm7, %v1584_v5 }
 0x463   : > { %v1570_v8 = vmul.f32 %v1557_v31, %v1510_v23  ;;  %v1513_v18 = vadd.f32 %v5827_v35, %v5445_v4  ;;  %v1504_v46 = vpop.f32.mrb[15].mxu1  ;;  %v1633_v44 = vrot.slane %v1510_v23, 7 }
 0x464   : > { %v1568_v56 = vmul.f32 %v1547_v40, %v1502_v32  ;;  %v1629_v21 = vrot.slane %v1502_v32, 7  ;;  %v1505_v43 = vadd.f32 %v5445_v4, %v1504_v46  ;;  %1720 = vrot.lane.b32.xlu1 %v1704_v6, %s6234_s15 }
 0x465   : > { %v1635_v51 = vrot.slane %v1513_v18, 7  ;;  %v1571_v16 = vmul.f32 %v1562_v59, %v1513_v18  ;;  %v1591_v0 = vrot.slane %v1570_v8, 6  ;;  %v1711_v41 = vmul.f32 %v6813_v62, %v1513_v18 }
 0x466   : > { %v1587_v7 = vrot.slane %v1568_v56, 6  ;;  %v1569_v47 = vmul.f32 %v1552_v54, %v1505_v43  ;;  %v1631_v30 = vrot.slane %v1505_v43, 7  ;;  %1639 = vrot.lane.b32.xlu0 %v1624_v13, %s6232_s27  ;;  %v1630_v15 = vsel %vm444_vm0, %v1627_v20, %v1629_v21  ;;  %v6142_v54 = vld [vmem:[%s8006_s1 + $0x20] sm:$0xff]  }
 0x467   : > { %v1593_v3 = vrot.slane %v1571_v16, 6  ;;  %v1636_v24 = vsel %vm444_vm0, %v1633_v44, %v1635_v51  ;;  %v1708_v20 = vmul.f32 %v6811_v61, %v1502_v32  ;;  %5828 = vmatprep.subr.bf16.mxu1 %v6142_v54  ;;  %v6143_v61 = vld [vmem:[%s8006_s1 + $0x28] sm:$0xff]  }
 0x468   : > { %v1589_v40 = vrot.slane %v1569_v47, 6  ;;  %1643 = vrot.lane.b32.xlu1 %v1628_v10, %s6232_s27  ;;  %v1632_v4 = vsel %vm444_vm0, %v1629_v21, %v1631_v30  ;;  %v1634_v29 = vsel %vm444_vm0, %v1631_v30, %v1633_v44  ;;  %v1588_v12 = vsel %vm364_vm3, %v1585_v57, %v1587_v7  ;;  %5829 = vmatpush3.bf16.msra.mxu1 %v6142_v54 }
 0x469   : > { %v1594_v13 = vsel %vm364_vm3, %v1591_v0, %v1593_v3  ;;  %1609 = vst.msk [vmem:[#allocation2 + $0x40] sm:$0xff] %vm1605_vm7, %v1588_v12  ;;  %v1709_v57 = vmul.f32 %v6809_v60, %v1505_v43  ;;  %5830 = vmatprep.subr.bf16.mxu1 %v6143_v61  ;;  %v1710_v60 = vmul.f32 %v6815_v11, %v1510_v23 }
 0x46a   : > { %1641 = vrot.lane.b32.xlu0 %v1626_v42, %s6232_s27  ;;  %v1590_v10 = vsel %vm364_vm3, %v1587_v7, %v1589_v40  ;;  %v1592_v17 = vsel %vm364_vm3, %v1589_v40, %v1591_v0  ;;  %1613 = vst.msk [vmem:[#allocation2 + $0x70] sm:$0x3f] %vm8028_vm12, %v1594_v13  ;;  %v6144_v42 = vld [vmem:[%s8006_s1 + $0x30] sm:$0xff]   ;;  %vm2501_vm12 = vcmask 785408  }
 0x46b   : > { %1610 = vst.msk [vmem:[#allocation2 + $0x50] sm:$0xff] %vm1605_vm7, %v1590_v10  ;;  %1611 = vst.msk [vmem:[#allocation2 + $0x60] sm:$0xff] %vm1605_vm7, %v1592_v17 }
 0x46c   : > { %1728 = vrot.lane.b32.xlu1 %v1708_v20, %s6234_s15  ;;  %5831 = vmatpush3.bf16.msra.mxu1 %v6143_v61 }
 0x46d   : > { %5832 = vmatprep.subr.bf16.mxu1 %v6144_v42 }
 0x46e   : > { %1730 = vrot.lane.b32.xlu0 %v1709_v57, %s6234_s15 }
 0x470   : > { %1645 = vrot.lane.b32.xlu1 %v1630_v15, %s6232_s27  ;;  %5833 = vmatpush3.bf16.msra.mxu1 %v6144_v42 }
 0x472   : > { %1647 = vrot.lane.b32.xlu0 %v1632_v4, %s6232_s27 }
 0x474   : > { %1649 = vrot.lane.b32.xlu1 %v1634_v29, %s6232_s27 }
 0x476   : > { %1651 = vrot.lane.b32.xlu0 %v1636_v24, %s6232_s27 }
 0x478   : > { %1732 = vrot.lane.b32.xlu1 %v1710_v60, %s6234_s15 }
 0x47a   : > { %1734 = vrot.lane.b32.xlu0 %v1711_v41, %s6234_s15 }
 0x4ce   : > { %v1725_v19 = vpop.permute.xlu1 %1724 }
 0x4d0   : > { %v1727_v31 = vpop.permute.xlu0 %1726 }
 0x4d2   : > { %v1638_v63 = vpop.permute.xlu1 %1637 }
 0x4d3   : > { %1662 = vst.msk [vmem:[#allocation2] sm:$0xfe] %vm8027_vm13, %v1638_v63 }
 0x4d4   : > { %v1723_v1 = vpop.permute.xlu0 %1722 }
 0x4d6   : > { %v1721_v5 = vpop.permute.xlu1 %1720 }
 0x4d7   : > { %1745 = vst.msk [vmem:[#allocation2] sm:$0xff] %vm8026_vm9, %v1721_v5 }
 0x4d8   : > { %1755 = vst.msk [vmem:[#allocation2 + $0x1] sm:$0x1] %vm8025_vm8, %v6230_v58  ;;  %v1640_v62 = vpop.permute.xlu0 %1639 }
 0x4d9   : > { %1664 = vst.msk [vmem:[#allocation2 + $0x10] sm:$0xff] %vm8024_vm11, %v1640_v62  ;;  %v6145_v62 = vld [vmem:[%s8008_s3 + $0x40] sm:$0xff]  }
 0x4da   : > { %1746 = vst.msk [vmem:[#allocation2 + $0x10] sm:$0xff] %vm8026_vm9, %v1723_v1  ;;  %v1644_v11 = vpop.permute.xlu1 %1643 }
 0x4db   : > { %1666 = vst.msk [vmem:[#allocation2 + $0x30] sm:$0xff] %vm8024_vm11, %v1644_v11  ;;  %v6146_v11 = vld [vmem:[%s8008_s3 + $0x50] sm:$0xff]  }
 0x4dc   : > { %1748 = vst.msk [vmem:[#allocation2 + $0x30] sm:$0xff] %vm8026_vm9, %v1727_v31  ;;  %v1642_v23 = vpop.permute.xlu0 %1641 }
 0x4dd   : > { %1665 = vst.msk [vmem:[#allocation2 + $0x20] sm:$0xff] %vm8024_vm11, %v1642_v23  ;;  %v6235_v23 = vmov 5  }
 0x4de   : > { %1747 = vst.msk [vmem:[#allocation2 + $0x20] sm:$0xff] %vm8026_vm9, %v1725_v19  ;;  %v1729_v6 = vpop.permute.xlu1 %1728  ;;  %6108 = vset.pattern.permute.xlu1 %v6235_v23  ;;  %6109 = vset.pattern.permute.xlu0 %v6235_v23 }
 0x4df   : > { %v1758_v35 = vld [vmem:[#allocation2] sm:$0xfe]  ;;  %2073 = vperm.xlu0 %6109, %v6764_v50  }
 0x4e0   : > { %v1731_v32 = vpop.permute.xlu0 %1730 }
 0x4e1   : > { %v1759_v59 = vld [vmem:[#allocation2 + $0x10] sm:$0xff] }
 0x4e2   : > { %v1646_v8 = vpop.permute.xlu1 %1645  ;;  %v1772_v18 = vpack.c.bf16 %v1759_v59, %v1758_v35  ;;  %v6217_v35 = vld [vmem:[%s8009_s4 + $0x18] sm:$0xff]  ;;  %v5452_v59 = vld [vmem:[%s8007_s2 + $0x2] ss:$0 sm:$0xff] }
 0x4e3   : > { %1667 = vst.msk [vmem:[#allocation2 + $0x40] sm:$0xff] %vm8024_vm11, %v1646_v8  ;;  %v1761_v43 = vld [vmem:[#allocation2 + $0x30] sm:$0xff] }
 0x4e4   : > { %1749 = vst.msk [vmem:[#allocation2 + $0x40] sm:$0xff] %vm8026_vm9, %v1729_v6  ;;  %v1648_v46 = vpop.permute.xlu0 %1647  ;;  %v1784_v56 = vshll.u32 %v1772_v18, 16  ;;  %v1782_v47 = vshrl.u32 %v1772_v18, 16  ;;  %v6215_v6 = vld [vmem:[%s8009_s4] sm:$0xff] }
 0x4e5   : > { %1668 = vst.msk [vmem:[#allocation2 + $0x50] sm:$0xff] %vm8024_vm11, %v1648_v46  ;;  %v1760_v21 = vld [vmem:[#allocation2 + $0x20] sm:$0xff]  ;;  %2068 = vperm.xlu1 %6108, %v6215_v6  }
 0x4e6   : > { %1750 = vst.msk [vmem:[#allocation2 + $0x50] sm:$0xff] %vm8026_vm9, %v1731_v32  ;;  %v1650_v44 = vpop.permute.xlu1 %1649  ;;  %v1773_v51 = vpack.c.bf16 %v1761_v43, %v1760_v21  ;;  %v1786_v16 = vrot.slane %v1784_v56, 1  ;;  %v6216_v32 = vld [vmem:[%s8009_s4 + $0x10] sm:$0xff] }
 0x4e7   : > { %1669 = vst.msk [vmem:[#allocation2 + $0x60] sm:$0xff] %vm8024_vm11, %v1650_v44 }
 0x4e8   : > { %v1652_v7 = vpop.permute.xlu0 %1651  ;;  %v1789_v30 = vshll.u32 %v1773_v51, 16  ;;  %v1787_v3 = vor.u32 %v1786_v16, %v1782_v47  ;;  %v1793_v54 = vshrl.u32 %v1773_v51, 16 }
 0x4e9   : > { %1671 = vst.msk [vmem:[#allocation2 + $0x70] sm:$0x1f] %vm8019_vm6, %v1652_v7  ;;  %2078 = vperm.xlu1 %6108, %v6216_v32   ;;  %vm3670_vm6 = vcmask 125952  }
 0x4ea   : > { %1757 = vst.msk [vmem:[#allocation2 + $0x74] sm:$0x1] %vm8022_vm4, %v6230_v58  ;;  %v1733_v0 = vpop.permute.xlu1 %1732  ;;  %v1791_v15 = vrot.slane %v1789_v30, 1 }
 0x4eb   : > { %1751 = vst.msk [vmem:[#allocation2 + $0x60] sm:$0xff] %vm8026_vm9, %v1733_v0  ;;  %v1762_v4 = vld [vmem:[#allocation2 + $0x40] sm:$0xff] }
 0x4ec   : > { %v1735_v24 = vpop.permute.xlu0 %1734  ;;  %v1792_v40 = vsel %vm727_vm10, %v1787_v3, %v1791_v15  ;;  %v1795_v20 = vor.u32 %v1793_v54, %v1791_v15 }
 0x4ed   : > { %1753 = vst.msk [vmem:[#allocation2 + $0x70] sm:$0xf] %vm8018_vm14, %v1735_v24  ;;  %5834 = vmatprep.mubr.msk.bf16.mxu1 %vm8030_vm2, %v1792_v40  ;;  %v1763_v29 = vld [vmem:[#allocation2 + $0x50] sm:$0xff]  ;;  %vm8021_vm14 = vcmask 490496   ;;  %2083 = vperm.xlu1 %6108, %v6217_v35  }
 0x4ee   : > { %v1774_v12 = vpack.c.bf16 %v1763_v29, %v1762_v4  ;;  %5862 = vmatprep.mubr.msk.bf16.mxu0 %vm8021_vm14, %v6146_v11 }
 0x4f0   : > { %v1797_v13 = vshll.u32 %v1774_v12, 16  ;;  %v1801_v60 = vshrl.u32 %v1774_v12, 16 }
 0x4f2   : > { %v1799_v10 = vrot.slane %v1797_v13, 1  ;;  %v1764_v57 = vld [vmem:[#allocation2 + $0x60] sm:$0xff] }
 0x4f4   : > { %v1800_v17 = vsel %vm727_vm10, %v1795_v20, %v1799_v10  ;;  %v1765_v61 = vld [vmem:[#allocation2 + $0x70] sm:$0x1f]  ;;  %v1803_v19 = vor.u32 %v1801_v60, %v1799_v10 }
 0x4f5   : > { %5835 = vmatmul.mubr.msk.bf16.vlgmr.msra.gmra.mrb[16].mxu1 %vm8030_vm2, %v1800_v17  ;;  %v1775_v42 = vpack.c.bf16 %v1765_v61, %v1764_v57 }
 0x4f7   : > { %v1805_v41 = vshll.u32 %v1775_v42, 16  ;;  %v1809_v63 = vshrl.u32 %v1775_v42, 16 }
 0x4f9   : > { %v1807_v31 = vrot.slane %v1805_v41, 1  ;;  %v6147_v41 = vld [vmem:[%s8008_s3 + $0x48] sm:$0xff]  }
 0x4fb   : > { %v1808_v1 = vsel %vm727_vm10, %v1803_v19, %v1807_v31  ;;  %v1811_v5 = vor.u32 %v1809_v63, %v1807_v31  ;;  %v6148_v19 = vld [vmem:[%s8008_s3 + $0x58] sm:$0xff]  }
 0x4fc   : > { %5838 = vmatprep.mubr.msk.bf16.mxu1 %vm8030_vm2, %v1808_v1 }
 0x4fd   : > { %5839 = vmatmul.mubr.msk.bf16.gmra.mrb[20].mxu1 %vm8030_vm2, %v1811_v5 }
 0x4fe   : > { %5850 = vmatprep.mubr.msk.bf16.mxu1 %vm8021_vm14, %v6145_v62 }
 0x55e   : > { %v2074_v5 = vpop.permute.xlu0 %2073 }
 0x564   : > { %v2069_v31 = vpop.permute.xlu1 %2068 }
 0x568   : > { %v2079_v63 = vpop.permute.xlu1 %2078 }
 0x56c   : > { %v2084_v1 = vpop.permute.xlu1 %2083 }
 0x5c8   : > { %v5836_v8 = vpop.f32.mrb[16].mxu1 }
 0x5c9   : > { %v1877_v18 = vpop.f32.mrb[17].mxu1  ;;  %v6925_v44 = vadd.f32 %v5836_v8, %v5452_v59 }
 0x5ca   : > { %v6921_v46 = vadd.f32 %v5452_v59, %v1877_v18  ;;  %v5837_v56 = vpop.f32.mrb[18].mxu1 }
 0x5cb   : > { %v6923_v21 = vadd.f32 %v5837_v56, %v5452_v59  ;;  %v1880_v43 = vpop.f32.mrb[19].mxu1  ;;  %v1910_v30 = vmax.f32 %v6925_v44, 0.0 }
 0x5cc   : > { %v6927_v51 = vadd.f32 %v5452_v59, %v1880_v43  ;;  %v1908_v16 = vmax.f32 %v6921_v46, 0.0 }
 0x5cd   : > { %v1911_v7 = vmax.f32 %v6923_v21, 0.0 }
 0x5ce   : > { %v1909_v47 = vmax.f32 %v6927_v51, 0.0 }
 0x5cf   : > { %v1921_v40 = vpack.c.bf16 %v1911_v7, %v1910_v30 }
 0x5d0   : > { %v1920_v0 = vpack.c.bf16 %v1909_v47, %v1908_v16  ;;  %v5840_v3 = vpop.f32.mrb[20].mxu1 }
 0x5d1   : > { %v1902_v15 = vadd.f32 %v5840_v3, %v5452_v59  ;;  %v1893_v24 = vpop.f32.mrb[21].mxu1 }
 0x5d2   : > { %v6941_v4 = vadd.f32 %v5452_v59, %v1893_v24  ;;  %v5841_v29 = vpop.f32.mrb[22].mxu1  ;;  %5842 = vmatprep.subr.bf16.mxu1 %v1920_v0  ;;  %5854 = vmatprep.subr.bf16.mxu0 %v1920_v0 }
 0x5d3   : > { %v1914_v12 = vmax.f32 %v1902_v15, 0.0  ;;  %v1905_v54 = vadd.f32 %v5841_v29, %v5452_v59  ;;  %v1896_v13 = vpop.f32.mrb[23].mxu1  ;;  %5843 = vmatpush3.bf16.msra.mxu1 %v1920_v0  ;;  %5855 = vmatpush3.bf16.msra.mxu0 %v1920_v0 }
 0x5d4   : > { %v1897_v20 = vadd.f32 %v5452_v59, %v1896_v13  ;;  %5844 = vmatprep.subr.bf16.mxu1 %v1921_v40  ;;  %5856 = vmatprep.subr.bf16.mxu0 %v1921_v40  ;;  %v1912_v17 = vmax.f32 %v6941_v4, 0.0  ;;  %v5522_v4 = vld [vmem:[%s8007_s2 + $0x8] ss:$0 sm:$0xff] }
 0x5d5   : > { %3669 = vst.msk [vmem:[#allocation2 + $0x60] sm:$0xff] %vm1605_vm7, %v1914_v12  ;;  %v1915_v10 = vmax.f32 %v1905_v54, 0.0 }
 0x5d6   : > { %v1913_v57 = vmax.f32 %v1897_v20, 0.0 }
 0x5d7   : > { %v1923_v61 = vpack.c.bf16 %v1915_v10, %v1914_v12  ;;  %5845 = vmatpush3.bf16.msra.mxu1 %v1921_v40  ;;  %5857 = vmatpush3.bf16.msra.mxu0 %v1921_v40  ;;  %3671 = vst.msk [vmem:[#allocation2 + $0x70] sm:$0xf] %vm3670_vm6, %v1915_v10  ;;  %vm2110_vm6 = vcmask 123904  }
 0x5d8   : > { %v1922_v42 = vpack.c.bf16 %v1913_v57, %v1912_v17  ;;  %3668 = vst.msk [vmem:[#allocation2 + $0x50] sm:$0xff] %vm1605_vm7, %v1913_v57 }
 0x5d9   : > { %v1942_v60 = vsel %vm8020_vm1, %v1923_v61, 0 }
 0x5da   : > { %5846 = vmatprep.subr.bf16.mxu1 %v1922_v42  ;;  %5858 = vmatprep.subr.bf16.mxu0 %v1922_v42 }
 0x5db   : > { %5847 = vmatpush3.bf16.msra.mxu1 %v1922_v42  ;;  %5859 = vmatpush3.bf16.msra.mxu0 %v1922_v42 }
 0x5dc   : > { %6070 = vmatprep.subr.msk.bf16.mxu1 %vm8020_vm1, %v1923_v61  ;;  %6071 = vmatprep.subr.msk.bf16.mxu0 %vm8020_vm1, %v1923_v61  ;;  %vm2142_vm1 = vcmask 254080  }
 0x5df   : > { %5849 = vmatpush3.bf16.msra.mxu1 %v1942_v60  ;;  %5861 = vmatpush3.bf16.msra.mxu0 %v1942_v60 }
 0x5e2   : > { %5851 = vmatmul.mubr.msk.bf16.vlgmr.msra.gmra.mrb[24].mxu1 %vm8021_vm14, %v6147_v41  ;;  %5863 = vmatmul.mubr.msk.bf16.vlgmr.msra.gmra.mrb[24].mxu0 %vm8021_vm14, %v6148_v19  ;;  %vm2335_vm14 = vcmask 261120  }
 0x6b5   : > { %v5852_v62 = vpop.f32.mrb[24].mxu1  ;;  %v5864_v11 = vpop.f32.mrb[24].mxu0 }
 0x6b6   : > { %v2119_v6 = vrot.slane %v5852_v62, 7  ;;  %v2088_v32 = vmul.f32 %v5864_v11, %v2079_v63  ;;  %v1978_v35 = vpop.f32.mrb[25].mxu1  ;;  %v2047_v59 = vpop.f32.mrb[25].mxu0  ;;  %v2151_v8 = vrot.slane %v5864_v11, 7 }
 0x6b7   : > { %v2116_v18 = vrot.slane %v1978_v35, 7  ;;  %v2086_v56 = vmul.f32 %v2069_v31, %v2047_v59  ;;  %v5853_v43 = vpop.f32.mrb[26].mxu1  ;;  %v5865_v0 = vpop.f32.mrb[26].mxu0  ;;  %v2148_v3 = vrot.slane %v2047_v59, 7  ;;  %v6151_v35 = vld [vmem:[%s8006_s1 + $0x50] sm:$0xff]   ;;  %v6996_v59 = vld [vmem:[%s8009_s4] sm:$0xff] }
 0x6b8   : > { %v2121_v15 = vrot.slane %v5853_v43, 7  ;;  %v2089_v24 = vmul.f32 %v5865_v0, %v2084_v1  ;;  %v2153_v40 = vrot.slane %v5865_v0, 7  ;;  %v1981_v29 = vpop.f32.mrb[27].mxu1  ;;  %v2050_v12 = vpop.f32.mrb[27].mxu0  ;;  %v2097_v57 = vrot.slane %v2088_v32, 6  ;;  %v6150_v32 = vld [vmem:[%s8006_s1 + $0x48] sm:$0xff]  }
 0x6b9   : > { %v2094_v54 = vrot.slane %v2086_v56, 6  ;;  %v2117_v13 = vrot.slane %v1981_v29, 7  ;;  %v2149_v20 = vrot.slane %v2050_v12, 7  ;;  %v2087_v10 = vmul.f32 %v2074_v5, %v2050_v12  ;;  %2123 = vrot.lane.b32.xlu0 %v2116_v18, %s6232_s27  ;;  %v7010_v56 = vld [vmem:[%s8009_s4 + $0x18] sm:$0xff] }
 0x6ba   : > { %v2099_v61 = vrot.slane %v2089_v24, 6  ;;  %v2154_v42 = vsel %vm444_vm0, %v2151_v8, %v2153_v40  ;;  %v2122_v60 = vsel %vm444_vm0, %v2119_v6, %v2121_v15 }
 0x6bb   : > { %2106 = vst.msk [vmem:[#allocation2] sm:$0xfc] %vm8029_vm5, %v2094_v54  ;;  %v2095_v41 = vrot.slane %v2087_v10, 6  ;;  %2161 = vrot.lane.b32.xlu1 %v2154_v42, %s6234_s15  ;;  %v2118_v19 = vsel %vm444_vm0, %v2116_v18, %v2117_v13  ;;  %v2120_v31 = vsel %vm444_vm0, %v2117_v13, %v2119_v6  ;;  %v2152_v63 = vsel %vm444_vm0, %v2149_v20, %v2151_v8  ;;  %v6149_v6 = vld [vmem:[%s8006_s1 + $0x40] sm:$0xff]   ;;  %v7005_v18 = vld [vmem:[%s8009_s4 + $0x10] sm:$0xff] }
 0x6bc   : > { %v2100_v1 = vsel %vm364_vm3, %v2097_v57, %v2099_v61  ;;  %v2150_v5 = vsel %vm444_vm0, %v2148_v3, %v2149_v20  ;;  %2111 = vst.msk [vmem:[#allocation2 + $0x40] sm:$0x3] %vm2110_vm6, %v2099_v61  ;;  %5866 = vmatprep.subr.bf16.mxu1 %v6149_v6  ;;  %v6236_v8 = vmov 4   ;;  %vm2170_vm6 = vcmask 392449  }
 0x6bd   : > { %2109 = vst.msk [vmem:[#allocation2 + $0x30] sm:$0xff] %vm1605_vm7, %v2100_v1  ;;  %v2096_v62 = vsel %vm364_vm3, %v2094_v54, %v2095_v41  ;;  %v2098_v11 = vsel %vm364_vm3, %v2095_v41, %v2097_v57  ;;  %2155 = vrot.lane.b32.xlu0 %v2148_v3, %s6234_s15  ;;  %5867 = vmatpush3.bf16.msra.mxu1 %v6149_v6  ;;  %vm6238_vm5 = vmmov 0  }
 0x6be   : > { %2107 = vst.msk [vmem:[#allocation2 + $0x10] sm:$0xff] %vm1605_vm7, %v2096_v62  ;;  %2108 = vst.msk [vmem:[#allocation2 + $0x20] sm:$0xff] %vm1605_vm7, %v2098_v11  ;;  %5868 = vmatprep.subr.bf16.mxu1 %v6150_v32  ;;  %6111 = vset.pattern.permute.xlu1 %v6236_v8 }
 0x6bf   : > { %2125 = vrot.lane.b32.xlu1 %v2118_v19, %s6232_s27  ;;  %6110 = vset.pattern.permute.xlu0 %v6236_v8 }
 0x6c1   : > { %2129 = vrot.lane.b32.xlu0 %v2122_v60, %s6232_s27  ;;  %5869 = vmatpush3.bf16.msra.mxu1 %v6150_v32 }
 0x6c2   : > { %5870 = vmatprep.subr.bf16.mxu1 %v6151_v35 }
 0x6c3   : > { %2127 = vrot.lane.b32.xlu1 %v2120_v31, %s6232_s27 }
 0x6c5   : > { %2159 = vrot.lane.b32.xlu0 %v2152_v63, %s6234_s15  ;;  %5871 = vmatpush3.bf16.msra.mxu1 %v6151_v35 }
 0x6c6   : > { %5892 = vmatprep.subr.bf16.mxu1 %v6230_v58 }
 0x6c7   : > { %2157 = vrot.lane.b32.xlu1 %v2150_v5, %s6234_s15 }
 0x6c9   : > { %2131 = vrot.lane.b32.xlu0 %v2121_v15, %s6232_s27 }
 0x6cb   : > { %2163 = vrot.lane.b32.xlu1 %v2153_v40, %s6234_s15 }
 0x6cd   : > { %2376 = vperm.xlu0 %6110, %v6996_v59  }
 0x6cf   : > { %2380 = vperm.xlu1 %6111, %v6764_v50  }
 0x6d1   : > { %2388 = vperm.xlu0 %6110, %v7010_v56  }
 0x6d3   : > { %2384 = vperm.xlu1 %6111, %v7005_v18  }
 0x6d5   : > { %6113 = vset.pattern.permute.xlu0 %v6235_v23 }
 0x6d6   : > { %2300 = vperm.xlu0 %6113, %v6764_v50  }
 0x6d7   : > { %6112 = vset.pattern.permute.xlu1 %v6235_v23 }
 0x6d8   : > { %2295 = vperm.xlu1 %6112, %v6996_v59  }
 0x6dc   : > { %2305 = vperm.xlu1 %6112, %v7005_v18  }
 0x6e0   : > { %2310 = vperm.xlu1 %6112, %v7010_v56  }
 0x72b   : > { %v2124_v43 = vpop.permute.xlu0 %2123 }
 0x72c   : > { %2138 = vst.msk [vmem:[#allocation2] sm:$0xfe] %vm8027_vm13, %v2124_v43  ;;  %vm8031_vm13 = vcmask 778752  }
 0x72d   : > { %v2162_v0 = vpop.permute.xlu1 %2161 }
 0x72f   : > { %v2156_v3 = vpop.permute.xlu0 %2155 }
 0x730   : > { %2171 = vst.msk [vmem:[#allocation2] sm:$0xfe] %vm2170_vm6, %v2156_v3  ;;  %vm2339_vm6 = vcmask 254976  }
 0x731   : > { %2176 = vst.msk [vmem:[#allocation2 + $0x1] sm:$0x1] %vm8025_vm8, %v6230_v58  ;;  %v2126_v15 = vpop.permute.xlu1 %2125  ;;  %vm8033_vm8 = vcmask 253952  }
 0x732   : > { %2139 = vst.msk [vmem:[#allocation2 + $0x10] sm:$0xff] %vm8024_vm11, %v2126_v15 }
 0x733   : > { %v2130_v24 = vpop.permute.xlu0 %2129 }
 0x734   : > { %2141 = vst.msk [vmem:[#allocation2 + $0x30] sm:$0xff] %vm8024_vm11, %v2130_v24 }
 0x735   : > { %2174 = vst.msk [vmem:[#allocation2 + $0x30] sm:$0xff] %vm8026_vm9, %v2162_v0  ;;  %v2128_v50 = vpop.permute.xlu1 %2127 }
 0x736   : > { %2140 = vst.msk [vmem:[#allocation2 + $0x20] sm:$0xff] %vm8024_vm11, %v2128_v50  ;;  %vm2411_vm11 = vcmask 785920  }
 0x737   : > { %v2160_v40 = vpop.permute.xlu0 %2159 }
 0x738   : > { %2173 = vst.msk [vmem:[#allocation2 + $0x20] sm:$0xff] %vm8026_vm9, %v2160_v40  ;;  %v2177_v57 = vld [vmem:[#allocation2] sm:$0xfe] }
 0x739   : > { %v2158_v29 = vpop.permute.xlu1 %2157 }
 0x73a   : > { %2172 = vst.msk [vmem:[#allocation2 + $0x10] sm:$0xff] %vm8026_vm9, %v2158_v29  ;;  %vm8032_vm9 = vcmask 516352  }
 0x73b   : > { %v2132_v12 = vpop.permute.xlu0 %2131 }
 0x73c   : > { %2143 = vst.msk [vmem:[#allocation2 + $0x40] sm:$0x1] %vm2142_vm1, %v2132_v12  ;;  %v2180_v20 = vld [vmem:[#allocation2 + $0x30] sm:$0xff]  ;;  %v5468_v12 = vld [vmem:[%s8007_s2 + $0x3] ss:$0 sm:$0xff]  ;;  %vm2333_vm1 = vcmask 261122  }
 0x73d   : > { %v2164_v54 = vpop.permute.xlu1 %2163 }
 0x73e   : > { %2175 = vst.msk [vmem:[#allocation2 + $0x40] sm:$0x1] %vm8022_vm4, %v2164_v54  ;;  %v6152_v54 = vld [vmem:[%s8006_s1 + $0x60] sm:$0xff]   ;;  %vm2367_vm4 = vcmask 523521  }
 0x73f   : > { %v2179_v13 = vld [vmem:[#allocation2 + $0x20] sm:$0xff]  ;;  %5876 = vmatprep.subr.bf16.mxu0 %v6152_v54 }
 0x740   : > { %v2189_v10 = vpack.c.bf16 %v2180_v20, %v2179_v13  ;;  %5877 = vmatpush3.bf16.msra.mxu0 %v6152_v54 }
 0x741   : > { %v2178_v61 = vld [vmem:[#allocation2 + $0x10] sm:$0xff] }
 0x742   : > { %v2188_v42 = vpack.c.bf16 %v2178_v61, %v2177_v57  ;;  %v2204_v60 = vshll.u32 %v2189_v10, 16  ;;  %v2208_v11 = vshrl.u32 %v2189_v10, 16 }
 0x744   : > { %v2199_v41 = vshll.u32 %v2188_v42, 16  ;;  %v2197_v31 = vshrl.u32 %v2188_v42, 16  ;;  %v2206_v1 = vrot.slane %v2204_v60, 1 }
 0x745   : > { %v2181_v19 = vld [vmem:[#allocation2 + $0x40] sm:$0x1] }
 0x746   : > { %v2201_v63 = vrot.slane %v2199_v41, 1  ;;  %v2190_v5 = vpack.c.bf16 %v2181_v19, %v2181_v19  ;;  %v2210_v35 = vor.u32 %v2208_v11, %v2206_v1 }
 0x748   : > { %v2202_v62 = vor.u32 %v2201_v63, %v2197_v31  ;;  %v2212_v6 = vshll.u32 %v2190_v5, 16 }
 0x74a   : > { %v2207_v32 = vsel %vm727_vm10, %v2202_v62, %v2206_v1  ;;  %v2214_v43 = vrot.slane %v2212_v6, 1  ;;  %v6153_v1 = vld [vmem:[%s8006_s1 + $0x68] sm:$0xff]  }
 0x74b   : > { %5872 = vmatprep.mubr.msk.bf16.mxu1 %vm8030_vm2, %v2207_v32  ;;  %5878 = vmatprep.subr.bf16.mxu0 %v6153_v1 }
 0x74c   : > { %v2215_v0 = vsel %vm727_vm10, %v2210_v35, %v2214_v43  ;;  %v2377_v50 = vpop.permute.xlu0 %2376  ;;  %5879 = vmatpush3.bf16.msra.mxu0 %v6153_v1  ;;  %v6157_v1 = vld [vmem:[%s8006_s1 + $0x88] sm:$0xff]  }
 0x74d   : > { %5873 = vmatmul.mubr.msk.bf16.vlgmr.msra.gmra.mrb[28].mxu1 %vm8030_vm2, %v2215_v0  ;;  %vm2864_vm2 = vcmask 523264  }
 0x74e   : > { %v2381_v3 = vpop.permute.xlu1 %2380  ;;  %5896 = vmatprep.mubr.msk.bf16.mxu1 %vm6238_vm5, %v6230_v58 }
 0x750   : > { %v7034_v29 = vpop.permute.xlu0 %2388 }
 0x752   : > { %v2385_v15 = vpop.permute.xlu1 %2384 }
 0x755   : > { %v2301_v63 = vpop.permute.xlu0 %2300 }
 0x757   : > { %v2296_v24 = vpop.permute.xlu1 %2295 }
 0x75b   : > { %v2306_v40 = vpop.permute.xlu1 %2305 }
 0x75f   : > { %v2311_v42 = vpop.permute.xlu1 %2310 }
 0x820   : > { %v5874_v13 = vpop.f32.mrb[28].mxu1 }
 0x821   : > { %v2283_v20 = vadd.f32 %v5874_v13, %v5468_v12  ;;  %v2274_v10 = vpop.f32.mrb[29].mxu1 }
 0x822   : > { %v2275_v57 = vadd.f32 %v5468_v12, %v2274_v10  ;;  %v5875_v61 = vpop.f32.mrb[30].mxu1 }
 0x823   : > { %v2315_v60 = vmul.f32 %v2306_v40, %v2283_v20  ;;  %v2393_v41 = vmul.f32 %v2385_v15, %v2283_v20  ;;  %v2286_v19 = vadd.f32 %v5875_v61, %v5468_v12  ;;  %v2277_v31 = vpop.f32.mrb[31].mxu1  ;;  %v2348_v11 = vrot.slane %v2283_v20, 7 }
 0x824   : > { %v2313_v5 = vmul.f32 %v2296_v24, %v2275_v57  ;;  %v2278_v62 = vadd.f32 %v5468_v12, %v2277_v31  ;;  %v2345_v6 = vrot.slane %v2275_v57, 7  ;;  %v6154_v12 = vld [vmem:[%s8006_s1 + $0x70] sm:$0xff]   ;;  %v2391_v31 = vmul.f32 %v2377_v50, %v2275_v57 }
 0x825   : > { %v2350_v32 = vrot.slane %v2286_v19, 7  ;;  %v2316_v35 = vmul.f32 %v2311_v42, %v2286_v19  ;;  %2403 = vrot.lane.b32.xlu0 %v2393_v41, %s6237_s19  ;;  %v2324_v54 = vrot.slane %v2315_v60, 6  ;;  %5880 = vmatprep.subr.bf16.mxu0 %v6154_v12  ;;  %v6155_v42 = vld [vmem:[%s8006_s1 + $0x78] sm:$0xff]   ;;  %v2394_v50 = vmul.f32 %v7034_v29, %v2286_v19 }
 0x826   : > { %v2321_v43 = vrot.slane %v2313_v5, 6  ;;  %v2346_v0 = vrot.slane %v2278_v62, 7  ;;  %v2392_v15 = vmul.f32 %v2381_v3, %v2278_v62  ;;  %v2314_v40 = vmul.f32 %v2301_v63, %v2278_v62  ;;  %5881 = vmatpush3.bf16.msra.mxu0 %v6154_v12  ;;  %v6156_v63 = vld [vmem:[%s8006_s1 + $0x80] sm:$0xff]  }
 0x827   : > { %v2326_v13 = vrot.slane %v2316_v35, 6  ;;  %v2351_v24 = vsel %vm444_vm0, %v2348_v11, %v2350_v32  ;;  %5882 = vmatprep.subr.bf16.mxu0 %v6155_v42 }
 0x828   : > { %2334 = vst.msk [vmem:[#allocation2] sm:$0xfc] %vm2333_vm1, %v2321_v43  ;;  %v2322_v20 = vrot.slane %v2314_v40, 6  ;;  %2401 = vrot.lane.b32.xlu1 %v2392_v15, %s6237_s19  ;;  %v2347_v10 = vsel %vm444_vm0, %v2345_v6, %v2346_v0  ;;  %v2349_v3 = vsel %vm444_vm0, %v2346_v0, %v2348_v11 }
 0x829   : > { %v2327_v61 = vsel %vm364_vm3, %v2324_v54, %v2326_v13  ;;  %2352 = vrot.lane.b32.xlu0 %v2345_v6, %s6234_s15  ;;  %2340 = vst.msk [vmem:[#allocation2 + $0x40] sm:$0x3] %vm2339_vm6, %v2326_v13 }
 0x82a   : > { %v2323_v60 = vsel %vm364_vm3, %v2321_v43, %v2322_v20  ;;  %v2325_v41 = vsel %vm364_vm3, %v2322_v20, %v2324_v54  ;;  %2338 = vst.msk [vmem:[#allocation2 + $0x30] sm:$0xff] %vm2335_vm14, %v2327_v61  ;;  %5883 = vmatpush3.bf16.msra.mxu0 %v6155_v42 }
 0x82b   : > { %2336 = vst.msk [vmem:[#allocation2 + $0x10] sm:$0xff] %vm2335_vm14, %v2323_v60  ;;  %2337 = vst.msk [vmem:[#allocation2 + $0x20] sm:$0xff] %vm2335_vm14, %v2325_v41  ;;  %5884 = vmatprep.subr.bf16.mxu0 %v6156_v63 }
 0x82c   : > { %2354 = vrot.lane.b32.xlu1 %v2347_v10, %s6234_s15 }
 0x82d   : > { %2399 = vrot.lane.b32.xlu0 %v2391_v31, %s6237_s19 }
 0x82e   : > { %5885 = vmatpush3.bf16.msra.mxu0 %v6156_v63 }
 0x82f   : > { %5886 = vmatprep.subr.bf16.mxu0 %v6157_v1 }
 0x830   : > { %2356 = vrot.lane.b32.xlu1 %v2349_v3, %s6234_s15 }
 0x831   : > { %2358 = vrot.lane.b32.xlu0 %v2351_v24, %s6234_s15 }
 0x832   : > { %5887 = vmatpush3.bf16.msra.mxu0 %v6157_v1 }
 0x833   : > { %5908 = vmatprep.subr.bf16.mxu0 %v6230_v58 }
 0x834   : > { %2405 = vrot.lane.b32.xlu1 %v2394_v50, %s6237_s19 }
 0x835   : > { %2360 = vrot.lane.b32.xlu0 %v2350_v32, %s6234_s15 }
 0x897   : > { %v2404_v57 = vpop.permute.xlu0 %2403 }
 0x89a   : > { %v2402_v5 = vpop.permute.xlu1 %2401 }
 0x89b   : > { %v2353_v62 = vpop.permute.xlu0 %2352 }
 0x89c   : > { %2368 = vst.msk [vmem:[#allocation2] sm:$0xfe] %vm2367_vm4, %v2353_v62  ;;  %v6239_v62 = vmov 7  }
 0x89d   : > { %6114 = vset.pattern.permute.xlu1 %v6239_v62  ;;  %6115 = vset.pattern.permute.xlu0 %v6239_v62 }
 0x89e   : > { %v2355_v11 = vpop.permute.xlu1 %2354  ;;  %2669 = vperm.xlu1 %6114, %v6996_v59  }
 0x89f   : > { %2370 = vst.msk [vmem:[#allocation2 + $0x10] sm:$0xff] %vm2369_vm15, %v2355_v11  ;;  %v2400_v29 = vpop.permute.xlu0 %2399  ;;  %v5474_v11 = vld [vmem:[%s8007_s2 + $0x4] ss:$0 sm:$0xff] }
 0x8a0   : > { %2413 = vst.msk [vmem:[#allocation2 + $0x10] sm:$0xff] %vm2411_vm11, %v2402_v5  ;;  %2412 = vst.msk [vmem:[#allocation2] sm:$0xff] %vm2411_vm11, %v2400_v29  ;;  %v7103_v5 = vld [vmem:[%s8009_s4 + $0x8] sm:$0xff] }
 0x8a1   : > { %2417 = vst.msk [vmem:[#allocation2 + $0x1] sm:$0x1] %vm8033_vm8, %v6230_v58  ;;  %2674 = vperm.xlu0 %6115, %v7103_v5  }
 0x8a2   : > { %v2357_v19 = vpop.permute.xlu1 %2356 }
 0x8a3   : > { %2371 = vst.msk [vmem:[#allocation2 + $0x20] sm:$0xff] %vm2369_vm15, %v2357_v19  ;;  %v2359_v6 = vpop.permute.xlu0 %2358 }
 0x8a4   : > { %2414 = vst.msk [vmem:[#allocation2 + $0x20] sm:$0xff] %vm2411_vm11, %v2404_v57 }
 0x8a5   : > { %2372 = vst.msk [vmem:[#allocation2 + $0x30] sm:$0xff] %vm2369_vm15, %v2359_v6 }
 0x8a6   : > { %v2406_v32 = vpop.permute.xlu1 %2405 }
 0x8a7   : > { %2415 = vst.msk [vmem:[#allocation2 + $0x30] sm:$0xff] %vm2411_vm11, %v2406_v32  ;;  %v2361_v35 = vpop.permute.xlu0 %2360  ;;  %v2421_v43 = vld [vmem:[#allocation2 + $0x10] sm:$0xff] }
 0x8a8   : > { %v2420_v0 = vld [vmem:[#allocation2] sm:$0xfe]  ;;  %2374 = vst.msk [vmem:[#allocation2 + $0x40] sm:$0x1] %vm8032_vm9, %v2361_v35 }
 0x8a9   : > { %2419 = vst.msk [vmem:[#allocation2 + $0x40] sm:$0x1] %vm8031_vm13, %v6230_v58  ;;  %v2437_v15 = vpack.c.bf16 %v2421_v43, %v2420_v0 }
 0x8ab   : > { %v2448_v40 = vshll.u32 %v2437_v15, 16  ;;  %v2422_v54 = vld [vmem:[#allocation2 + $0x20] sm:$0xff]  ;;  %v2446_v10 = vshrl.u32 %v2437_v15, 16 }
 0x8ad   : > { %v2450_v12 = vrot.slane %v2448_v40, 1 }
 0x8ae   : > { %v2423_v13 = vld [vmem:[#allocation2 + $0x30] sm:$0xff] }
 0x8af   : > { %v2438_v24 = vpack.c.bf16 %v2423_v13, %v2422_v54  ;;  %v2451_v42 = vor.u32 %v2450_v12, %v2446_v10  ;;  %v6158_v10 = vld [vmem:[%s8008_s3 + $0x60] sm:$0xff]  }
 0x8b0   : > { %v2424_v20 = vld [vmem:[#allocation2 + $0x40] sm:$0x1] }
 0x8b1   : > { %v2453_v3 = vshll.u32 %v2438_v24, 16  ;;  %v2439_v61 = vpack.c.bf16 %v2424_v20, %v2424_v20  ;;  %v2457_v41 = vshrl.u32 %v2438_v24, 16 }
 0x8b3   : > { %v2455_v60 = vrot.slane %v2453_v3, 1  ;;  %v2461_v31 = vshll.u32 %v2439_v61, 16  ;;  %v6159_v3 = vld [vmem:[%s8008_s3 + $0x70] sm:$0xff]  }
 0x8b4   : > { %v6160_v61 = vld [vmem:[%s8006_s1 + $0x90] sm:$0xff]  }
 0x8b5   : > { %v2456_v63 = vsel %vm727_vm10, %v2451_v42, %v2455_v60  ;;  %v2459_v1 = vor.u32 %v2457_v41, %v2455_v60  ;;  %v2463_v50 = vrot.slane %v2461_v31, 1  ;;  %v6161_v60 = vld [vmem:[%s8006_s1 + $0x98] sm:$0xff]  }
 0x8b6   : > { %5888 = vmatprep.mubr.msk.bf16.mxu0 %vm2501_vm12, %v2456_v63 }
 0x8b7   : > { %v2464_v57 = vsel %vm727_vm10, %v2459_v1, %v2463_v50 }
 0x8b8   : > { %5889 = vmatmul.mubr.msk.bf16.vlgmr.msra.gmra.mrb[28].mxu0 %vm2501_vm12, %v2464_v57  ;;  %v6162_v57 = vld [vmem:[%s8006_s1 + $0xa0] sm:$0xff]  }
 0x8b9   : > { %5920 = vmatprep.mubr.msk.bf16.mxu0 %vm6238_vm5, %v6230_v58  ;;  %5909 = vmatpush3.bf16.msra.mxu0 %v6160_v61 }
 0x8ba   : > { %5910 = vmatprep.subr.bf16.mxu0 %v6230_v58 }
 0x8bd   : > { %5911 = vmatpush3.bf16.msra.mxu0 %v6161_v60 }
 0x8be   : > { %5912 = vmatprep.subr.bf16.mxu0 %v6230_v58 }
 0x8c1   : > { %5913 = vmatpush3.bf16.msra.mxu0 %v6162_v57 }
 0x8c2   : > { %5914 = vmatprep.subr.bf16.mxu0 %v6230_v58 }
 0x98b   : > { %v5890_v29 = vpop.f32.mrb[28].mxu0 }
 0x98c   : > { %v2542_v19 = vpop.f32.mrb[29].mxu0  ;;  %v7114_v40 = vadd.f32 %v5890_v29, %v5474_v11  ;;  %v6163_v29 = vld [vmem:[%s8006_s1 + $0xa8] sm:$0xff]  }
 0x98d   : > { %v7110_v6 = vadd.f32 %v5474_v11, %v2542_v19  ;;  %v5891_v32 = vpop.f32.mrb[30].mxu0  ;;  %5915 = vmatpush3.bf16.msra.mxu0 %v6163_v29 }
 0x98e   : > { %v2554_v35 = vadd.f32 %v5891_v32, %v5474_v11  ;;  %v2545_v43 = vpop.f32.mrb[31].mxu0  ;;  %v2559_v12 = vmax.f32 %v7114_v40, 0.0  ;;  %v2675_v32 = vpop.permute.xlu0 %2674  ;;  %5916 = vmatprep.subr.bf16.mxu0 %v6230_v58  ;;  %v5495_v40 = vld [vmem:[%s8007_s2 + $0x6] ss:$0 sm:$0xff] }
 0x98f   : > { %v7112_v0 = vadd.f32 %v5474_v11, %v2545_v43  ;;  %v2557_v54 = vmax.f32 %v7110_v6, 0.0  ;;  %v2670_v11 = vpop.permute.xlu1 %2669 }
 0x990   : > { %v2560_v15 = vmax.f32 %v2554_v35, 0.0 }
 0x991   : > { %v2558_v13 = vmax.f32 %v7112_v0, 0.0  ;;  %v6178_v0 = vld [vmem:[%s8008_s3 + $0x80] sm:$0xff]  }
 0x992   : > { %3158 = vst.msk [vmem:[#allocation2 + $0x30] sm:$0xff] %vm2335_vm14, %v2560_v15  ;;  %v2564_v20 = vpack.c.bf16 %v2560_v15, %v2559_v12 }
 0x993   : > { %v2563_v24 = vpack.c.bf16 %v2558_v13, %v2557_v54 }
 0x995   : > { %5893 = vmatpush3.bf16.msra.mxu1 %v2563_v24 }
 0x996   : > { %5894 = vmatprep.subr.bf16.mxu1 %v6230_v58 }
 0x999   : > { %5895 = vmatpush3.bf16.msra.mxu1 %v2564_v20 }
 0x99a   : > { %5900 = vmatprep.subr.bf16.mxu1 %v6230_v58 }
 0x99c   : > { %5897 = vmatmul.mubr.msk.bf16.vlgmr.msra.gmra.mrb[32].mxu1 %vm2335_vm14, %v6158_v10 }
 0x99d   : > { %5901 = vmatpush3.bf16.msra.mxu1 %v2563_v24  ;;  %5904 = vmatprep.mubr.msk.bf16.mxu1 %vm6238_vm5, %v6230_v58  ;;  %vm2721_vm5 = vcmask 785921  }
 0x99e   : > { %5902 = vmatprep.subr.bf16.mxu1 %v6230_v58 }
 0x9a1   : > { %5903 = vmatpush3.bf16.msra.mxu1 %v2564_v20  ;;  %v6164_v20 = vld [vmem:[%s8006_s1 + $0xb0] sm:$0xff]  }
 0x9a2   : > { %3042 = vmatprep.subr.bf16.mxu1 %v6226_v2  ;;  %5917 = vmatpush3.bf16.msra.mxu0 %v6164_v20 }
 0x9a3   : > { %5918 = vmatprep.subr.bf16.mxu0 %v6230_v58 }
 0x9a4   : > { %5905 = vmatmul.mubr.msk.bf16.vlgmr.msra.gmra.mrb[36].mxu1 %vm2335_vm14, %v6159_v3 }
 0xa6f   : > { %v2607_v42 = vpop.f32.mrb[32].mxu1 }
 0xa70   : > { %v2692_v41 = vrot.slane %v2607_v42, 7  ;;  %v5898_v31 = vpop.f32.mrb[33].mxu1 }
 0xa71   : > { %v2610_v63 = vpop.f32.mrb[34].mxu1  ;;  %v6165_v31 = vld [vmem:[%s8006_s1 + $0xb8] sm:$0xff]  }
 0xa72   : > { %v2693_v1 = vrot.slane %v2610_v63, 7  ;;  %2695 = vrot.lane.b32.xlu1 %v2692_v41, %s6234_s15  ;;  %v5899_v50 = vpop.f32.mrb[35].mxu1  ;;  %5919 = vmatpush3.bf16.msra.mxu0 %v6165_v31  ;;  %v6167_v31 = vld [vmem:[%s8006_s1 + $0xc8] sm:$0xff]  }
 0xa73   : > { %v6240_v50 = vmov 6  }
 0xa74   : > { %v2694_v62 = vsel %vm444_vm0, %v2692_v41, %v2693_v1 }
 0xa76   : > { %2697 = vrot.lane.b32.xlu1 %v2694_v62, %s6234_s15 }
 0xa77   : > { %v2658_v19 = vpop.f32.mrb[36].mxu1 }
 0xa78   : > { %v2677_v35 = vmul.f32 %v2670_v11, %v2658_v19  ;;  %v2709_v43 = vrot.slane %v2658_v19, 7  ;;  %v5906_v15 = vpop.f32.mrb[37].mxu1 }
 0xa79   : > { %v2661_v24 = vpop.f32.mrb[38].mxu1 }
 0xa7a   : > { %v2681_v10 = vrot.slane %v2677_v35, 6  ;;  %v2710_v3 = vrot.slane %v2661_v24, 7  ;;  %v2678_v61 = vmul.f32 %v2675_v32, %v2661_v24  ;;  %2712 = vrot.lane.b32.xlu0 %v2709_v43, %s6237_s19  ;;  %v5907_v42 = vpop.f32.mrb[39].mxu1 }
 0xa7c   : > { %2687 = vst.msk [vmem:[#allocation2] sm:$0xfc] %vm2333_vm1, %v2681_v10  ;;  %v2682_v60 = vrot.slane %v2678_v61, 6  ;;  %v2711_v41 = vsel %vm444_vm0, %v2709_v43, %v2710_v3 }
 0xa7d   : > { %2714 = vrot.lane.b32.xlu1 %v2711_v41, %s6237_s19  ;;  %v6166_v41 = vld [vmem:[%s8006_s1 + $0xc0] sm:$0xff]  }
 0xa7e   : > { %v2683_v63 = vsel %vm364_vm3, %v2681_v10, %v2682_v60  ;;  %2689 = vst.msk [vmem:[#allocation2 + $0x20] sm:$0x3] %vm2339_vm6, %v2682_v60  ;;  %2699 = vrot.lane.b32.xlu0 %v2693_v1, %s6234_s15  ;;  %3043 = vmatpush1.bf16.msra.mxu1 %v6166_v41 }
 0xa7f   : > { %2688 = vst.msk [vmem:[#allocation2 + $0x10] sm:$0xff] %vm2335_vm14, %v2683_v63  ;;  %3044 = vmatprep.subr.bf16.mxu1 %v6226_v2  ;;  %v6168_v63 = vld [vmem:[%s8006_s1 + $0xd0] sm:$0xff]  }
 0xa81   : > { %2716 = vrot.lane.b32.xlu1 %v2710_v3, %s6237_s19 }
 0xa82   : > { %2844 = vperm.xlu0 %6115, %v6996_v59   ;;  %3045 = vmatpush1.bf16.msra.mxu1 %v6167_v31 }
 0xa83   : > { %3046 = vmatprep.subr.bf16.mxu1 %v6226_v2 }
 0xa85   : > { %2849 = vperm.xlu1 %6114, %v7103_v5  }
 0xa86   : > { %6116 = vset.pattern.permute.xlu0 %v6240_v50  ;;  %3047 = vmatpush1.bf16.msra.mxu1 %v6168_v63 }
 0xa87   : > { %2889 = vperm.xlu0 %6116, %v6996_v59   ;;  %3048 = vmatprep.subr.bf16.mxu1 %v6226_v2 }
 0xa89   : > { %6117 = vset.pattern.permute.xlu1 %v6240_v50  ;;  %v6169_v50 = vld [vmem:[%s8006_s1 + $0xd8] sm:$0xff]  }
 0xa8a   : > { %2893 = vperm.xlu1 %6117, %v7103_v5   ;;  %3049 = vmatpush1.bf16.msra.mxu1 %v6169_v50 }
 0xa8b   : > { %6118 = vset.pattern.permute.xlu0 %v6236_v8  ;;  %3050 = vmatprep.subr.bf16.mxu1 %v6226_v2 }
 0xa8e   : > { %6119 = vset.pattern.permute.xlu1 %v6236_v8 }
 0xae4   : > { %v2696_v1 = vpop.permute.xlu1 %2695 }
 0xae5   : > { %2704 = vst.msk [vmem:[#allocation2] sm:$0xfe] %vm2367_vm4, %v2696_v1  ;;  %v6170_v1 = vld [vmem:[%s8006_s1 + $0xe0] sm:$0xff]  }
 0xae6   : > { %3051 = vmatpush1.bf16.msra.mxu1 %v6170_v1 }
 0xae7   : > { %3052 = vmatprep.subr.bf16.mxu1 %v6226_v2 }
 0xae8   : > { %v2698_v57 = vpop.permute.xlu1 %2697 }
 0xae9   : > { %2705 = vst.msk [vmem:[#allocation2 + $0x10] sm:$0xff] %vm2369_vm15, %v2698_v57  ;;  %v6171_v57 = vld [vmem:[%s8006_s1 + $0xe8] sm:$0xff]  }
 0xaea   : > { %3053 = vmatpush1.bf16.msra.mxu1 %v6171_v57 }
 0xaeb   : > { %3054 = vmatprep.subr.bf16.mxu1 %v6226_v2 }
 0xaec   : > { %v2713_v62 = vpop.permute.xlu0 %2712 }
 0xaed   : > { %2722 = vst.msk [vmem:[#allocation2] sm:$0xfe] %vm2721_vm5, %v2713_v62  ;;  %vm2900_vm5 = vcmask 516096   ;;  %v6172_v62 = vld [vmem:[%s8006_s1 + $0xf0] sm:$0xff]  }
 0xaee   : > { %2725 = vst.msk [vmem:[#allocation2 + $0x1] sm:$0x1] %vm8033_vm8, %v6230_v58  ;;  %3055 = vmatpush1.bf16.msra.mxu1 %v6172_v62  ;;  %vm2886_vm8 = vcmask 1040896  }
 0xaef   : > { %v2715_v11 = vpop.permute.xlu1 %2714  ;;  %2902 = vst.msk [vmem:[#allocation2 + $0x28] sm:$0x1] %vm2900_vm5, %v6230_v58  ;;  %3056 = vmatprep.subr.bf16.mxu1 %v6226_v2 }
 0xaf0   : > { %2723 = vst.msk [vmem:[#allocation2 + $0x10] sm:$0xff] %vm2411_vm11, %v2715_v11  ;;  %v2700_v29 = vpop.permute.xlu0 %2699  ;;  %v6173_v11 = vld [vmem:[%s8006_s1 + $0xf8] sm:$0xff]  }
 0xaf1   : > { %2706 = vst.msk [vmem:[#allocation2 + $0x20] sm:$0x1] %vm8032_vm9, %v2700_v29  ;;  %vm2866_vm9 = vcmask 517120  }
 0xaf2   : > { %3057 = vmatpush1.bf16.msra.mxu1 %v6173_v11  ;;  %v6177_v11 = vld [vmem:[%s8006_s1 + $0x118] sm:$0xff]  }
 0xaf3   : > { %v2717_v19 = vpop.permute.xlu1 %2716  ;;  %3058 = vmatprep.subr.bf16.mxu1 %v6226_v2 }
 0xaf4   : > { %2724 = vst.msk [vmem:[#allocation2 + $0x20] sm:$0x1] %vm8031_vm13, %v2717_v19  ;;  %v6174_v19 = vld [vmem:[%s8006_s1 + $0x100] sm:$0xff]   ;;  %vm2862_vm13 = vcmask 523266  }
 0xaf5   : > { %v2726_v8 = vld [vmem:[#allocation2] sm:$0xfe] }
 0xaf6   : > { %3059 = vmatpush1.bf16.msra.mxu1 %v6174_v19 }
 0xaf7   : > { %v2727_v32 = vld [vmem:[#allocation2 + $0x10] sm:$0xff]  ;;  %3060 = vmatprep.subr.bf16.mxu1 %v6226_v2 }
 0xaf8   : > { %v2741_v35 = vpack.c.bf16 %v2727_v32, %v2726_v8  ;;  %v5487_v32 = vld [vmem:[%s8007_s2 + $0x5] ss:$0 sm:$0xff] }
 0xafa   : > { %v2751_v43 = vshll.u32 %v2741_v35, 16  ;;  %v2749_v10 = vshrl.u32 %v2741_v35, 16 }
 0xafb   : > { %v2728_v15 = vld [vmem:[#allocation2 + $0x20] sm:$0x1] }
 0xafc   : > { %v2742_v24 = vpack.c.bf16 %v2728_v15, %v2728_v15  ;;  %v2753_v20 = vrot.slane %v2751_v43, 1  ;;  %v6175_v15 = vld [vmem:[%s8006_s1 + $0x108] sm:$0xff]  }
 0xafd   : > { %3061 = vmatpush1.bf16.msra.mxu1 %v6175_v15 }
 0xafe   : > { %v2756_v3 = vshll.u32 %v2742_v24, 16  ;;  %v2754_v61 = vor.u32 %v2753_v20, %v2749_v10  ;;  %3062 = vmatprep.subr.bf16.mxu1 %v6226_v2 }
 0xb00   : > { %v2758_v42 = vrot.slane %v2756_v3, 1 }
 0xb01   : > { %v2845_v29 = vpop.permute.xlu0 %2844 }
 0xb02   : > { %v2759_v60 = vsel %vm727_vm10, %v2754_v61, %v2758_v42  ;;  %v6176_v61 = vld [vmem:[%s8006_s1 + $0x110] sm:$0xff]  }
 0xb03   : > { %5921 = vmatmul.mubr.msk.bf16.vlgmr.msra.gmra.mrb[32].mxu0 %vm2501_vm12, %v2759_v60  ;;  %3063 = vmatpush1.bf16.msra.mxu1 %v6176_v61 }
 0xb04   : > { %v2850_v8 = vpop.permute.xlu1 %2849  ;;  %3064 = vmatprep.subr.bf16.mxu1 %v6226_v2  ;;  %5926 = vmatprep.mubr.msk.bf16.mxu0 %vm1605_vm7, %v6178_v0 }
 0xb06   : > { %v2890_v43 = vpop.permute.xlu0 %2889 }
 0xb07   : > { %3065 = vmatpush1.bf16.msra.mxu1 %v6177_v11 }
 0xb09   : > { %v2894_v3 = vpop.permute.xlu1 %2893 }
 0xbd6   : > { %v2833_v35 = vpop.f32.mrb[32].mxu0 }
 0xbd7   : > { %v2834_v24 = vadd.f32 %v5487_v32, %v2833_v35  ;;  %v5922_v20 = vpop.f32.mrb[33].mxu0 }
 0xbd8   : > { %v2836_v10 = vpop.f32.mrb[34].mxu0 }
 0xbd9   : > { %v2852_v42 = vmul.f32 %v2845_v29, %v2834_v24  ;;  %v2870_v60 = vrot.slane %v2834_v24, 7  ;;  %v2837_v41 = vadd.f32 %v5487_v32, %v2836_v10  ;;  %v2896_v31 = vmul.f32 %v2890_v43, %v2834_v24  ;;  %v5923_v63 = vpop.f32.mrb[35].mxu0 }
 0xbdb   : > { %v2856_v50 = vrot.slane %v2852_v42, 6  ;;  %v2853_v1 = vmul.f32 %v2850_v8, %v2837_v41  ;;  %v2871_v57 = vrot.slane %v2837_v41, 7  ;;  %v2897_v62 = vmul.f32 %v2894_v3, %v2837_v41  ;;  %2873 = vrot.lane.b32.xlu1 %v2870_v60, %s6237_s19  ;;  %2898 = vst.msk [vmem:[#allocation2 + $0x8] sm:$0xff] %vm2864_vm2, %v2896_v31  ;;  %v2908_v8 = vld [vmem:[#allocation2 + $0x28] sm:$0x1] }
 0xbdc   : > { %v2936_v35 = vpack.c.bf16 %v2908_v8, %v2908_v8 }
 0xbdd   : > { %2863 = vst.msk [vmem:[#allocation2] sm:$0xfc] %vm2862_vm13, %v2856_v50  ;;  %v2857_v29 = vrot.slane %v2853_v1, 6  ;;  %v2872_v19 = vsel %vm444_vm0, %v2870_v60, %v2871_v57  ;;  %vm2882_vm13 = vcmask 1048065  }
 0xbde   : > { %2899 = vst.msk [vmem:[#allocation2 + $0x18] sm:$0xff] %vm2864_vm2, %v2897_v62  ;;  %2875 = vrot.lane.b32.xlu0 %v2872_v19, %s6237_s19  ;;  %v2962_v20 = vshll.u32 %v2936_v35, 16 }
 0xbdf   : > { %2877 = vrot.lane.b32.xlu1 %v2871_v57, %s6237_s19  ;;  %v2858_v32 = vsel %vm364_vm3, %v2856_v50, %v2857_v29  ;;  %2867 = vst.msk [vmem:[#allocation2 + $0x20] sm:$0x3] %vm2866_vm9, %v2857_v29  ;;  %vm2884_vm9 = vcmask 1048064  }
 0xbe0   : > { %2865 = vst.msk [vmem:[#allocation2 + $0x10] sm:$0xff] %vm2864_vm2, %v2858_v32  ;;  %v2964_v42 = vrot.slane %v2962_v20, 1 }
 0xbe2   : > { %v2904_v43 = vld [vmem:[#allocation2 + $0x8] sm:$0xfe] }
 0xbe5   : > { %v2906_v15 = vld [vmem:[#allocation2 + $0x18] sm:$0xff] }
 0xbe6   : > { %v2934_v24 = vpack.c.bf16 %v2906_v15, %v2904_v43 }
 0xbe8   : > { %v2957_v10 = vshll.u32 %v2934_v24, 16  ;;  %v2955_v3 = vshrl.u32 %v2934_v24, 16 }
 0xbea   : > { %v2959_v61 = vrot.slane %v2957_v10, 1 }
 0xbec   : > { %v2960_v60 = vor.u32 %v2959_v61, %v2955_v3 }
 0xbee   : > { %v2965_v41 = vsel %vm727_vm10, %v2960_v60, %v2964_v42  ;;  %v6179_v60 = vld [vmem:[%s8008_s3 + $0x88] sm:$0xff]  }
 0xbef   : > { %5508 = vmatprep.mubr.msk.bf16.mxu1 %vm2864_vm2, %v2965_v41  ;;  %v6180_v41 = vld [vmem:[%s8006_s1 + $0x120] sm:$0xff]   ;;  %vm3175_vm2 = vcmask 785664  }
 0xc4d   : > { %v2874_v31 = vpop.permute.xlu1 %2873 }
 0xc4e   : > { %2883 = vst.msk [vmem:[#allocation2] sm:$0xfe] %vm2882_vm13, %v2874_v31  ;;  %v6181_v31 = vld [vmem:[%s8006_s1 + $0x128] sm:$0xff]   ;;  %vm8041_vm13 = vcmask 130050  }
 0xc4f   : > { %2901 = vst.msk [vmem:[#allocation2 + $0x1] sm:$0x1] %vm2900_vm5, %v6230_v58 }
 0xc50   : > { %v2876_v63 = vpop.permute.xlu0 %2875 }
 0xc51   : > { %2885 = vst.msk [vmem:[#allocation2 + $0x10] sm:$0xff] %vm2884_vm9, %v2876_v63  ;;  %v2878_v50 = vpop.permute.xlu1 %2877  ;;  %v6182_v63 = vld [vmem:[%s8006_s1 + $0x130] sm:$0xff]   ;;  %vm8042_vm9 = vcmask 128000  }
 0xc52   : > { %2887 = vst.msk [vmem:[#allocation2 + $0x20] sm:$0x1] %vm2886_vm8, %v2878_v50  ;;  %v6183_v50 = vld [vmem:[%s8006_s1 + $0x138] sm:$0xff]   ;;  %vm8034_vm8 = vcmask 253952  }
 0xc56   : > { %v2903_v1 = vld [vmem:[#allocation2] sm:$0xfe] }
 0xc57   : > { %3155 = vst.msk [vmem:[#allocation2] sm:$0xff] %vm2335_vm14, %v2557_v54 }
 0xc58   : > { %v2905_v57 = vld [vmem:[#allocation2 + $0x10] sm:$0xff] }
 0xc59   : > { %v2907_v62 = vld [vmem:[#allocation2 + $0x20] sm:$0x1]  ;;  %v2933_v11 = vpack.c.bf16 %v2905_v57, %v2903_v1  ;;  %3156 = vst.msk [vmem:[#allocation2 + $0x10] sm:$0xff] %vm2335_vm14, %v2558_v13  ;;  %v6185_v57 = vld [vmem:[%s8006_s1 + $0x148] sm:$0xff]  }
 0xc5a   : > { %v2935_v29 = vpack.c.bf16 %v2907_v62, %v2907_v62  ;;  %3157 = vst.msk [vmem:[#allocation2 + $0x20] sm:$0xff] %vm2335_vm14, %v2559_v12  ;;  %v6184_v1 = vld [vmem:[%s8006_s1 + $0x140] sm:$0xff]  }
 0xc5b   : > { %v2945_v19 = vshll.u32 %v2933_v11, 16  ;;  %v2943_v32 = vshrl.u32 %v2933_v11, 16 }
 0xc5c   : > { %v2950_v8 = vshll.u32 %v2935_v29, 16 }
 0xc5d   : > { %v2947_v35 = vrot.slane %v2945_v19, 1 }
 0xc5e   : > { %v2952_v43 = vrot.slane %v2950_v8, 1 }
 0xc5f   : > { %v2948_v6 = vor.u32 %v2947_v35, %v2943_v32 }
 0xc61   : > { %v2953_v54 = vsel %vm727_vm10, %v2948_v6, %v2952_v43 }
 0xc62   : > { %3075 = vmatmul.mubr.bf16.vlgmr.msra.gmra.mrb[40].mxu1 %v2953_v54 }
 0xd35   : > { %v3076_v13 = vpop.f32.mrb[40].mxu1 }
 0xd36   : > { %v3077_v12 = vadd.f32 %v5495_v40, %v3076_v13  ;;  %v3078_v15 = vpop.f32.mrb[41].mxu1 }
 0xd37   : > { %v3079_v24 = vpop.f32.mrb[42].mxu1  ;;  %v5513_v15 = vld [vmem:[%s8007_s2 + $0x7] ss:$0 sm:$0xff] }
 0xd38   : > { %v3080_v20 = vadd.f32 %v5495_v40, %v3079_v24  ;;  %v3081_v10 = vpop.f32.mrb[43].mxu1  ;;  %v3083_v3 = vmax.f32 %v3077_v12, 0.0  ;;  %v6186_v24 = vld [vmem:[%s8006_s1 + $0x150] sm:$0xff]  }
 0xd39   : > { %5946 = vmatprep.subr.bf16.mxu1 %v6186_v24 }
 0xd3a   : > { %v3084_v61 = vmax.f32 %v3080_v20, 0.0  ;;  %5947 = vmatpush3.bf16.msra.mxu1 %v6186_v24 }
 0xd3c   : > { %v3089_v42 = vpack.c.bf16 %v3084_v61, %v3083_v3 }
 0xd3e   : > { %5924 = vmatprep.subr.bf16.mxu0 %v3089_v42 }
 0xd3f   : > { %5925 = vmatpush3.bf16.msra.mxu0 %v3089_v42 }
 0xd40   : > { %5930 = vmatprep.subr.bf16.mxu0 %v6180_v41 }
 0xd42   : > { %5927 = vmatmul.mubr.msk.bf16.vlgmr.msra.gmra.mrb[36].mxu0 %vm1605_vm7, %v6179_v60 }
 0xd43   : > { %5931 = vmatpush3.bf16.msra.mxu0 %v6180_v41 }
 0xd44   : > { %5932 = vmatprep.subr.bf16.mxu0 %v6181_v31 }
 0xd47   : > { %5933 = vmatpush3.bf16.msra.mxu0 %v6181_v31 }
 0xd48   : > { %5934 = vmatprep.subr.bf16.mxu0 %v6182_v63 }
 0xd4b   : > { %5935 = vmatpush3.bf16.msra.mxu0 %v6182_v63 }
 0xd4c   : > { %5936 = vmatprep.subr.bf16.mxu0 %v6183_v50 }
 0xd4f   : > { %5937 = vmatpush3.bf16.msra.mxu0 %v6183_v50 }
 0xd50   : > { %5938 = vmatprep.subr.bf16.mxu0 %v6184_v1 }
 0xd53   : > { %5939 = vmatpush3.bf16.msra.mxu0 %v6184_v1 }
 0xd54   : > { %5940 = vmatprep.subr.bf16.mxu0 %v6185_v57 }
 0xd57   : > { %5941 = vmatpush3.bf16.msra.mxu0 %v6185_v57  ;;  %v6187_v57 = vld [vmem:[%s8006_s1 + $0x158] sm:$0xff]  }
 0xd58   : > { %5948 = vmatprep.subr.bf16.mxu1 %v6187_v57 }
 0xd59   : > { %5949 = vmatpush3.bf16.msra.mxu1 %v6187_v57 }
 0xe15   : > { %v5928_v62 = vpop.f32.mrb[36].mxu0 }
 0xe16   : > { %v3140_v11 = vpop.f32.mrb[37].mxu0 }
 0xe17   : > { %3163 = vrot.lane.b32.xlu0 %v3140_v11, %s6234_s15  ;;  %v5929_v29 = vpop.f32.mrb[38].mxu0 }
 0xe18   : > { %v3143_v19 = vpop.f32.mrb[39].mxu0 }
 0xe19   : > { %3165 = vrot.lane.b32.xlu1 %v3143_v19, %s6234_s15 }
 0xe1b   : > { %3167 = vrot.lane.b32.xlu0 %v5928_v62, %s6234_s15 }
 0xe1d   : > { %3169 = vrot.lane.b32.xlu1 %v5929_v29, %s6234_s15 }
 0xe1f   : > { %3375 = vperm.xlu0 %6118, %v6996_v59  }
 0xe21   : > { %3379 = vperm.xlu1 %6119, %v7103_v5  }
 0xe23   : > { %3387 = vperm.xlu0 %6118, %v7010_v56  }
 0xe25   : > { %3383 = vperm.xlu1 %6119, %v7005_v18  }
 0xe27   : > { %6121 = vset.pattern.permute.xlu0 %v6235_v23 }
 0xe28   : > { %3305 = vperm.xlu0 %6121, %v7103_v5  }
 0xe29   : > { %6120 = vset.pattern.permute.xlu1 %v6235_v23 }
 0xe2a   : > { %3300 = vperm.xlu1 %6120, %v6996_v59  }
 0xe2c   : > { %6123 = vset.pattern.permute.xlu0 %v6233_v28 }
 0xe2e   : > { %3310 = vperm.xlu1 %6120, %v7005_v18  }
 0xe32   : > { %3315 = vperm.xlu1 %6120, %v7010_v56  }
 0xe36   : > { %6122 = vset.pattern.permute.xlu1 %v6233_v28 }
 0xe89   : > { %v3164_v8 = vpop.permute.xlu0 %3163 }
 0xe8a   : > { %3176 = vst.msk [vmem:[#allocation2] sm:$0xff] %vm3175_vm2, %v3164_v8 }
 0xe8b   : > { %v3166_v32 = vpop.permute.xlu1 %3165 }
 0xe8c   : > { %3177 = vst.msk [vmem:[#allocation2 + $0x10] sm:$0xff] %vm3175_vm2, %v3166_v32 }
 0xe8d   : > { %v3168_v35 = vpop.permute.xlu0 %3167 }
 0xe8e   : > { %3178 = vst.msk [vmem:[#allocation2 + $0x20] sm:$0xff] %vm3175_vm2, %v3168_v35 }
 0xe8f   : > { %v3170_v5 = vpop.permute.xlu1 %3169 }
 0xe90   : > { %3179 = vst.msk [vmem:[#allocation2 + $0x30] sm:$0xff] %vm3175_vm2, %v3170_v5  ;;  %vm8044_vm2 = vcmask 392448  }
 0xe91   : > { %v3180_v23 = vld [vmem:[#allocation2] sm:$0xff] }
 0xe93   : > { %v3181_v43 = vld [vmem:[#allocation2 + $0x10] sm:$0xff] }
 0xe94   : > { %v3196_v59 = vpack.c.bf16 %v3181_v43, %v3180_v23 }
 0xe95   : > { %v3182_v6 = vld [vmem:[#allocation2 + $0x20] sm:$0xff] }
 0xe96   : > { %5942 = vmatprep.mubr.msk.bf16.mxu0 %vm2501_vm12, %v3196_v59 }
 0xe97   : > { %v3183_v18 = vld [vmem:[#allocation2 + $0x30] sm:$0xff] }
 0xe98   : > { %v3197_v54 = vpack.c.bf16 %v3183_v18, %v3182_v6 }
 0xe9a   : > { %5943 = vmatmul.mubr.msk.bf16.vlgmr.msra.gmra.mrb[40].mxu0 %vm2501_vm12, %v3197_v54  ;;  %v6188_v54 = vld [vmem:[%s8006_s1 + $0x160] sm:$0xff]  }
 0xe9b   : > { %5950 = vmatprep.subr.bf16.mxu1 %v6188_v54 }
 0xe9c   : > { %5951 = vmatpush3.bf16.msra.mxu1 %v6188_v54 }
 0xe9e   : > { %v3376_v40 = vpop.permute.xlu0 %3375 }
 0xea0   : > { %v3380_v28 = vpop.permute.xlu1 %3379 }
 0xea2   : > { %v3388_v12 = vpop.permute.xlu0 %3387 }
 0xea4   : > { %v3384_v56 = vpop.permute.xlu1 %3383 }
 0xea7   : > { %v3306_v1 = vpop.permute.xlu0 %3305 }
 0xea9   : > { %v3301_v0 = vpop.permute.xlu1 %3300 }
 0xead   : > { %v3311_v13 = vpop.permute.xlu1 %3310 }
 0xeb1   : > { %v3316_v60 = vpop.permute.xlu1 %3315 }
 0xf6d   : > { %v5944_v20 = vpop.f32.mrb[40].mxu0 }
 0xf6e   : > { %v3288_v10 = vadd.f32 %v5944_v20, %v5513_v15  ;;  %v3279_v3 = vpop.f32.mrb[41].mxu0 }
 0xf6f   : > { %v3280_v61 = vadd.f32 %v5513_v15, %v3279_v3  ;;  %v5945_v42 = vpop.f32.mrb[42].mxu0  ;;  %v6190_v3 = vld [vmem:[%s8006_s1 + $0x170] sm:$0xff]  }
 0xf70   : > { %v3392_v41 = vmul.f32 %v3384_v56, %v3288_v10  ;;  %v3320_v31 = vmul.f32 %v3311_v13, %v3288_v10  ;;  %v3291_v63 = vadd.f32 %v5945_v42, %v5513_v15  ;;  %v3282_v50 = vpop.f32.mrb[43].mxu0  ;;  %v3350_v29 = vrot.slane %v3288_v10, 7  ;;  %v6191_v42 = vld [vmem:[%s8006_s1 + $0x178] sm:$0xff]  }
 0xf71   : > { %v3318_v62 = vmul.f32 %v3301_v0, %v3280_v61  ;;  %v3283_v11 = vadd.f32 %v5513_v15, %v3282_v50  ;;  %v3347_v19 = vrot.slane %v3280_v61, 7  ;;  %v6189_v15 = vld [vmem:[%s8006_s1 + $0x168] sm:$0xff]   ;;  %v3390_v10 = vmul.f32 %v3376_v40, %v3280_v61 }
 0xf72   : > { %v3352_v8 = vrot.slane %v3291_v63, 7  ;;  %v3321_v32 = vmul.f32 %v3316_v60, %v3291_v63  ;;  %3402 = vrot.lane.b32.xlu0 %v3392_v41, %s6237_s19  ;;  %v3329_v59 = vrot.slane %v3320_v31, 6  ;;  %5952 = vmatprep.subr.bf16.mxu1 %v6189_v15  ;;  %v3393_v40 = vmul.f32 %v3388_v12, %v3291_v63 }
 0xf73   : > { %v3326_v35 = vrot.slane %v3318_v62, 6  ;;  %v3348_v5 = vrot.slane %v3283_v11, 7  ;;  %v3391_v23 = vmul.f32 %v3380_v28, %v3283_v11  ;;  %v3319_v43 = vmul.f32 %v3306_v1, %v3283_v11  ;;  %5953 = vmatpush3.bf16.msra.mxu1 %v6189_v15 }
 0xf74   : > { %v3331_v6 = vrot.slane %v3321_v32, 6  ;;  %v3353_v18 = vsel %vm444_vm0, %v3350_v29, %v3352_v8  ;;  %5954 = vmatprep.subr.bf16.mxu1 %v6190_v3 }
 0xf75   : > { %3338 = vst.msk [vmem:[#allocation2] sm:$0xfc] %vm2333_vm1, %v3326_v35  ;;  %v3327_v56 = vrot.slane %v3319_v43, 6  ;;  %3400 = vrot.lane.b32.xlu1 %v3391_v23, %s6237_s19  ;;  %v3349_v0 = vsel %vm444_vm0, %v3347_v19, %v3348_v5  ;;  %v3351_v13 = vsel %vm444_vm0, %v3348_v5, %v3350_v29  ;;  %vm8036_vm1 = vcmask 778752  }
 0xf76   : > { %v3332_v28 = vsel %vm364_vm3, %v3329_v59, %v3331_v6  ;;  %3342 = vst.msk [vmem:[#allocation2 + $0x40] sm:$0x3] %vm2339_vm6, %v3331_v6  ;;  %3354 = vrot.lane.b32.xlu0 %v3347_v19, %s6234_s15 }
 0xf77   : > { %3341 = vst.msk [vmem:[#allocation2 + $0x30] sm:$0xff] %vm2335_vm14, %v3332_v28  ;;  %v3328_v24 = vsel %vm364_vm3, %v3326_v35, %v3327_v56  ;;  %v3330_v20 = vsel %vm364_vm3, %v3327_v56, %v3329_v59  ;;  %5955 = vmatpush3.bf16.msra.mxu1 %v6190_v3 }
 0xf78   : > { %3339 = vst.msk [vmem:[#allocation2 + $0x10] sm:$0xff] %vm2335_vm14, %v3328_v24  ;;  %3340 = vst.msk [vmem:[#allocation2 + $0x20] sm:$0xff] %vm2335_vm14, %v3330_v20  ;;  %5956 = vmatprep.subr.bf16.mxu1 %v6191_v42 }
 0xf79   : > { %3356 = vrot.lane.b32.xlu1 %v3349_v0, %s6234_s15 }
 0xf7a   : > { %3398 = vrot.lane.b32.xlu0 %v3390_v10, %s6237_s19 }
 0xf7b   : > { %5957 = vmatpush3.bf16.msra.mxu1 %v6191_v42 }
 0xf7d   : > { %3358 = vrot.lane.b32.xlu1 %v3351_v13, %s6234_s15 }
 0xf7e   : > { %3360 = vrot.lane.b32.xlu0 %v3353_v18, %s6234_s15 }
 0xf81   : > { %3404 = vrot.lane.b32.xlu1 %v3393_v40, %s6237_s19 }
 0xf82   : > { %3362 = vrot.lane.b32.xlu0 %v3352_v8, %s6234_s15 }
 0xfe4   : > { %v3403_v61 = vpop.permute.xlu0 %3402 }
 0xfe7   : > { %v3401_v60 = vpop.permute.xlu1 %3400 }
 0xfe8   : > { %v3355_v41 = vpop.permute.xlu0 %3354 }
 0xfe9   : > { %3369 = vst.msk [vmem:[#allocation2] sm:$0xfe] %vm2367_vm4, %v3355_v41  ;;  %vm8035_vm4 = vcmask 516352   ;;  %v6194_v41 = vld [vmem:[%s8008_s3 + $0xa0] sm:$0xff]  }
 0xfeb   : > { %v3357_v31 = vpop.permute.xlu1 %3356 }
 0xfec   : > { %3370 = vst.msk [vmem:[#allocation2 + $0x10] sm:$0xff] %vm2369_vm15, %v3357_v31  ;;  %v3399_v50 = vpop.permute.xlu0 %3398  ;;  %v6195_v31 = vld [vmem:[%s8008_s3 + $0xa8] sm:$0x3f]  }
 0xfed   : > { %3411 = vst.msk [vmem:[#allocation2 + $0x10] sm:$0xff] %vm2411_vm11, %v3401_v60  ;;  %3410 = vst.msk [vmem:[#allocation2] sm:$0xff] %vm2411_vm11, %v3399_v50  ;;  %v6193_v60 = vld [vmem:[%s8008_s3 + $0x98] sm:$0xff]   ;;  %v6196_v50 = vld [vmem:[%s8006_s1 + $0x180] sm:$0xff]  }
 0xfee   : > { %3414 = vst.msk [vmem:[#allocation2 + $0x1] sm:$0x1] %vm8034_vm8, %v6230_v58  ;;  %vm8045_vm8 = vcmask 122880  }
 0xfef   : > { %v3359_v12 = vpop.permute.xlu1 %3358 }
 0xff0   : > { %3371 = vst.msk [vmem:[#allocation2 + $0x20] sm:$0xff] %vm2369_vm15, %v3359_v12  ;;  %v3361_v63 = vpop.permute.xlu0 %3360  ;;  %v6197_v12 = vld [vmem:[%s8006_s1 + $0x188] sm:$0xff]  }
 0xff1   : > { %3412 = vst.msk [vmem:[#allocation2 + $0x20] sm:$0xff] %vm2411_vm11, %v3403_v61 }
 0xff2   : > { %3372 = vst.msk [vmem:[#allocation2 + $0x30] sm:$0xff] %vm2369_vm15, %v3361_v63  ;;  %v6198_v63 = vld [vmem:[%s8006_s1 + $0x190] sm:$0xff]   ;;  %vm3704_vm15 = vcmask 392320  }
 0xff3   : > { %v3405_v1 = vpop.permute.xlu1 %3404 }
 0xff4   : > { %3413 = vst.msk [vmem:[#allocation2 + $0x30] sm:$0xff] %vm2411_vm11, %v3405_v1  ;;  %v3363_v57 = vpop.permute.xlu0 %3362  ;;  %v3417_v62 = vld [vmem:[#allocation2 + $0x10] sm:$0xff]  ;;  %vm3712_vm11 = vcmask 388224  }
 0xff5   : > { %3373 = vst.msk [vmem:[#allocation2 + $0x40] sm:$0x1] %vm8035_vm4, %v3363_v57  ;;  %v3416_v11 = vld [vmem:[#allocation2] sm:$0xfe]  ;;  %vm8046_vm4 = vcmask 261248  }
 0xff6   : > { %3664 = vst.msk [vmem:[#allocation2 + $0x10] sm:$0xff] %vm1605_vm7, %v1909_v47  ;;  %v3433_v29 = vpack.c.bf16 %v3417_v62, %v3416_v11  ;;  %3663 = vst.msk [vmem:[#allocation2] sm:$0xff] %vm1605_vm7, %v1908_v16 }
 0xff7   : > { %3415 = vst.msk [vmem:[#allocation2 + $0x40] sm:$0x1] %vm8036_vm1, %v6230_v58  ;;  %vm8047_vm1 = vmmov %vm8044_vm2 }
 0xff8   : > { %v3418_v19 = vld [vmem:[#allocation2 + $0x20] sm:$0xff]  ;;  %v3444_v8 = vshll.u32 %v3433_v29, 16  ;;  %v3442_v47 = vshrl.u32 %v3433_v29, 16 }
 0xff9   : > { %3665 = vst.msk [vmem:[#allocation2 + $0x20] sm:$0xff] %vm1605_vm7, %v1910_v30 }
 0xffa   : > { %v3446_v5 = vrot.slane %v3444_v8, 1 }
 0xffb   : > { %v3419_v32 = vld [vmem:[#allocation2 + $0x30] sm:$0xff] }
 0xffc   : > { %v3434_v35 = vpack.c.bf16 %v3419_v32, %v3418_v19  ;;  %3666 = vst.msk [vmem:[#allocation2 + $0x30] sm:$0xff] %vm1605_vm7, %v1911_v7  ;;  %v3447_v46 = vor.u32 %v3446_v5, %v3442_v47  ;;  %v6192_v7 = vld [vmem:[%s8008_s3 + $0x90] sm:$0xff]   ;;  %v7428_v5 = vld [vmem:[%s8009_s4 + $0x8] sm:$0xff]  ;;  %v7440_v47 = vld [vmem:[%s8009_s4 + $0x20] sm:$0xff] }
 0xffd   : > { %5966 = vmatprep.mubr.msk.bf16.mxu0 %vm2335_vm14, %v6192_v7 }
 0xffe   : > { %v3420_v51 = vld [vmem:[#allocation2 + $0x40] sm:$0x1]  ;;  %v3449_v23 = vshll.u32 %v3434_v35, 16  ;;  %v3453_v44 = vshrl.u32 %v3434_v35, 16 }
 0xfff   : > { %v3435_v43 = vpack.c.bf16 %v3420_v51, %v3420_v51  ;;  %3667 = vst.msk [vmem:[#allocation2 + $0x40] sm:$0xff] %vm1605_vm7, %v1912_v17  ;;  %v7422_v35 = vld [vmem:[%s8009_s4] sm:$0xff]  ;;  %v7434_v51 = vld [vmem:[%s8009_s4 + $0x10] sm:$0xff] }
0x1000   : > { %v3451_v16 = vrot.slane %v3449_v23, 1  ;;  %v7446_v23 = vld [vmem:[%s8009_s4 + $0x18] sm:$0xff] }
0x1001   : > { %v3457_v59 = vshll.u32 %v3435_v43, 16  ;;  %v7452_v43 = vld [vmem:[%s8009_s4 + $0x30] sm:$0xff] }
0x1002   : > { %v3452_v30 = vsel %vm727_vm10, %v3447_v46, %v3451_v16  ;;  %v3455_v6 = vor.u32 %v3453_v44, %v3451_v16  ;;  %v7458_v46 = vld [vmem:[%s8009_s4 + $0x28] sm:$0xff]  ;;  %v3839_v16 = vld [vmem:[%s8009_s4 + $0x38] sm:$0xf] }
0x1003   : > { %v3459_v18 = vrot.slane %v3457_v59, 1  ;;  %5958 = vmatprep.mubr.msk.bf16.mxu1 %vm2501_vm12, %v3452_v30 }
0x1005   : > { %v3460_v21 = vsel %vm727_vm10, %v3455_v6, %v3459_v18 }
0x1006   : > { %5959 = vmatmul.mubr.msk.bf16.vlgmr.msra.gmra.mrb[44].mxu1 %vm2501_vm12, %v3460_v21 }
0x10d9   : > { %v5960_v17 = vpop.f32.mrb[44].mxu1 }
0x10da   : > { %v3546_v54 = vadd.f32 %v5960_v17, %v5522_v4  ;;  %v3537_v56 = vpop.f32.mrb[45].mxu1 }
0x10db   : > { %v3538_v0 = vadd.f32 %v5522_v4, %v3537_v56  ;;  %v5961_v13 = vpop.f32.mrb[46].mxu1 }
0x10dc   : > { %v3549_v28 = vadd.f32 %v5961_v13, %v5522_v4  ;;  %v3540_v15 = vpop.f32.mrb[47].mxu1  ;;  %v3554_v20 = vmax.f32 %v3546_v54, 0.0 }
0x10dd   : > { %v3541_v24 = vadd.f32 %v5522_v4, %v3540_v15  ;;  %v3552_v3 = vmax.f32 %v3538_v0, 0.0 }
0x10de   : > { %v3555_v10 = vmax.f32 %v3549_v28, 0.0 }
0x10df   : > { %v3553_v42 = vmax.f32 %v3541_v24, 0.0 }
0x10e0   : > { %v3565_v40 = vpack.c.bf16 %v3555_v10, %v3554_v20 }
0x10e1   : > { %v3564_v61 = vpack.c.bf16 %v3553_v42, %v3552_v3 }
0x10e3   : > { %5962 = vmatprep.subr.bf16.mxu0 %v3564_v61 }
0x10e4   : > { %5963 = vmatpush3.bf16.msra.mxu0 %v3564_v61 }
0x10e5   : > { %5964 = vmatprep.subr.bf16.mxu0 %v3565_v40 }
0x10e8   : > { %5965 = vmatpush3.bf16.msra.mxu0 %v3565_v40 }
0x10e9   : > { %5974 = vmatprep.subr.bf16.mxu0 %v6196_v50 }
0x10eb   : > { %5967 = vmatmul.mubr.msk.bf16.vlgmr.msra.gmra.mrb[44].mxu0 %vm2335_vm14, %v6193_v60 }
0x10ec   : > { %5970 = vmatprep.mubr.msk.bf16.mxu0 %vm2335_vm14, %v6194_v41  ;;  %5975 = vmatpush3.bf16.msra.mxu0 %v6196_v50 }
0x10ed   : > { %5976 = vmatprep.subr.bf16.mxu0 %v6197_v12 }
0x10f0   : > { %5977 = vmatpush3.bf16.msra.mxu0 %v6197_v12 }
0x10f1   : > { %5978 = vmatprep.subr.bf16.mxu0 %v6198_v63 }
0x10f3   : > { %5971 = vmatmul.mubr.msk.bf16.gmra.mrb[48].mxu0 %vm2335_vm14, %v6195_v31  ;;  %vm8037_vm14 = vcmask 392192  }
0x10f4   : > { %5979 = vmatpush3.bf16.msra.mxu0 %v6198_v63  ;;  %vm8038_vm12 = vmmov %vm8037_vm14 }
0x10f5   : > { %vm8039_vm6 = vmmov %vm8038_vm12 }
0x10f6   : > { %vm8040_vm5 = vmmov %vm8039_vm6 }
0x11be   : > { %v5968_v1 = vpop.f32.mrb[44].mxu0 }
0x11bf   : > { %v3632_v57 = vpop.f32.mrb[45].mxu0 }
0x11c0   : > { %3680 = vrot.lane.b32.xlu1 %v3632_v57, %s6232_s27  ;;  %v5969_v62 = vpop.f32.mrb[46].mxu0 }
0x11c1   : > { %v3635_v11 = vpop.f32.mrb[47].mxu0 }
0x11c2   : > { %3682 = vrot.lane.b32.xlu0 %v3635_v11, %s6232_s27 }
0x11c4   : > { %3684 = vrot.lane.b32.xlu1 %v5968_v1, %s6232_s27 }
0x11c6   : > { %3686 = vrot.lane.b32.xlu0 %v5969_v62, %s6232_s27  ;;  %v5972_v29 = vpop.f32.mrb[48].mxu0  ;;  %v5539_v62 = vld [vmem:[%s8007_s2 + $0x9] ss:$0 sm:$0xff] }
0x11c7   : > { %v3648_v19 = vpop.f32.mrb[49].mxu0 }
0x11c8   : > { %v5973_v8 = vpop.f32.mrb[50].mxu0  ;;  %3688 = vrot.lane.b32.xlu1 %v3648_v19, %s6232_s27 }
0x11c9   : > { %v3651_v32 = vpop.f32.mrb[51].mxu0 }
0x11ca   : > { %3690 = vrot.lane.b32.xlu0 %v3651_v32, %s6232_s27 }
0x11cc   : > { %3692 = vrot.lane.b32.xlu1 %v5972_v29, %s6232_s27 }
0x11ce   : > { %3694 = vrot.lane.b32.xlu0 %v5973_v8, %s6232_s27 }
0x11d0   : > { %3983 = vperm.xlu1 %6122, %v7422_v35  }
0x11d2   : > { %3987 = vperm.xlu0 %6123, %v7428_v5  }
0x11d4   : > { %3991 = vperm.xlu1 %6122, %v7434_v51  }
0x11d6   : > { %3999 = vperm.xlu0 %6123, %v7440_v47  }
0x11d8   : > { %3995 = vperm.xlu1 %6122, %v7446_v23  }
0x11da   : > { %4007 = vperm.xlu0 %6123, %v7452_v43  }
0x11dc   : > { %4003 = vperm.xlu1 %6122, %v7458_v46  }
0x11de   : > { %6124 = vset.pattern.permute.xlu0 %v6231_v14 }
0x11df   : > { %3842 = vperm.xlu0 %6124, %v7422_v35  }
0x11e0   : > { %4011 = vperm.xlu1 %6122, %v3839_v16  }
0x11e3   : > { %3857 = vperm.xlu0 %6124, %v7446_v23  }
0x11e4   : > { %6125 = vset.pattern.permute.xlu1 %v6231_v14 }
0x11e5   : > { %3847 = vperm.xlu1 %6125, %v7428_v5  }
0x11e7   : > { %3867 = vperm.xlu0 %6124, %v7458_v46  }
0x11e9   : > { %3852 = vperm.xlu1 %6125, %v7434_v51  }
0x11eb   : > { %3877 = vperm.xlu0 %6124, %v3839_v16  }
0x11ed   : > { %3862 = vperm.xlu1 %6125, %v7440_v47  }
0x11ef   : > { %6126 = vset.pattern.permute.xlu0 %v6226_v2 }
0x11f1   : > { %3872 = vperm.xlu1 %6125, %v7452_v43  }
0x11f5   : > { %6127 = vset.pattern.permute.xlu1 %v6226_v2 }
0x1232   : > { %v3681_v44 = vpop.permute.xlu1 %3680 }
0x1233   : > { %3705 = vst.msk [vmem:[#allocation2] sm:$0xff] %vm3704_vm15, %v3681_v44 }
0x1234   : > { %v3683_v14 = vpop.permute.xlu0 %3682 }
0x1235   : > { %3706 = vst.msk [vmem:[#allocation2 + $0x10] sm:$0xff] %vm3704_vm15, %v3683_v14 }
0x1236   : > { %v3685_v59 = vpop.permute.xlu1 %3684 }
0x1237   : > { %3707 = vst.msk [vmem:[#allocation2 + $0x20] sm:$0xff] %vm3704_vm15, %v3685_v59 }
0x1238   : > { %v3687_v30 = vpop.permute.xlu0 %3686 }
0x1239   : > { %3708 = vst.msk [vmem:[#allocation2 + $0x30] sm:$0xff] %vm3704_vm15, %v3687_v30 }
0x123a   : > { %v3689_v6 = vpop.permute.xlu1 %3688  ;;  %v3714_v21 = vld [vmem:[#allocation2] sm:$0xff] }
0x123b   : > { %3709 = vst.msk [vmem:[#allocation2 + $0x40] sm:$0xff] %vm3704_vm15, %v3689_v6 }
0x123c   : > { %v3691_v18 = vpop.permute.xlu0 %3690  ;;  %v3715_v7 = vld [vmem:[#allocation2 + $0x10] sm:$0xff] }
0x123d   : > { %3710 = vst.msk [vmem:[#allocation2 + $0x50] sm:$0xff] %vm3704_vm15, %v3691_v18  ;;  %v3728_v4 = vpack.c.bf16 %v3715_v7, %v3714_v21 }
0x123e   : > { %v3693_v17 = vpop.permute.xlu1 %3692  ;;  %v3716_v56 = vld [vmem:[#allocation2 + $0x20] sm:$0xff] }
0x123f   : > { %5980 = vmatprep.mubr.msk.bf16.mxu0 %vm8037_vm14, %v3728_v4  ;;  %3711 = vst.msk [vmem:[#allocation2 + $0x60] sm:$0xff] %vm3704_vm15, %v3693_v17  ;;  %vm8048_vm15 = vmmov %vm8046_vm4 }
0x1240   : > { %v3695_v54 = vpop.permute.xlu0 %3694  ;;  %v3717_v0 = vld [vmem:[#allocation2 + $0x30] sm:$0xff]  ;;  %vm8050_vm14 = vmmov %vm8046_vm4 }
0x1241   : > { %3713 = vst.msk [vmem:[#allocation2 + $0x70] sm:$0xf] %vm3712_vm11, %v3695_v54  ;;  %v3729_v13 = vpack.c.bf16 %v3717_v0, %v3716_v56  ;;  %vm8049_vm11 = vmmov %vm8047_vm1 }
0x1242   : > { %v3718_v28 = vld [vmem:[#allocation2 + $0x40] sm:$0xff] }
0x1243   : > { %5981 = vmatmul.mubr.msk.bf16.vlgmr.msra.gmra.mrb[52].mxu0 %vm8038_vm12, %v3729_v13  ;;  %vm8051_vm12 = vmmov %vm8047_vm1 }
0x1244   : > { %v3719_v15 = vld [vmem:[#allocation2 + $0x50] sm:$0xff] }
0x1245   : > { %v3730_v24 = vpack.c.bf16 %v3719_v15, %v3718_v28 }
0x1246   : > { %v3720_v20 = vld [vmem:[#allocation2 + $0x60] sm:$0xff] }
0x1247   : > { %5984 = vmatprep.mubr.msk.bf16.mxu0 %vm8039_vm6, %v3730_v24  ;;  %vm8052_vm6 = vcmask 64512  }
0x1248   : > { %v3721_v10 = vld [vmem:[#allocation2 + $0x70] sm:$0xf] }
0x1249   : > { %v3731_v3 = vpack.c.bf16 %v3721_v10, %v3720_v20 }
0x124b   : > { %5985 = vmatmul.mubr.msk.bf16.gmra.mrb[56].mxu0 %vm8040_vm5, %v3731_v3  ;;  %vm8053_vm5 = vmmov %vm8052_vm6 }
0x124f   : > { %v3984_v42 = vpop.permute.xlu1 %3983 }
0x1251   : > { %v3988_v60 = vpop.permute.xlu0 %3987 }
0x1253   : > { %v3992_v40 = vpop.permute.xlu1 %3991 }
0x1255   : > { %v7489_v31 = vpop.permute.xlu0 %3999 }
0x1257   : > { %v3996_v61 = vpop.permute.xlu1 %3995 }
0x1259   : > { %v7493_v12 = vpop.permute.xlu0 %4007 }
0x125b   : > { %v7487_v41 = vpop.permute.xlu1 %4003 }
0x125e   : > { %v3843_v1 = vpop.permute.xlu0 %3842 }
0x125f   : > { %v7491_v50 = vpop.permute.xlu1 %4011 }
0x1262   : > { %v3858_v11 = vpop.permute.xlu0 %3857 }
0x1264   : > { %v3848_v63 = vpop.permute.xlu1 %3847 }
0x1266   : > { %v3868_v7 = vpop.permute.xlu0 %3867 }
0x1268   : > { %v3853_v57 = vpop.permute.xlu1 %3852 }
0x126c   : > { %v3863_v44 = vpop.permute.xlu1 %3862 }
0x1316   : > { %v5982_v29 = vpop.f32.mrb[52].mxu0 }
0x1317   : > { %v3810_v19 = vadd.f32 %v5982_v29, %v5539_v62  ;;  %v3801_v8 = vpop.f32.mrb[53].mxu0 }
0x1318   : > { %v3802_v32 = vadd.f32 %v5539_v62, %v3801_v8  ;;  %v5983_v16 = vpop.f32.mrb[54].mxu0 }
0x1319   : > { %v4016_v14 = vmul.f32 %v3992_v40, %v3810_v19  ;;  %v3882_v59 = vmul.f32 %v3853_v57, %v3810_v19  ;;  %v3813_v30 = vadd.f32 %v5983_v16, %v5539_v62  ;;  %v3804_v6 = vpop.f32.mrb[55].mxu0  ;;  %v3938_v4 = vrot.slane %v3810_v19, 7 }
0x131a   : > { %v3880_v18 = vmul.f32 %v3843_v1, %v3802_v32  ;;  %v3805_v21 = vadd.f32 %v5539_v62, %v3804_v6  ;;  %v3935_v13 = vrot.slane %v3802_v32, 7  ;;  %v3873_v1 = vpop.permute.xlu1 %3872  ;;  %v4014_v6 = vmul.f32 %v3984_v42, %v3802_v32 }
0x131b   : > { %v3940_v17 = vrot.slane %v3813_v30, 7  ;;  %v4017_v54 = vmul.f32 %v3996_v61, %v3813_v30  ;;  %v3883_v56 = vmul.f32 %v3858_v11, %v3813_v30  ;;  %4034 = vrot.lane.b32.xlu1 %v4016_v14, %s6234_s15  ;;  %v3899_v24 = vrot.slane %v3882_v59, 6  ;;  %v3878_v14 = vpop.permute.xlu0 %3877 }
0x131c   : > { %v3896_v0 = vrot.slane %v3880_v18, 6  ;;  %v3881_v28 = vmul.f32 %v3848_v63, %v3805_v21  ;;  %v3936_v15 = vrot.slane %v3805_v21, 7  ;;  %v4015_v11 = vmul.f32 %v3988_v60, %v3805_v21 }
0x131d   : > { %v3901_v20 = vrot.slane %v3883_v56, 6  ;;  %4036 = vrot.lane.b32.xlu0 %v4017_v54, %s6234_s15  ;;  %v3941_v10 = vsel %vm444_vm0, %v3938_v4, %v3940_v17 }
0x131e   : > { %3919 = vst.msk [vmem:[#allocation2] sm:$0xfc] %vm8041_vm13, %v3896_v0  ;;  %v3897_v3 = vrot.slane %v3881_v28, 6  ;;  %v5986_v40 = vpop.f32.mrb[56].mxu0  ;;  %v3937_v61 = vsel %vm444_vm0, %v3935_v13, %v3936_v15  ;;  %v3939_v57 = vsel %vm444_vm0, %v3936_v15, %v3938_v4  ;;  %vm8054_vm13 = vmmov %vm8046_vm4 }
0x131f   : > { %v3902_v29 = vsel %vm364_vm3, %v3899_v24, %v3901_v20  ;;  %v3826_v63 = vadd.f32 %v5986_v40, %v5539_v62  ;;  %v3817_v19 = vpop.f32.mrb[57].mxu0  ;;  %3950 = vrot.lane.b32.xlu1 %v3935_v13, %s6232_s27 }
0x1320   : > { %3922 = vst.msk [vmem:[#allocation2 + $0x30] sm:$0xff] %vm1605_vm7, %v3902_v29  ;;  %v3818_v8 = vadd.f32 %v5539_v62, %v3817_v19  ;;  %v5987_v16 = vpop.f32.mrb[58].mxu0  ;;  %v3898_v59 = vsel %vm364_vm3, %v3896_v0, %v3897_v3  ;;  %v3900_v30 = vsel %vm364_vm3, %v3897_v3, %v3899_v24 }
0x1321   : > { %v3829_v18 = vadd.f32 %v5987_v16, %v5539_v62  ;;  %v3820_v54 = vpop.f32.mrb[59].mxu0  ;;  %4032 = vrot.lane.b32.xlu0 %v4015_v11, %s6234_s15  ;;  %v3886_v60 = vmul.f32 %v3873_v1, %v3826_v63  ;;  %3920 = vst.msk [vmem:[#allocation2 + $0x10] sm:$0xff] %vm1605_vm7, %v3898_v59  ;;  %3921 = vst.msk [vmem:[#allocation2 + $0x20] sm:$0xff] %vm1605_vm7, %v3900_v30  ;;  %v3946_v13 = vrot.slane %v3826_v63, 7  ;;  %v6200_v16 = vld [vmem:[%s8006_s1 + $0x1a8] sm:$0xff]  }
0x1322   : > { %v3942_v21 = vrot.slane %v3818_v8, 7  ;;  %v3884_v4 = vmul.f32 %v3863_v44, %v3818_v8  ;;  %v3821_v56 = vadd.f32 %v5539_v62, %v3820_v54  ;;  %v4018_v19 = vmul.f32 %v7489_v31, %v3818_v8  ;;  %v6201_v31 = vld [vmem:[%s8006_s1 + $0x1b0] sm:$0xff]  }
0x1323   : > { %v3948_v28 = vrot.slane %v3829_v18, 7  ;;  %4030 = vrot.lane.b32.xlu1 %v4014_v6, %s6234_s15  ;;  %v3887_v0 = vmul.f32 %v3878_v14, %v3829_v18  ;;  %v3907_v32 = vrot.slane %v3886_v60, 6 }
0x1324   : > { %v3903_v15 = vrot.slane %v3884_v4, 6  ;;  %v3885_v24 = vmul.f32 %v3868_v7, %v3821_v56  ;;  %v3944_v42 = vrot.slane %v3821_v56, 7  ;;  %v3943_v40 = vsel %vm444_vm0, %v3940_v17, %v3942_v21 }
0x1325   : > { %v3909_v3 = vrot.slane %v3887_v0, 6  ;;  %3952 = vrot.lane.b32.xlu0 %v3937_v61, %s6232_s27  ;;  %v3949_v1 = vsel %vm444_vm0, %v3946_v13, %v3948_v28  ;;  %v6199_v61 = vld [vmem:[%s8006_s1 + $0x1a0] sm:$0xff]  }
0x1326   : > { %v3904_v11 = vsel %vm364_vm3, %v3901_v20, %v3903_v15  ;;  %v3905_v44 = vrot.slane %v3885_v24, 6  ;;  %v3945_v62 = vsel %vm444_vm0, %v3942_v21, %v3944_v42  ;;  %v3947_v29 = vsel %vm444_vm0, %v3944_v42, %v3946_v13  ;;  %5988 = vmatprep.subr.bf16.mxu1 %v6199_v61 }
0x1327   : > { %3923 = vst.msk [vmem:[#allocation2 + $0x40] sm:$0xff] %vm1605_vm7, %v3904_v11  ;;  %v3910_v7 = vsel %vm364_vm3, %v3907_v32, %v3909_v3  ;;  %3956 = vrot.lane.b32.xlu1 %v3941_v10, %s6232_s27  ;;  %5989 = vmatpush3.bf16.msra.mxu1 %v6199_v61  ;;  %v4019_v10 = vmul.f32 %v7487_v41, %v3821_v56 }
0x1328   : > { %v3908_v17 = vsel %vm364_vm3, %v3905_v44, %v3907_v32  ;;  %3926 = vst.msk [vmem:[#allocation2 + $0x70] sm:$0x3f] %vm8042_vm9, %v3910_v7  ;;  %v3906_v20 = vsel %vm364_vm3, %v3903_v15, %v3905_v44  ;;  %5990 = vmatprep.subr.bf16.mxu1 %v6200_v16  ;;  %v4020_v41 = vmul.f32 %v7493_v12, %v3826_v63  ;;  %vm8055_vm9 = vmmov %vm8047_vm1 }
0x1329   : > { %3925 = vst.msk [vmem:[#allocation2 + $0x60] sm:$0xff] %vm1605_vm7, %v3908_v17  ;;  %3954 = vrot.lane.b32.xlu0 %v3939_v57, %s6232_s27  ;;  %3924 = vst.msk [vmem:[#allocation2 + $0x50] sm:$0xff] %vm1605_vm7, %v3906_v20  ;;  %v4021_v57 = vmul.f32 %v7491_v50, %v3829_v18  ;;  %vm8043_vm7 = vcmask 261249  }
0x132b   : > { %4038 = vrot.lane.b32.xlu1 %v4018_v19, %s6234_s15  ;;  %5991 = vmatpush3.bf16.msra.mxu1 %v6200_v16 }
0x132c   : > { %5992 = vmatprep.subr.bf16.mxu1 %v6201_v31 }
0x132d   : > { %4040 = vrot.lane.b32.xlu0 %v4019_v10, %s6234_s15 }
0x132f   : > { %3958 = vrot.lane.b32.xlu1 %v3943_v40, %s6232_s27  ;;  %5993 = vmatpush3.bf16.msra.mxu1 %v6201_v31 }
0x1331   : > { %3960 = vrot.lane.b32.xlu0 %v3945_v62, %s6232_s27 }
0x1333   : > { %3962 = vrot.lane.b32.xlu1 %v3947_v29, %s6232_s27 }
0x1335   : > { %3964 = vrot.lane.b32.xlu0 %v3949_v1, %s6232_s27 }
0x1337   : > { %4042 = vrot.lane.b32.xlu1 %v4020_v41, %s6234_s15 }
0x1339   : > { %4044 = vrot.lane.b32.xlu0 %v4021_v57, %s6234_s15 }
0x138d   : > { %v4035_v8 = vpop.permute.xlu1 %4034 }
0x138f   : > { %v4037_v14 = vpop.permute.xlu0 %4036 }
0x1391   : > { %v3951_v59 = vpop.permute.xlu1 %3950 }
0x1392   : > { %3974 = vst.msk [vmem:[#allocation2] sm:$0xfe] %vm8043_vm7, %v3951_v59  ;;  %vm8056_vm7 = vmmov %vm8053_vm5 }
0x1393   : > { %v4033_v30 = vpop.permute.xlu0 %4032 }
0x1395   : > { %v4031_v6 = vpop.permute.xlu1 %4030 }
0x1396   : > { %4054 = vst.msk [vmem:[#allocation2] sm:$0xff] %vm8044_vm2, %v4031_v6  ;;  %vm8057_vm2 = vmmov %vm8046_vm4 }
0x1397   : > { %4062 = vst.msk [vmem:[#allocation2 + $0x1] sm:$0x1] %vm8045_vm8, %v6230_v58  ;;  %v3953_v12 = vpop.permute.xlu0 %3952  ;;  %vm8058_vm8 = vmmov %vm8047_vm1 }
0x1398   : > { %3975 = vst.msk [vmem:[#allocation2 + $0x10] sm:$0xff] %vm8046_vm4, %v3953_v12  ;;  %vm8059_vm4 = vmmov %vm8053_vm5 }
0x1399   : > { %4055 = vst.msk [vmem:[#allocation2 + $0x10] sm:$0xff] %vm8047_vm1, %v4033_v30  ;;  %v3957_v50 = vpop.permute.xlu1 %3956  ;;  %vm8060_vm1 = vmmov %vm8057_vm2 }
0x139a   : > { %3977 = vst.msk [vmem:[#allocation2 + $0x30] sm:$0xff] %vm8048_vm15, %v3957_v50  ;;  %vm8061_vm15 = vcmask 258176  }
0x139b   : > { %4057 = vst.msk [vmem:[#allocation2 + $0x30] sm:$0xff] %vm8049_vm11, %v4037_v14  ;;  %v3955_v63 = vpop.permute.xlu0 %3954  ;;  %vm8062_vm11 = vcmask 385280  }
0x139c   : > { %3976 = vst.msk [vmem:[#allocation2 + $0x20] sm:$0xff] %vm8050_vm14, %v3955_v63  ;;  %vm8063_vm14 = vmmov %vm8058_vm8 }
0x139d   : > { %4056 = vst.msk [vmem:[#allocation2 + $0x20] sm:$0xff] %vm8051_vm12, %v4035_v8  ;;  %v4039_v18 = vpop.permute.xlu1 %4038  ;;  %vm8064_vm12 = vmmov %vm8059_vm4 }
0x139e   : > { %v4064_v54 = vld [vmem:[#allocation2] sm:$0xfe] }
0x139f   : > { %v4041_v60 = vpop.permute.xlu0 %4040  ;;  %4401 = vst.msk [vmem:[#allocation2] sm:$0xff] %vm8052_vm6, %v921_v36  ;;  %vm8065_vm6 = vcmask 388352  }
0x13a0   : > { %v4065_v21 = vld [vmem:[#allocation2 + $0x10] sm:$0xff] }
0x13a1   : > { %v3959_v4 = vpop.permute.xlu1 %3958  ;;  %v4078_v56 = vpack.c.bf16 %v4065_v21, %v4064_v54  ;;  %4402 = vst.msk [vmem:[#allocation2 + $0x10] sm:$0xff] %vm8053_vm5, %v922_v38  ;;  %vm8066_vm5 = vcmask 392192  }
0x13a2   : > { %3978 = vst.msk [vmem:[#allocation2 + $0x40] sm:$0xff] %vm8054_vm13, %v3959_v4  ;;  %v4067_v13 = vld [vmem:[#allocation2 + $0x30] sm:$0xff]  ;;  %vm8067_vm13 = vmmov %vm8059_vm4 }
0x13a3   : > { %4058 = vst.msk [vmem:[#allocation2 + $0x40] sm:$0xff] %vm8055_vm9, %v4039_v18  ;;  %v3961_v28 = vpop.permute.xlu0 %3960  ;;  %v4090_v0 = vshll.u32 %v4078_v56, 16  ;;  %v4088_v24 = vshrl.u32 %v4078_v56, 16  ;;  %vm8068_vm9 = vmmov %vm8059_vm4 }
0x13a4   : > { %4404 = vst.msk [vmem:[#allocation2 + $0x30] sm:$0xff] %vm8056_vm7, %v924_v37  ;;  %v4066_v22 = vld [vmem:[#allocation2 + $0x20] sm:$0xff]  ;;  %vm8069_vm7 = vmmov %vm8066_vm5 }
0x13a5   : > { %3979 = vst.msk [vmem:[#allocation2 + $0x50] sm:$0xff] %vm8057_vm2, %v3961_v28  ;;  %v3963_v36 = vpop.permute.xlu1 %3962  ;;  %v4079_v34 = vpack.c.bf16 %v4067_v13, %v4066_v22  ;;  %v4092_v15 = vrot.slane %v4090_v0, 1  ;;  %vm8070_vm2 = vmmov %vm8059_vm4 }
0x13a6   : > { %4059 = vst.msk [vmem:[#allocation2 + $0x50] sm:$0xff] %vm8058_vm8, %v4041_v60  ;;  %vm8071_vm8 = vmmov %vm8066_vm5 }
0x13a7   : > { %4403 = vst.msk [vmem:[#allocation2 + $0x20] sm:$0xff] %vm8059_vm4, %v923_v39  ;;  %v3965_v38 = vpop.permute.xlu0 %3964  ;;  %v4095_v42 = vshll.u32 %v4079_v34, 16  ;;  %v4093_v37 = vor.u32 %v4092_v15, %v4088_v24  ;;  %v4099_v11 = vshrl.u32 %v4079_v34, 16  ;;  %vm8072_vm4 = vmmov %vm8066_vm5 }
0x13a8   : > { %3980 = vst.msk [vmem:[#allocation2 + $0x60] sm:$0xff] %vm8060_vm1, %v3963_v36  ;;  %vm8073_vm1 = vcmask 490496  }
0x13a9   : > { %3981 = vst.msk [vmem:[#allocation2 + $0x70] sm:$0x1f] %vm8061_vm15, %v3965_v38  ;;  %v4043_v25 = vpop.permute.xlu1 %4042  ;;  %v4097_v32 = vrot.slane %v4095_v42, 1  ;;  %vm8074_vm15 = vcmask 1045504  }
0x13aa   : > { %4063 = vst.msk [vmem:[#allocation2 + $0x74] sm:$0x1] %vm8062_vm11, %v6230_v58  ;;  %v4068_v3 = vld [vmem:[#allocation2 + $0x40] sm:$0xff]  ;;  %vm8075_vm11 = vmmov %vm8074_vm15 }
0x13ab   : > { %4060 = vst.msk [vmem:[#allocation2 + $0x60] sm:$0xff] %vm8063_vm14, %v4043_v25  ;;  %v4045_v40 = vpop.permute.xlu0 %4044  ;;  %v4098_v33 = vsel %vm727_vm10, %v4093_v37, %v4097_v32  ;;  %v4101_v62 = vor.u32 %v4099_v11, %v4097_v32  ;;  %v6203_v25 = vld [vmem:[%s8008_s3 + $0xb8] sm:$0xff]   ;;  %v6204_v37 = vld [vmem:[%s8008_s3 + $0xc0] sm:$0xff]   ;;  %vm8076_vm14 = vmmov %vm8073_vm1 }
0x13ac   : > { %4405 = vst.msk [vmem:[#allocation2 + $0x40] sm:$0xff] %vm8064_vm12, %v925_v49  ;;  %5994 = vmatprep.mubr.msk.bf16.mxu1 %vm8066_vm5, %v4098_v33  ;;  %vm8077_vm12 = vmmov %vm8073_vm1  ;;  %v6205_v32 = vld [vmem:[%s8008_s3 + $0xc8] sm:$0xff]   ;;  %v6208_v33 = vld [vmem:[%s8008_s3 + $0xe0] sm:$0xff]  }
0x13ad   : > { %4061 = vst.msk [vmem:[#allocation2 + $0x70] sm:$0xf] %vm8065_vm6, %v4045_v40  ;;  %v4069_v39 = vld [vmem:[#allocation2 + $0x50] sm:$0xff]  ;;  %vm8078_vm6 = vmmov %vm8073_vm1  ;;  %v6207_v40 = vld [vmem:[%s8008_s3 + $0xd8] sm:$0xff]  }
0x13ae   : > { %v4080_v1 = vpack.c.bf16 %v4069_v39, %v4068_v3  ;;  %4406 = vst.msk [vmem:[#allocation2 + $0x50] sm:$0xff] %vm8067_vm13, %v926_v9  ;;  %v6206_v3 = vld [vmem:[%s8008_s3 + $0xd0] sm:$0xff]   ;;  %vm8079_vm5 = vmmov %vm8073_vm1  ;;  %v6209_v39 = vld [vmem:[%s8008_s3 + $0xe8] ss:$0 sps:$4 sm:$0xff]  }
0x13af   : > { %vm8080_vm13 = vmmov %vm8073_vm1  ;;  %v6211_v11 = vld [vmem:[%s8006_s1 + $0x1c8] ss:$0 sps:$4 sm:$0xff]  }
0x13b0   : > { %v4103_v44 = vshll.u32 %v4080_v1, 16  ;;  %v4107_v26 = vshrl.u32 %v4080_v1, 16  ;;  %v6210_v1 = vld [vmem:[%s8006_s1 + $0x1c0] sm:$0xff]  }
0x13b1   : > { %6026 = vmatprep.subr.bf16.mxu1 %v6210_v1 }
0x13b2   : > { %v4105_v29 = vrot.slane %v4103_v44, 1  ;;  %v4070_v7 = vld [vmem:[#allocation2 + $0x60] sm:$0xff] }
0x13b3   : > { %4407 = vst.msk [vmem:[#allocation2 + $0x60] sm:$0xff] %vm8068_vm9, %v927_v53  ;;  %v6202_v53 = vld [vmem:[%s8008_s3 + $0xb0] sm:$0xff]   ;;  %vm8081_vm9 = vmmov %vm8073_vm1 }
0x13b4   : > { %v4106_v45 = vsel %vm727_vm10, %v4101_v62, %v4105_v29  ;;  %v4071_v49 = vld [vmem:[#allocation2 + $0x70] sm:$0x1f]  ;;  %v4109_v17 = vor.u32 %v4107_v26, %v4105_v29  ;;  %6010 = vmatprep.mubr.msk.bf16.mxu0 %vm8073_vm1, %v6202_v53 }
0x13b5   : > { %5995 = vmatmul.mubr.msk.bf16.vlgmr.msra.gmra.mrb[48].mxu1 %vm8069_vm7, %v4106_v45  ;;  %v4081_v61 = vpack.c.bf16 %v4071_v49, %v4070_v7  ;;  %4408 = vst.msk [vmem:[#allocation2 + $0x70] sm:$0xff] %vm8070_vm2, %v928_v52  ;;  %vm8082_vm7 = vmmov %vm8073_vm1  ;;  %vm8083_vm2 = vcmask 1043456   ;;  %vm8085_vm1 = vcmask 195584  }
0x13b6   : > { %6027 = vmatpush3.bf16.msra.mxu1 %v6210_v1 }
0x13b7   : > { %v4111_v9 = vshll.u32 %v4081_v61, 16  ;;  %v4115_v19 = vshrl.u32 %v4081_v61, 16  ;;  %6073 = vmatprep.subr.msk.bf16.mxu1 %vm8083_vm2, %v6211_v11 }
0x13b9   : > { %v4113_v20 = vrot.slane %v4111_v9, 1 }
0x13bb   : > { %v4114_v10 = vsel %vm727_vm10, %v4109_v17, %v4113_v20  ;;  %v4117_v48 = vor.u32 %v4115_v19, %v4113_v20 }
0x13bc   : > { %5998 = vmatprep.mubr.msk.bf16.mxu1 %vm8071_vm8, %v4114_v10  ;;  %vm8084_vm8 = vmmov %vm8083_vm2 }
0x13bd   : > { %5999 = vmatmul.mubr.msk.bf16.gmra.mrb[52].mxu1 %vm8072_vm4, %v4117_v48  ;;  %v4557_v29 = vsel %vm8084_vm8, %v6211_v11, 0  ;;  %vm4476_vm4 = vcmask 195648  }
0x13be   : > { %6029 = vmatpush3.bf16.msra.mxu1 %v4557_v29 }
0x1488   : > { %v5996_v52 = vpop.f32.mrb[48].mxu1 }
0x1489   : > { %v4191_v16 = vadd.f32 %v5996_v52, %v5547_v55  ;;  %v4182_v31 = vpop.f32.mrb[49].mxu1 }
0x148a   : > { %v4183_v41 = vadd.f32 %v5547_v55, %v4182_v31  ;;  %v5997_v57 = vpop.f32.mrb[50].mxu1  ;;  %v4664_v31 = vld [vmem:[%s8009_s4 + $0x48] sm:$0xff] }
0x148b   : > { %v4194_v8 = vadd.f32 %v5997_v57, %v5547_v55  ;;  %v4185_v14 = vpop.f32.mrb[51].mxu1  ;;  %v4215_v30 = vmax.f32 %v4191_v16, 0.0  ;;  %v4662_v16 = vld [vmem:[%s8009_s4 + $0x38] sm:$0xff] }
0x148c   : > { %v4186_v59 = vadd.f32 %v5547_v55, %v4185_v14  ;;  %v4213_v12 = vmax.f32 %v4183_v41, 0.0  ;;  %v4663_v41 = vld [vmem:[%s8009_s4 + $0x40] sm:$0xff]  ;;  %v4666_v57 = vld [vmem:[%s8009_s4 + $0x58] sm:$0xff]  ;;  %v4668_v14 = vld [vmem:[%s8009_s4 + $0x68] sm:$0xff] }
0x148d   : > { %v4216_v6 = vmax.f32 %v4194_v8, 0.0  ;;  %v4665_v8 = vld [vmem:[%s8009_s4 + $0x50] sm:$0xff] }
0x148e   : > { %v4214_v50 = vmax.f32 %v4186_v59, 0.0  ;;  %v4667_v59 = vld [vmem:[%s8009_s4 + $0x60] sm:$0xff] }
0x148f   : > { %v4237_v63 = vpack.c.bf16 %v4216_v6, %v4215_v30  ;;  %v4669_v30 = vld [vmem:[%s8009_s4 + $0x70] sm:$0xff] }
0x1490   : > { %v4236_v18 = vpack.c.bf16 %v4214_v50, %v4213_v12  ;;  %v6000_v54 = vpop.f32.mrb[52].mxu1 }
0x1491   : > { %v4207_v60 = vadd.f32 %v6000_v54, %v5547_v55  ;;  %v4198_v21 = vpop.f32.mrb[53].mxu1 }
0x1492   : > { %v4199_v4 = vadd.f32 %v5547_v55, %v4198_v21  ;;  %v6001_v56 = vpop.f32.mrb[54].mxu1  ;;  %6002 = vmatprep.subr.bf16.mxu0 %v4236_v18 }
0x1493   : > { %v4210_v13 = vadd.f32 %v6001_v56, %v5547_v55  ;;  %v4201_v28 = vpop.f32.mrb[55].mxu1  ;;  %6003 = vmatpush3.bf16.msra.mxu0 %v4236_v18  ;;  %v4219_v22 = vmax.f32 %v4207_v60, 0.0 }
0x1494   : > { %v4202_v0 = vadd.f32 %v5547_v55, %v4201_v28  ;;  %6004 = vmatprep.subr.bf16.mxu0 %v4237_v63  ;;  %v4217_v34 = vmax.f32 %v4199_v4, 0.0 }
0x1495   : > { %v4220_v36 = vmax.f32 %v4210_v13, 0.0 }
0x1496   : > { %v4218_v15 = vmax.f32 %v4202_v0, 0.0 }
0x1497   : > { %v4239_v38 = vpack.c.bf16 %v4220_v36, %v4219_v22  ;;  %6005 = vmatpush3.bf16.msra.mxu0 %v4237_v63 }
0x1498   : > { %v4238_v24 = vpack.c.bf16 %v4218_v15, %v4217_v34 }
0x1499   : > { %v4303_v42 = vsel %vm8075_vm11, %v4239_v38, 0  ;;  %vm8087_vm11 = vmmov %vm8085_vm1 }
0x149a   : > { %6006 = vmatprep.subr.bf16.mxu0 %v4238_v24 }
0x149b   : > { %6007 = vmatpush3.bf16.msra.mxu0 %v4238_v24 }
0x149c   : > { %6072 = vmatprep.subr.msk.bf16.mxu0 %vm8074_vm15, %v4239_v38  ;;  %vm8086_vm15 = vmmov %vm8085_vm1 }
0x149f   : > { %6009 = vmatpush3.bf16.msra.mxu0 %v4303_v42 }
0x14a2   : > { %6011 = vmatmul.mubr.msk.bf16.vlgmr.msra.gmra.mrb[60].mxu0 %vm8076_vm14, %v6203_v25  ;;  %vm8088_vm14 = vmmov %vm8085_vm1 }
0x14a3   : > { %6014 = vmatprep.mubr.msk.bf16.mxu0 %vm8077_vm12, %v6204_v37  ;;  %vm8089_vm12 = vmmov %vm8085_vm1 }
0x14aa   : > { %6015 = vmatmul.mubr.msk.bf16.gmra.mrb[64].mxu0 %vm8078_vm6, %v6205_v32  ;;  %vm8090_vm6 = vmmov %vm8085_vm1 }
0x14ab   : > { %6018 = vmatprep.mubr.msk.bf16.mxu0 %vm8079_vm5, %v6206_v3  ;;  %vm8091_vm5 = vmmov %vm8085_vm1 }
0x14b2   : > { %6019 = vmatmul.mubr.msk.bf16.gmra.mrb[68].mxu0 %vm8080_vm13, %v6207_v40  ;;  %vm8092_vm13 = vmmov %vm8085_vm1 }
0x14b3   : > { %6022 = vmatprep.mubr.msk.bf16.mxu0 %vm8081_vm9, %v6208_v33  ;;  %vm8093_vm9 = vcmask 64514  }
0x14ba   : > { %6023 = vmatmul.mubr.msk.bf16.gmra.mrb[72].mxu0 %vm8082_vm7, %v6209_v39  ;;  %vm8094_vm7 = vcmask 64512  }
0x14bb   : > { %vm8095_vm2 = vmmov %vm8094_vm7 }
0x14bc   : > { %vm8096_vm8 = vmmov %vm8095_vm2 }
0x1575   : > { %v6012_v44 = vpop.f32.mrb[60].mxu0 }
0x1576   : > { %v4339_v62 = vpop.f32.mrb[61].mxu0 }
0x1577   : > { %4431 = vrot.lane.b32.xlu1 %v4339_v62, %s6229_s9  ;;  %v6013_v7 = vpop.f32.mrb[62].mxu0 }
0x1578   : > { %v4342_v45 = vpop.f32.mrb[63].mxu0 }
0x1579   : > { %4433 = vrot.lane.b32.xlu0 %v4342_v45, %s6229_s9 }
0x157b   : > { %4435 = vrot.lane.b32.xlu1 %v6012_v44, %s6229_s9 }
0x157d   : > { %4437 = vrot.lane.b32.xlu0 %v6013_v7, %s6229_s9  ;;  %v6016_v49 = vpop.f32.mrb[64].mxu0 }
0x157e   : > { %v4355_v61 = vpop.f32.mrb[65].mxu0 }
0x157f   : > { %v6017_v26 = vpop.f32.mrb[66].mxu0  ;;  %4439 = vrot.lane.b32.xlu1 %v4355_v61, %s6229_s9 }
0x1580   : > { %v4358_v9 = vpop.f32.mrb[67].mxu0 }
0x1581   : > { %4441 = vrot.lane.b32.xlu0 %v4358_v9, %s6229_s9 }
0x1583   : > { %4443 = vrot.lane.b32.xlu1 %v6016_v49, %s6229_s9 }
0x1585   : > { %4445 = vrot.lane.b32.xlu0 %v6017_v26, %s6229_s9  ;;  %v6020_v17 = vpop.f32.mrb[68].mxu0 }
0x1586   : > { %v4371_v20 = vpop.f32.mrb[69].mxu0 }
0x1587   : > { %v6021_v19 = vpop.f32.mrb[70].mxu0  ;;  %4447 = vrot.lane.b32.xlu1 %v4371_v20, %s6229_s9 }
0x1588   : > { %v4374_v10 = vpop.f32.mrb[71].mxu0 }
0x1589   : > { %4449 = vrot.lane.b32.xlu0 %v4374_v10, %s6229_s9 }
0x158b   : > { %4451 = vrot.lane.b32.xlu1 %v6020_v17, %s6229_s9 }
0x158d   : > { %4453 = vrot.lane.b32.xlu0 %v6021_v19, %s6229_s9  ;;  %v6024_v48 = vpop.f32.mrb[72].mxu0 }
0x158e   : > { %v4387_v53 = vpop.f32.mrb[73].mxu0 }
0x158f   : > { %4455 = vrot.lane.b32.xlu1 %v4387_v53, %s6229_s9  ;;  %v6025_v55 = vpop.f32.mrb[74].mxu0 }
0x1590   : > { %v4390_v52 = vpop.f32.mrb[75].mxu0 }
0x1591   : > { %4457 = vrot.lane.b32.xlu0 %v4390_v52, %s6229_s9 }
0x1593   : > { %4459 = vrot.lane.b32.xlu1 %v6024_v48, %s6229_s9 }
0x1595   : > { %4947 = vperm.xlu0 %6126, %v7422_v35  }
0x1597   : > { %4951 = vperm.xlu1 %6127, %v7428_v5  }
0x1599   : > { %4959 = vperm.xlu0 %6126, %v7446_v23  }
0x159b   : > { %4955 = vperm.xlu1 %6127, %v7434_v51  }
0x159d   : > { %4967 = vperm.xlu0 %6126, %v7458_v46  }
0x159f   : > { %4963 = vperm.xlu1 %6127, %v7440_v47  }
0x15a1   : > { %4975 = vperm.xlu0 %6126, %v4662_v16  }
0x15a3   : > { %4971 = vperm.xlu1 %6127, %v7452_v43  }
0x15a5   : > { %4983 = vperm.xlu0 %6126, %v4664_v31  }
0x15a7   : > { %4979 = vperm.xlu1 %6127, %v4663_v41  }
0x15a9   : > { %4991 = vperm.xlu0 %6126, %v4666_v57  }
0x15ab   : > { %4987 = vperm.xlu1 %6127, %v4665_v8  }
0x15ad   : > { %4999 = vperm.xlu0 %6126, %v4668_v14  }
0x15af   : > { %4995 = vperm.xlu1 %6127, %v4667_v59  }
0x15b1   : > { %6128 = vset.pattern.permute.xlu0 %v6227_v27 }
0x15b2   : > { %4672 = vperm.xlu0 %6128, %v7422_v35  }
0x15b3   : > { %5003 = vperm.xlu1 %6127, %v4669_v30  }
0x15b6   : > { %4687 = vperm.xlu0 %6128, %v7446_v23  }
0x15b7   : > { %6129 = vset.pattern.permute.xlu1 %v6227_v27 }
0x15b8   : > { %4677 = vperm.xlu1 %6129, %v7428_v5  }
0x15ba   : > { %4697 = vperm.xlu0 %6128, %v7458_v46  }
0x15bc   : > { %4682 = vperm.xlu1 %6129, %v7434_v51  }
0x15be   : > { %4707 = vperm.xlu0 %6128, %v4662_v16  }
0x15c0   : > { %4692 = vperm.xlu1 %6129, %v7440_v47  }
0x15c2   : > { %4717 = vperm.xlu0 %6128, %v4664_v31  }
0x15c4   : > { %4702 = vperm.xlu1 %6129, %v7452_v43  }
0x15c6   : > { %4727 = vperm.xlu0 %6128, %v4666_v57  }
0x15c8   : > { %4712 = vperm.xlu1 %6129, %v4663_v41   ;;  %v7751_v41 = vld [vmem:[%s8007_s2 + $0xb] ss:$0 sm:$0xff] }
0x15ca   : > { %4737 = vperm.xlu0 %6128, %v4668_v14  }
0x15cc   : > { %4722 = vperm.xlu1 %6129, %v4665_v8  }
0x15ce   : > { %6130 = vset.pattern.permute.xlu0 %v6226_v2 }
0x15d0   : > { %4732 = vperm.xlu1 %6129, %v4667_v59  }
0x15d4   : > { %4742 = vperm.xlu1 %6129, %v4669_v30  }
0x15e9   : > { %v4432_v27 = vpop.permute.xlu1 %4431 }
0x15ea   : > { %4477 = vst.msk [vmem:[#allocation2] sm:$0xff] %vm4476_vm4, %v4432_v27 }
0x15eb   : > { %v4434_v35 = vpop.permute.xlu0 %4433 }
0x15ec   : > { %4478 = vst.msk [vmem:[#allocation2 + $0x10] sm:$0xff] %vm4476_vm4, %v4434_v35 }
0x15ed   : > { %v4436_v5 = vpop.permute.xlu1 %4435 }
0x15ee   : > { %4479 = vst.msk [vmem:[#allocation2 + $0x20] sm:$0xff] %vm4476_vm4, %v4436_v5 }
0x15ef   : > { %v4438_v51 = vpop.permute.xlu0 %4437 }
0x15f0   : > { %4480 = vst.msk [vmem:[#allocation2 + $0x30] sm:$0xff] %vm4476_vm4, %v4438_v51 }
0x15f1   : > { %v4440_v47 = vpop.permute.xlu1 %4439  ;;  %v4492_v2 = vld [vmem:[#allocation2] sm:$0xff] }
0x15f2   : > { %4481 = vst.msk [vmem:[#allocation2 + $0x40] sm:$0xff] %vm4476_vm4, %v4440_v47 }
0x15f3   : > { %v4442_v23 = vpop.permute.xlu0 %4441  ;;  %v4493_v43 = vld [vmem:[#allocation2 + $0x10] sm:$0xff] }
0x15f4   : > { %4482 = vst.msk [vmem:[#allocation2 + $0x50] sm:$0xff] %vm4476_vm4, %v4442_v23  ;;  %v4510_v46 = vpack.c.bf16 %v4493_v43, %v4492_v2 }
0x15f5   : > { %v4444_v6 = vpop.permute.xlu1 %4443  ;;  %v4494_v50 = vld [vmem:[#allocation2 + $0x20] sm:$0xff] }
0x15f6   : > { %4483 = vst.msk [vmem:[#allocation2 + $0x60] sm:$0xff] %vm4476_vm4, %v4444_v6  ;;  %6030 = vmatprep.mubr.msk.bf16.mxu1 %vm8085_vm1, %v4510_v46  ;;  %vm8098_vm1 = vmmov %vm8095_vm2 }
0x15f7   : > { %v4446_v12 = vpop.permute.xlu0 %4445  ;;  %v4495_v63 = vld [vmem:[#allocation2 + $0x30] sm:$0xff] }
0x15f8   : > { %4484 = vst.msk [vmem:[#allocation2 + $0x70] sm:$0xff] %vm4476_vm4, %v4446_v12  ;;  %v4511_v18 = vpack.c.bf16 %v4495_v63, %v4494_v50 }
0x15f9   : > { %v4448_v54 = vpop.permute.xlu1 %4447  ;;  %v4496_v60 = vld [vmem:[#allocation2 + $0x40] sm:$0xff] }
0x15fa   : > { %6031 = vmatmul.mubr.msk.bf16.vlgmr.msra.gmra.mrb[56].mxu1 %vm8086_vm15, %v4511_v18  ;;  %4485 = vst.msk [vmem:[#allocation2 + $0x80] sm:$0xff] %vm4476_vm4, %v4448_v54  ;;  %vm8099_vm15 = vmmov %vm8098_vm1 }
0x15fb   : > { %v4450_v21 = vpop.permute.xlu0 %4449  ;;  %v4497_v4 = vld [vmem:[#allocation2 + $0x50] sm:$0xff] }
0x15fc   : > { %4486 = vst.msk [vmem:[#allocation2 + $0x90] sm:$0xff] %vm4476_vm4, %v4450_v21  ;;  %v4512_v56 = vpack.c.bf16 %v4497_v4, %v4496_v60 }
0x15fd   : > { %v4452_v13 = vpop.permute.xlu1 %4451  ;;  %v4498_v28 = vld [vmem:[#allocation2 + $0x60] sm:$0xff] }
0x15fe   : > { %4487 = vst.msk [vmem:[#allocation2 + $0xa0] sm:$0xff] %vm4476_vm4, %v4452_v13  ;;  %6034 = vmatprep.mubr.msk.bf16.mxu1 %vm8087_vm11, %v4512_v56  ;;  %vm8100_vm11 = vmmov %vm8098_vm1 }
0x15ff   : > { %v4454_v0 = vpop.permute.xlu0 %4453  ;;  %v4499_v22 = vld [vmem:[#allocation2 + $0x70] sm:$0xff] }
0x1600   : > { %4488 = vst.msk [vmem:[#allocation2 + $0xb0] sm:$0xff] %vm4476_vm4, %v4454_v0  ;;  %v4513_v36 = vpack.c.bf16 %v4499_v22, %v4498_v28 }
0x1601   : > { %v4456_v34 = vpop.permute.xlu1 %4455  ;;  %v4500_v15 = vld [vmem:[#allocation2 + $0x80] sm:$0xff] }
0x1602   : > { %6035 = vmatmul.mubr.msk.bf16.gmra.mrb[60].mxu1 %vm8088_vm14, %v4513_v36  ;;  %4489 = vst.msk [vmem:[#allocation2 + $0xc0] sm:$0xff] %vm4476_vm4, %v4456_v34  ;;  %vm8101_vm14 = vmmov %vm8098_vm1 }
0x1603   : > { %v4458_v38 = vpop.permute.xlu0 %4457  ;;  %v4501_v24 = vld [vmem:[#allocation2 + $0x90] sm:$0xff] }
0x1604   : > { %4490 = vst.msk [vmem:[#allocation2 + $0xd0] sm:$0xff] %vm4476_vm4, %v4458_v38  ;;  %v4514_v42 = vpack.c.bf16 %v4501_v24, %v4500_v15 }
0x1605   : > { %v4460_v25 = vpop.permute.xlu1 %4459  ;;  %v4502_v37 = vld [vmem:[#allocation2 + $0xa0] sm:$0xff] }
0x1606   : > { %4491 = vst.msk [vmem:[#allocation2 + $0xe0] sm:$0xff] %vm4476_vm4, %v4460_v25  ;;  %6038 = vmatprep.mubr.msk.bf16.mxu1 %vm8089_vm12, %v4514_v42  ;;  %vm8097_vm4 = vmmov %vm8095_vm2 }
0x1607   : > { %v4503_v32 = vld [vmem:[#allocation2 + $0xb0] sm:$0xff]  ;;  %vm8102_vm12 = vmmov %vm8098_vm1 }
0x1608   : > { %v4515_v3 = vpack.c.bf16 %v4503_v32, %v4502_v37 }
0x1609   : > { %v4504_v40 = vld [vmem:[#allocation2 + $0xc0] sm:$0xff] }
0x160a   : > { %6039 = vmatmul.mubr.msk.bf16.gmra.mrb[64].mxu1 %vm8090_vm6, %v4515_v3  ;;  %vm8103_vm6 = vmmov %vm8098_vm1 }
0x160b   : > { %v4505_v33 = vld [vmem:[#allocation2 + $0xd0] sm:$0xff] }
0x160c   : > { %v4516_v39 = vpack.c.bf16 %v4505_v33, %v4504_v40 }
0x160d   : > { %v4506_v1 = vld [vmem:[#allocation2 + $0xe0] sm:$0xff] }
0x160e   : > { %6042 = vmatprep.mubr.msk.bf16.mxu1 %vm8091_vm5, %v4516_v39  ;;  %v4517_v11 = vpack.c.bf16 %v4506_v1, %v4506_v1  ;;  %vm8104_vm5 = vmmov %vm8098_vm1 }
0x1612   : > { %6043 = vmatmul.mubr.msk.bf16.gmra.mrb[68].mxu1 %vm8092_vm13, %v4517_v11  ;;  %vm4835_vm13 = vcmask 58368  }
0x1614   : > { %v7724_v29 = vpop.permute.xlu0 %4947 }
0x1616   : > { %v4952_v44 = vpop.permute.xlu1 %4951 }
0x1618   : > { %v4960_v45 = vpop.permute.xlu0 %4959 }
0x161a   : > { %v4956_v62 = vpop.permute.xlu1 %4955 }
0x161c   : > { %v7730_v61 = vpop.permute.xlu0 %4967 }
0x161e   : > { %v7726_v7 = vpop.permute.xlu1 %4963 }
0x1620   : > { %v7734_v9 = vpop.permute.xlu0 %4975 }
0x1622   : > { %v7728_v49 = vpop.permute.xlu1 %4971 }
0x1624   : > { %v7738_v20 = vpop.permute.xlu0 %4983 }
0x1626   : > { %v7732_v26 = vpop.permute.xlu1 %4979 }
0x1628   : > { %v7742_v10 = vpop.permute.xlu0 %4991 }
0x162a   : > { %v7736_v17 = vpop.permute.xlu1 %4987 }
0x162c   : > { %v7746_v53 = vpop.permute.xlu0 %4999 }
0x162e   : > { %v7740_v19 = vpop.permute.xlu1 %4995 }
0x1631   : > { %v4673_v52 = vpop.permute.xlu0 %4672 }
0x1632   : > { %v7744_v48 = vpop.permute.xlu1 %5003 }
0x1635   : > { %v4688_v31 = vpop.permute.xlu0 %4687 }
0x1637   : > { %v4678_v55 = vpop.permute.xlu1 %4677 }
0x1639   : > { %v4698_v35 = vpop.permute.xlu0 %4697 }
0x163b   : > { %v4683_v16 = vpop.permute.xlu1 %4682 }
0x163d   : > { %v4708_v36 = vpop.permute.xlu0 %4707 }
0x163f   : > { %v4693_v8 = vpop.permute.xlu1 %4692 }
0x1643   : > { %v4703_v21 = vpop.permute.xlu1 %4702 }
0x1647   : > { %v4713_v32 = vpop.permute.xlu1 %4712 }
0x16cd   : > { %v6032_v57 = vpop.f32.mrb[56].mxu1 }
0x16ce   : > { %v4602_v14 = vadd.f32 %v6032_v57, %v7751_v41  ;;  %v4593_v59 = vpop.f32.mrb[57].mxu1 }
0x16cf   : > { %v4594_v30 = vadd.f32 %v7751_v41, %v4593_v59  ;;  %v6033_v27 = vpop.f32.mrb[58].mxu1 }
0x16d0   : > { %v5008_v5 = vmul.f32 %v4956_v62, %v4602_v14  ;;  %v4605_v51 = vadd.f32 %v6033_v27, %v7751_v41  ;;  %v4747_v47 = vmul.f32 %v4683_v16, %v4602_v14  ;;  %v4596_v23 = vpop.f32.mrb[59].mxu1  ;;  %v4855_v46 = vrot.slane %v4602_v14, 7 }
0x16d1   : > { %v4745_v2 = vmul.f32 %v4673_v52, %v4594_v30  ;;  %v4597_v43 = vadd.f32 %v7751_v41, %v4596_v23  ;;  %v4852_v18 = vrot.slane %v4594_v30, 7  ;;  %v5006_v33 = vmul.f32 %v7724_v29, %v4594_v30  ;;  %v4718_v29 = vpop.permute.xlu0 %4717  ;;  %v4723_v30 = vpop.permute.xlu1 %4722 }
0x16d2   : > { %v4857_v6 = vrot.slane %v4605_v51, 7  ;;  %v5009_v12 = vmul.f32 %v4960_v45, %v4605_v51  ;;  %v4748_v50 = vmul.f32 %v4688_v31, %v4605_v51  ;;  %5040 = vrot.lane.b32.xlu1 %v5008_v5, %s6232_s27  ;;  %v4778_v4 = vrot.slane %v4747_v47, 6 }
0x16d3   : > { %v4775_v63 = vrot.slane %v4745_v2, 6  ;;  %v4746_v54 = vmul.f32 %v4678_v55, %v4597_v43  ;;  %v4853_v60 = vrot.slane %v4597_v43, 7  ;;  %v5007_v15 = vmul.f32 %v4952_v44, %v4597_v43 }
0x16d4   : > { %v4780_v56 = vrot.slane %v4748_v50, 6  ;;  %5042 = vrot.lane.b32.xlu0 %v5009_v12, %s6232_s27  ;;  %v4858_v13 = vsel %vm444_vm0, %v4855_v46, %v4857_v6 }
0x16d5   : > { %4820 = vst.msk [vmem:[#allocation2] sm:$0xfc] %vm8093_vm9, %v4775_v63  ;;  %v4776_v28 = vrot.slane %v4746_v54, 6  ;;  %v6036_v0 = vpop.f32.mrb[60].mxu1  ;;  %v4854_v22 = vsel %vm444_vm0, %v4852_v18, %v4853_v60  ;;  %v4856_v34 = vsel %vm444_vm0, %v4853_v60, %v4855_v46  ;;  %v4728_v54 = vpop.permute.xlu0 %4727  ;;  %vm8105_vm9 = vmmov %vm8098_vm1 }
0x16d6   : > { %v4781_v38 = vsel %vm364_vm3, %v4778_v4, %v4780_v56  ;;  %v4618_v24 = vadd.f32 %v6036_v0, %v7751_v41  ;;  %v4609_v42 = vpop.f32.mrb[61].mxu1  ;;  %4881 = vrot.lane.b32.xlu1 %v4852_v18, %s6229_s9 }
0x16d7   : > { %4823 = vst.msk [vmem:[#allocation2 + $0x30] sm:$0xff] %vm8094_vm7, %v4781_v38  ;;  %v7768_v25 = vadd.f32 %v7751_v41, %v4609_v42  ;;  %v6037_v37 = vpop.f32.mrb[62].mxu1  ;;  %v4777_v3 = vsel %vm364_vm3, %v4775_v63, %v4776_v28  ;;  %v4779_v40 = vsel %vm364_vm3, %v4776_v28, %v4778_v4  ;;  %v6212_v28 = vld [vmem:[%s8006_s1 + $0x1d0] sm:$0xff]  }
0x16d8   : > { %v4863_v39 = vrot.slane %v4618_v24, 7  ;;  %v7774_v1 = vadd.f32 %v6037_v37, %v7751_v41  ;;  %v4612_v11 = vpop.f32.mrb[63].mxu1  ;;  %5038 = vrot.lane.b32.xlu0 %v5007_v15, %s6232_s27  ;;  %v4751_v44 = vmul.f32 %v4703_v21, %v4618_v24  ;;  %4821 = vst.msk [vmem:[#allocation2 + $0x10] sm:$0xff] %vm8095_vm2, %v4777_v3  ;;  %v5012_v60 = vmul.f32 %v7728_v49, %v4618_v24 }
0x16d9   : > { %4822 = vst.msk [vmem:[#allocation2 + $0x20] sm:$0xff] %vm8096_vm8, %v4779_v40  ;;  %v4859_v62 = vrot.slane %v7768_v25, 7  ;;  %v7781_v45 = vadd.f32 %v7751_v41, %v4612_v11  ;;  %v4749_v55 = vmul.f32 %v4693_v8, %v7768_v25  ;;  %6046 = vmatprep.subr.bf16.mxu0 %v6212_v28  ;;  %vm8108_vm2 = vcmask 1043456  }
0x16da   : > { %v4865_v52 = vrot.slane %v7774_v1, 7  ;;  %5036 = vrot.lane.b32.xlu1 %v5006_v33, %s6232_s27  ;;  %v4786_v16 = vrot.slane %v4751_v44, 6  ;;  %v4752_v31 = vmul.f32 %v4708_v36, %v7774_v1  ;;  %v4733_v36 = vpop.permute.xlu1 %4732  ;;  %v5013_v15 = vmul.f32 %v7734_v9, %v7774_v1  ;;  %6047 = vmatpush3.bf16.msra.mxu0 %v6212_v28  ;;  %vm8109_vm8 = vmmov %vm8108_vm2 }
0x16db   : > { %v4861_v57 = vrot.slane %v7781_v45, 7  ;;  %v4782_v14 = vrot.slane %v4749_v55, 6  ;;  %v4750_v59 = vmul.f32 %v4698_v35, %v7781_v45  ;;  %v7791_v5 = vsel %vm444_vm0, %v4857_v6, %v4859_v62 }
0x16dc   : > { %4883 = vrot.lane.b32.xlu0 %v4854_v22, %s6229_s9  ;;  %v4788_v27 = vrot.slane %v4752_v31, 6  ;;  %v7794_v8 = vsel %vm444_vm0, %v4863_v39, %v4865_v52 }
0x16dd   : > { %v4783_v51 = vsel %vm364_vm3, %v4780_v56, %v4782_v14  ;;  %v4784_v47 = vrot.slane %v4750_v59, 6  ;;  %v6040_v23 = vpop.f32.mrb[64].mxu1  ;;  %v7798_v2 = vsel %vm444_vm0, %v4861_v57, %v4863_v39  ;;  %v7801_v43 = vsel %vm444_vm0, %v4859_v62, %v4861_v57  ;;  %v4738_v59 = vpop.permute.xlu0 %4737 }
0x16de   : > { %4824 = vst.msk [vmem:[#allocation2 + $0x40] sm:$0xff] %vm8097_vm4, %v4783_v51  ;;  %v7805_v35 = vadd.f32 %v6040_v23, %v7751_v41  ;;  %v4789_v46 = vsel %vm364_vm3, %v4786_v16, %v4788_v27  ;;  %v4625_v6 = vpop.f32.mrb[65].mxu1  ;;  %4887 = vrot.lane.b32.xlu1 %v4858_v13, %s6229_s9  ;;  %v4743_v62 = vpop.permute.xlu1 %4742  ;;  %vm8111_vm4 = vcmask 195712  }
0x16df   : > { %v4785_v12 = vsel %vm364_vm3, %v4782_v14, %v4784_v47  ;;  %v4787_v50 = vsel %vm364_vm3, %v4784_v47, %v4786_v16  ;;  %4827 = vst.msk [vmem:[#allocation2 + $0x70] sm:$0xff] %vm8098_vm1, %v4789_v46  ;;  %v7813_v63 = vadd.f32 %v7751_v41, %v4625_v6  ;;  %v6041_v18 = vpop.f32.mrb[66].mxu1 }
0x16e0   : > { %4825 = vst.msk [vmem:[#allocation2 + $0x50] sm:$0xff] %vm8099_vm15, %v4785_v12  ;;  %v4871_v21 = vrot.slane %v7805_v35, 7  ;;  %v7820_v4 = vadd.f32 %v6041_v18, %v7751_v41  ;;  %v4628_v56 = vpop.f32.mrb[67].mxu1  ;;  %4885 = vrot.lane.b32.xlu0 %v4856_v34, %s6229_s9  ;;  %v4755_v13 = vmul.f32 %v4723_v30, %v7805_v35  ;;  %vm8113_vm15 = vcmask 130112  }
0x16e1   : > { %4826 = vst.msk [vmem:[#allocation2 + $0x60] sm:$0xff] %vm8100_vm11, %v4787_v50  ;;  %v4867_v49 = vrot.slane %v7813_v63, 7  ;;  %v7829_v0 = vadd.f32 %v7751_v41, %v4628_v56  ;;  %v4753_v22 = vmul.f32 %v4713_v32, %v7813_v63  ;;  %v5010_v32 = vmul.f32 %v7726_v7, %v7768_v25  ;;  %vm8114_vm11 = vmmov %vm8111_vm4 }
0x16e2   : > { %v4873_v38 = vrot.slane %v7820_v4, 7  ;;  %5048 = vrot.lane.b32.xlu1 %v5012_v60, %s6232_s27  ;;  %v4794_v34 = vrot.slane %v4755_v13, 6  ;;  %v4756_v24 = vmul.f32 %v4728_v54, %v7820_v4  ;;  %v5014_v56 = vmul.f32 %v7732_v26, %v7813_v63 }
0x16e3   : > { %v4869_v42 = vrot.slane %v7829_v0, 7  ;;  %v4790_v37 = vrot.slane %v4753_v22, 6  ;;  %v4754_v3 = vmul.f32 %v4718_v29, %v7829_v0  ;;  %v4868_v40 = vsel %vm444_vm0, %v4865_v52, %v4867_v49 }
0x16e4   : > { %5050 = vrot.lane.b32.xlu0 %v5013_v15, %s6232_s27  ;;  %v4796_v9 = vrot.slane %v4756_v24, 6  ;;  %v4874_v33 = vsel %vm444_vm0, %v4871_v21, %v4873_v38  ;;  %v5011_v29 = vmul.f32 %v7730_v61, %v7781_v45  ;;  %v5016_v13 = vmul.f32 %v7736_v17, %v7805_v35 }
0x16e5   : > { %v4791_v39 = vsel %vm364_vm3, %v4788_v27, %v4790_v37  ;;  %v6044_v1 = vpop.f32.mrb[68].mxu1  ;;  %v4792_v11 = vrot.slane %v4754_v3, 6  ;;  %v4870_v44 = vsel %vm444_vm0, %v4867_v49, %v4869_v42  ;;  %v4872_v55 = vsel %vm444_vm0, %v4869_v42, %v4871_v21 }
0x16e6   : > { %4828 = vst.msk [vmem:[#allocation2 + $0x80] sm:$0xff] %vm8101_vm14, %v4791_v39  ;;  %v7851_v7 = vadd.f32 %v6044_v1, %v7751_v41  ;;  %v4641_v25 = vpop.f32.mrb[69].mxu1  ;;  %5044 = vrot.lane.b32.xlu1 %v5010_v32, %s6232_s27  ;;  %v4797_v52 = vsel %vm364_vm3, %v4794_v34, %v4796_v9  ;;  %v5015_v26 = vmul.f32 %v7738_v20, %v7829_v0  ;;  %vm8115_vm14 = vmmov %vm8113_vm15 }
0x16e7   : > { %v4642_v16 = vadd.f32 %v7751_v41, %v4641_v25  ;;  %v6045_v31 = vpop.f32.mrb[70].mxu1  ;;  %v4793_v57 = vsel %vm364_vm3, %v4790_v37, %v4792_v11  ;;  %v4795_v14 = vsel %vm364_vm3, %v4792_v11, %v4794_v34  ;;  %4831 = vst.msk [vmem:[#allocation2 + $0xb0] sm:$0xff] %vm8102_vm12, %v4797_v52  ;;  %vm8116_vm12 = vmmov %vm8111_vm4 }
0x16e8   : > { %v4644_v61 = vpop.f32.mrb[71].mxu1  ;;  %5046 = vrot.lane.b32.xlu0 %v5011_v29, %s6232_s27  ;;  %4829 = vst.msk [vmem:[#allocation2 + $0x90] sm:$0xff] %vm8103_vm6, %v4793_v57  ;;  %v4759_v45 = vmul.f32 %v4743_v62, %v7851_v7  ;;  %v4879_v30 = vrot.slane %v7851_v7, 7  ;;  %vm8117_vm6 = vmmov %vm8115_vm14 }
0x16e9   : > { %4830 = vst.msk [vmem:[#allocation2 + $0xa0] sm:$0xff] %vm8104_vm5, %v4795_v14  ;;  %v4875_v27 = vrot.slane %v4642_v16, 7  ;;  %v4645_v51 = vadd.f32 %v7751_v41, %v4644_v61  ;;  %v4757_v47 = vmul.f32 %v4733_v36, %v4642_v16  ;;  %v5018_v17 = vmul.f32 %v7740_v19, %v4642_v16  ;;  %vm8118_vm5 = vmmov %vm8111_vm4 }
0x16ea   : > { %4889 = vrot.lane.b32.xlu1 %v7791_v5, %s6229_s9  ;;  %v4802_v23 = vrot.slane %v4759_v45, 6  ;;  %v6213_v5 = vld [vmem:[%s8006_s1 + $0x1d8] ss:$0 sps:$4 sm:$0xff]  }
0x16eb   : > { %v4877_v46 = vrot.slane %v4645_v51, 7  ;;  %v4798_v6 = vrot.slane %v4757_v47, 6  ;;  %v4758_v12 = vmul.f32 %v4738_v59, %v4645_v51  ;;  %v4876_v50 = vsel %vm444_vm0, %v4873_v38, %v4875_v27  ;;  %6074 = vmatprep.subr.msk.bf16.mxu0 %vm8108_vm2, %v6213_v5 }
0x16ec   : > { %4895 = vrot.lane.b32.xlu0 %v7794_v8, %s6229_s9  ;;  %4836 = vst.msk [vmem:[#allocation2 + $0xf0] sm:$0x3] %vm4835_vm13, %v4802_v23  ;;  %v5019_v20 = vmul.f32 %v7746_v53, %v4645_v51  ;;  %vm8119_vm13 = vmmov %vm8117_vm6 }
0x16ed   : > { %v4799_v18 = vsel %vm364_vm3, %v4796_v9, %v4798_v6  ;;  %v4800_v54 = vrot.slane %v4758_v12, 6  ;;  %v4878_v60 = vsel %vm444_vm0, %v4875_v27, %v4877_v46  ;;  %v4880_v41 = vsel %vm444_vm0, %v4877_v46, %v4879_v30  ;;  %vm8106_vm0 = vmmov %vm8098_vm1 }
0x16ee   : > { %4893 = vrot.lane.b32.xlu1 %v7798_v2, %s6229_s9  ;;  %4832 = vst.msk [vmem:[#allocation2 + $0xc0] sm:$0xff] %vm8105_vm9, %v4799_v18  ;;  %vm8107_vm7 = vmmov %vm8106_vm0  ;;  %v5228_v2 = vsel %vm8109_vm8, %v6213_v5, 0  ;;  %vm8112_vm1 = vcmask 57344  }
0x16ef   : > { %v4801_v8 = vsel %vm364_vm3, %v4798_v6, %v4800_v54  ;;  %v4803_v21 = vsel %vm364_vm3, %v4800_v54, %v4802_v23  ;;  %6049 = vmatpush3.bf16.msra.mxu0 %v5228_v2  ;;  %vm8110_vm3 = vcmask 130113   ;;  %vm8120_vm9 = vmmov %vm8111_vm4 }
0x16f0   : > { %4891 = vrot.lane.b32.xlu0 %v7801_v43, %s6229_s9  ;;  %4833 = vst.msk [vmem:[#allocation2 + $0xd0] sm:$0xff] %vm8106_vm0, %v4801_v8  ;;  %v5017_v43 = vmul.f32 %v7742_v10, %v7820_v4  ;;  %v5020_v10 = vmul.f32 %v7744_v48, %v7851_v7  ;;  %vm8121_vm0 = vmmov %vm8117_vm6 }
0x16f1   : > { %4834 = vst.msk [vmem:[#allocation2 + $0xe0] sm:$0xff] %vm8107_vm7, %v4803_v21  ;;  %vm8122_vm7 = vmmov %vm8111_vm4 }
0x16f2   : > { %5052 = vrot.lane.b32.xlu1 %v5014_v56, %s6232_s27  ;;  %vm8123_vm2 = vmmov %vm8121_vm0 }
0x16f3   : > { %vm8124_vm8 = vmmov %vm8111_vm4 }
0x16f4   : > { %5056 = vrot.lane.b32.xlu0 %v5016_v13, %s6232_s27 }
0x16f6   : > { %4897 = vrot.lane.b32.xlu1 %v4868_v40, %s6229_s9 }
0x16f8   : > { %5054 = vrot.lane.b32.xlu0 %v5015_v26, %s6232_s27 }
0x16fa   : > { %5058 = vrot.lane.b32.xlu1 %v5017_v43, %s6232_s27 }
0x16fc   : > { %4899 = vrot.lane.b32.xlu0 %v4870_v44, %s6229_s9 }
0x16fe   : > { %4903 = vrot.lane.b32.xlu1 %v4874_v33, %s6229_s9 }
0x1700   : > { %4901 = vrot.lane.b32.xlu0 %v4872_v55, %s6229_s9 }
0x1702   : > { %4907 = vrot.lane.b32.xlu1 %v4878_v60, %s6229_s9 }
0x1704   : > { %5060 = vrot.lane.b32.xlu0 %v5018_v17, %s6232_s27 }
0x1706   : > { %5062 = vrot.lane.b32.xlu1 %v5019_v20, %s6232_s27 }
0x1708   : > { %4905 = vrot.lane.b32.xlu0 %v4876_v50, %s6229_s9 }
0x170a   : > { %4911 = vrot.lane.b32.xlu1 %v4879_v30, %s6229_s9 }
0x170c   : > { %4909 = vrot.lane.b32.xlu0 %v4880_v41, %s6229_s9 }
0x1710   : > { %5064 = vrot.lane.b32.xlu0 %v5020_v10, %s6232_s27 }
0x1744   : > { %v5041_v19 = vpop.permute.xlu1 %5040 }
0x1746   : > { %v5043_v35 = vpop.permute.xlu0 %5042 }
0x1748   : > { %v4882_v63 = vpop.permute.xlu1 %4881 }
0x1749   : > { %4929 = vst.msk [vmem:[#allocation2] sm:$0xfe] %vm8110_vm3, %v4882_v63  ;;  %vm8125_vm3 = vmmov %vm8121_vm0 }
0x174a   : > { %v5039_v53 = vpop.permute.xlu0 %5038 }
0x174c   : > { %v5037_v4 = vpop.permute.xlu1 %5036 }
0x174d   : > { %5081 = vst.msk [vmem:[#allocation2] sm:$0xff] %vm8111_vm4, %v5037_v4  ;;  %vm8126_vm4 = vcmask 195584  }
0x174e   : > { %v4884_v28 = vpop.permute.xlu0 %4883  ;;  %5096 = vst.msk [vmem:[#allocation2 + $0x1] sm:$0x1] %vm8112_vm1, %v6230_v58  ;;  %vm8127_vm1 = vmmov %vm8118_vm5 }
0x174f   : > { %4930 = vst.msk [vmem:[#allocation2 + $0x10] sm:$0xff] %vm8113_vm15, %v4884_v28  ;;  %vm8128_vm15 = vmmov %vm8121_vm0 }
0x1750   : > { %5082 = vst.msk [vmem:[#allocation2 + $0x10] sm:$0xff] %vm8114_vm11, %v5039_v53  ;;  %v4888_v48 = vpop.permute.xlu1 %4887  ;;  %vm8129_vm11 = vmmov %vm8127_vm1 }
0x1751   : > { %4932 = vst.msk [vmem:[#allocation2 + $0x30] sm:$0xff] %vm8115_vm14, %v4888_v48  ;;  %vm8130_vm14 = vmmov %vm8121_vm0 }
0x1752   : > { %5084 = vst.msk [vmem:[#allocation2 + $0x30] sm:$0xff] %vm8116_vm12, %v5043_v35  ;;  %v4886_v49 = vpop.permute.xlu0 %4885  ;;  %vm8131_vm12 = vmmov %vm8127_vm1 }
0x1753   : > { %4931 = vst.msk [vmem:[#allocation2 + $0x20] sm:$0xff] %vm8117_vm6, %v4886_v49  ;;  %vm8132_vm6 = vmmov %vm8121_vm0 }
0x1754   : > { %5083 = vst.msk [vmem:[#allocation2 + $0x20] sm:$0xff] %vm8118_vm5, %v5041_v19  ;;  %v5049_v0 = vpop.permute.xlu1 %5048  ;;  %vm8133_vm5 = vmmov %vm8127_vm1 }
0x1755   : > { %v5099_v36 = vld [vmem:[#allocation2] sm:$0xfe] }
0x1756   : > { %v5051_v22 = vpop.permute.xlu0 %5050 }
0x1757   : > { %v5100_v15 = vld [vmem:[#allocation2 + $0x10] sm:$0xff] }
0x1758   : > { %v5045_v38 = vpop.permute.xlu1 %5044  ;;  %v5118_v34 = vpack.c.bf16 %v5100_v15, %v5099_v36 }
0x1759   : > { %v5102_v3 = vld [vmem:[#allocation2 + $0x30] sm:$0xff] }
0x175a   : > { %v5047_v24 = vpop.permute.xlu0 %5046  ;;  %v5134_v42 = vshll.u32 %v5118_v34, 16  ;;  %v5132_v39 = vshrl.u32 %v5118_v34, 16 }
0x175b   : > { %v5101_v37 = vld [vmem:[#allocation2 + $0x20] sm:$0xff] }
0x175c   : > { %v4890_v32 = vpop.permute.xlu1 %4889  ;;  %v5119_v9 = vpack.c.bf16 %v5102_v3, %v5101_v37  ;;  %v5136_v40 = vrot.slane %v5134_v42, 1 }
0x175d   : > { %4933 = vst.msk [vmem:[#allocation2 + $0x40] sm:$0xff] %vm8119_vm13, %v4890_v32  ;;  %vm8134_vm13 = vmmov %vm8121_vm0 }
0x175e   : > { %5085 = vst.msk [vmem:[#allocation2 + $0x40] sm:$0xff] %vm8120_vm9, %v5045_v38  ;;  %v4896_v33 = vpop.permute.xlu0 %4895  ;;  %v5139_v1 = vshll.u32 %v5119_v9, 16  ;;  %v5137_v44 = vor.u32 %v5136_v40, %v5132_v39  ;;  %v5143_v27 = vshrl.u32 %v5119_v9, 16  ;;  %vm8135_vm9 = vmmov %vm8126_vm4 }
0x175f   : > { %4936 = vst.msk [vmem:[#allocation2 + $0x70] sm:$0xff] %vm8121_vm0, %v4896_v33  ;;  %vm8136_vm0 = vmmov %vm8127_vm1 }
0x1760   : > { %5088 = vst.msk [vmem:[#allocation2 + $0x70] sm:$0xff] %vm8122_vm7, %v5051_v22  ;;  %v4894_v11 = vpop.permute.xlu1 %4893  ;;  %v5141_v62 = vrot.slane %v5139_v1, 1  ;;  %vm8137_vm7 = vmmov %vm8123_vm2 }
0x1761   : > { %4935 = vst.msk [vmem:[#allocation2 + $0x60] sm:$0xff] %vm8123_vm2, %v4894_v11  ;;  %vm8138_vm2 = vmmov %vm8126_vm4 }
0x1762   : > { %5087 = vst.msk [vmem:[#allocation2 + $0x60] sm:$0xff] %vm8124_vm8, %v5049_v0  ;;  %v4892_v55 = vpop.permute.xlu0 %4891  ;;  %v5142_v29 = vsel %vm727_vm10, %v5137_v44, %v5141_v62  ;;  %v5145_v46 = vor.u32 %v5143_v27, %v5141_v62  ;;  %vm8139_vm8 = vmmov %vm8136_vm0 }
0x1763   : > { %4934 = vst.msk [vmem:[#allocation2 + $0x50] sm:$0xff] %vm8125_vm3, %v4892_v55  ;;  %6050 = vmatprep.mubr.msk.bf16.mxu0 %vm8126_vm4, %v5142_v29  ;;  %vm4944_vm3 = vcmask 122944   ;;  %vm8140_vm4 = vmmov %vm8132_vm6 }
0x1764   : > { %5086 = vst.msk [vmem:[#allocation2 + $0x50] sm:$0xff] %vm8127_vm1, %v5047_v24  ;;  %v5053_v7 = vpop.permute.xlu1 %5052  ;;  %vm5097_vm1 = vcmask 188544  }
0x1765   : > { %v5103_v61 = vld [vmem:[#allocation2 + $0x40] sm:$0xff] }
0x1766   : > { %v5057_v25 = vpop.permute.xlu0 %5056 }
0x1767   : > { %v5106_v31 = vld [vmem:[#allocation2 + $0x70] sm:$0xff] }
0x1768   : > { %v4898_v52 = vpop.permute.xlu1 %4897 }
0x1769   : > { %4937 = vst.msk [vmem:[#allocation2 + $0x80] sm:$0xff] %vm8128_vm15, %v4898_v52  ;;  %v5105_v16 = vld [vmem:[#allocation2 + $0x60] sm:$0xff]  ;;  %vm8141_vm15 = vmmov %vm8136_vm0 }
0x176a   : > { %5089 = vst.msk [vmem:[#allocation2 + $0x80] sm:$0xff] %vm8129_vm11, %v5053_v7  ;;  %v5055_v57 = vpop.permute.xlu0 %5054  ;;  %v5121_v14 = vpack.c.bf16 %v5106_v31, %v5105_v16  ;;  %vm8142_vm11 = vmmov %vm8140_vm4 }
0x176b   : > { %v5104_v45 = vld [vmem:[#allocation2 + $0x50] sm:$0xff] }
0x176c   : > { %v5059_v59 = vpop.permute.xlu1 %5058  ;;  %v5120_v30 = vpack.c.bf16 %v5104_v45, %v5103_v61  ;;  %v5155_v23 = vshll.u32 %v5121_v14, 16  ;;  %v5159_v17 = vshrl.u32 %v5121_v14, 16 }
0x176e   : > { %v4900_v51 = vpop.permute.xlu0 %4899  ;;  %v5147_v47 = vshll.u32 %v5120_v30, 16  ;;  %v5151_v50 = vshrl.u32 %v5120_v30, 16  ;;  %v5157_v41 = vrot.slane %v5155_v23, 1 }
0x176f   : > { %4938 = vst.msk [vmem:[#allocation2 + $0x90] sm:$0xff] %vm8130_vm14, %v4900_v51  ;;  %vm8143_vm14 = vmmov %vm8138_vm2 }
0x1770   : > { %5090 = vst.msk [vmem:[#allocation2 + $0x90] sm:$0xff] %vm8131_vm12, %v5055_v57  ;;  %v4904_v6 = vpop.permute.xlu1 %4903  ;;  %v5149_v12 = vrot.slane %v5147_v47, 1  ;;  %v5161_v63 = vor.u32 %v5159_v17, %v5157_v41  ;;  %vm8144_vm12 = vmmov %vm8136_vm0 }
0x1771   : > { %4940 = vst.msk [vmem:[#allocation2 + $0xb0] sm:$0xff] %vm8132_vm6, %v4904_v6  ;;  %v5107_v56 = vld [vmem:[#allocation2 + $0x80] sm:$0xff]  ;;  %vm8145_vm6 = vmmov %vm8138_vm2 }
0x1772   : > { %5092 = vst.msk [vmem:[#allocation2 + $0xb0] sm:$0xff] %vm8133_vm5, %v5059_v59  ;;  %v4902_v18 = vpop.permute.xlu0 %4901  ;;  %v5150_v54 = vsel %vm727_vm10, %v5145_v46, %v5149_v12  ;;  %v5153_v60 = vor.u32 %v5151_v50, %v5149_v12  ;;  %vm8146_vm5 = vmmov %vm8138_vm2 }
0x1773   : > { %4939 = vst.msk [vmem:[#allocation2 + $0xa0] sm:$0xff] %vm8134_vm13, %v4902_v18  ;;  %6051 = vmatmul.mubr.msk.bf16.vlgmr.msra.gmra.mrb[76].mxu0 %vm8135_vm9, %v5150_v54  ;;  %vm8147_vm13 = vmmov %vm8138_vm2 }
0x1774   : > { %5091 = vst.msk [vmem:[#allocation2 + $0xa0] sm:$0xff] %vm8136_vm0, %v5057_v25  ;;  %v4908_v5 = vpop.permute.xlu1 %4907  ;;  %v5158_v8 = vsel %vm727_vm10, %v5153_v60, %v5157_v41  ;;  %vm8148_vm9 = vmmov %vm8138_vm2  ;;  %v5582_v25 = vld [vmem:[%s8007_s2 + $0xc] ss:$0 sm:$0xff] }
0x1775   : > { %4942 = vst.msk [vmem:[#allocation2 + $0xd0] sm:$0xff] %vm8137_vm7, %v4908_v5  ;;  %6054 = vmatprep.mubr.msk.bf16.mxu0 %vm8138_vm2, %v5158_v8 }
0x1776   : > { %v5061_v21 = vpop.permute.xlu0 %5060 }
0x1777   : > { %v5108_v2 = vld [vmem:[#allocation2 + $0x90] sm:$0xff] }
0x1778   : > { %v5063_v13 = vpop.permute.xlu1 %5062  ;;  %v5122_v26 = vpack.c.bf16 %v5108_v2, %v5107_v56 }
0x1779   : > { %5094 = vst.msk [vmem:[#allocation2 + $0xd0] sm:$0xff] %vm8139_vm8, %v5063_v13  ;;  %v5110_v19 = vld [vmem:[#allocation2 + $0xb0] sm:$0xff] }
0x177a   : > { %v4906_v43 = vpop.permute.xlu0 %4905  ;;  %v5163_v20 = vshll.u32 %v5122_v26, 16  ;;  %v5167_v49 = vshrl.u32 %v5122_v26, 16 }
0x177b   : > { %4941 = vst.msk [vmem:[#allocation2 + $0xc0] sm:$0xff] %vm8140_vm4, %v4906_v43  ;;  %v5109_v10 = vld [vmem:[#allocation2 + $0xa0] sm:$0xff] }
0x177c   : > { %5093 = vst.msk [vmem:[#allocation2 + $0xc0] sm:$0xff] %vm8141_vm15, %v5061_v21  ;;  %v4912_v35 = vpop.permute.xlu1 %4911  ;;  %v5165_v53 = vrot.slane %v5163_v20, 1  ;;  %v5123_v4 = vpack.c.bf16 %v5110_v19, %v5109_v10 }
0x177d   : > { %4945 = vst.msk [vmem:[#allocation2 + $0xf0] sm:$0x1] %vm4944_vm3, %v4912_v35 }
0x177e   : > { %5098 = vst.msk [vmem:[#allocation2 + $0xf0] sm:$0x1] %vm5097_vm1, %v6230_v58  ;;  %v4910_v28 = vpop.permute.xlu0 %4909  ;;  %v5166_v48 = vsel %vm727_vm10, %v5161_v63, %v5165_v53  ;;  %v5171_v0 = vshll.u32 %v5123_v4, 16  ;;  %v5169_v22 = vor.u32 %v5167_v49, %v5165_v53  ;;  %v5175_v42 = vshrl.u32 %v5123_v4, 16 }
0x177f   : > { %4943 = vst.msk [vmem:[#allocation2 + $0xe0] sm:$0xff] %vm8142_vm11, %v4910_v28  ;;  %6055 = vmatmul.mubr.msk.bf16.gmra.mrb[80].mxu0 %vm8143_vm14, %v5166_v48 }
0x1780   : > { %v5173_v36 = vrot.slane %v5171_v0, 1  ;;  %v5112_v58 = vld [vmem:[#allocation2 + $0xd0] sm:$0xff] }
0x1782   : > { %v5065_v15 = vpop.permute.xlu0 %5064  ;;  %v5174_v38 = vsel %vm727_vm10, %v5169_v22, %v5173_v36  ;;  %v5177_v3 = vor.u32 %v5175_v42, %v5173_v36 }
0x1783   : > { %5095 = vst.msk [vmem:[#allocation2 + $0xe0] sm:$0xff] %vm8144_vm12, %v5065_v15  ;;  %6058 = vmatprep.mubr.msk.bf16.mxu0 %vm8145_vm6, %v5174_v38  ;;  %v5111_v34 = vld [vmem:[#allocation2 + $0xc0] sm:$0xff] }
0x1784   : > { %v5124_v24 = vpack.c.bf16 %v5112_v58, %v5111_v34 }
0x1785   : > { %v5114_v9 = vld [vmem:[#allocation2 + $0xf0] sm:$0x1] }
0x1786   : > { %v5179_v37 = vshll.u32 %v5124_v24, 16  ;;  %v5183_v1 = vshrl.u32 %v5124_v24, 16 }
0x1788   : > { %v5181_v32 = vrot.slane %v5179_v37, 1 }
0x178a   : > { %v5182_v40 = vsel %vm727_vm10, %v5177_v3, %v5181_v32  ;;  %v5113_v33 = vld [vmem:[#allocation2 + $0xe0] sm:$0xff]  ;;  %v5185_v44 = vor.u32 %v5183_v1, %v5181_v32 }
0x178b   : > { %6059 = vmatmul.mubr.msk.bf16.gmra.mrb[84].mxu0 %vm8146_vm5, %v5182_v40  ;;  %v5125_v39 = vpack.c.bf16 %v5114_v9, %v5113_v33 }
0x178d   : > { %v5187_v11 = vshll.u32 %v5125_v39, 16  ;;  %v5191_v55 = vshrl.u32 %v5125_v39, 16 }
0x178f   : > { %v5189_v62 = vrot.slane %v5187_v11, 1 }
0x1791   : > { %v5190_v29 = vsel %vm727_vm10, %v5185_v44, %v5189_v62  ;;  %v5193_v7 = vor.u32 %v5191_v55, %v5189_v62  ;;  %vm8149_vm10 = vcmask 64512  }
0x1792   : > { %6062 = vmatprep.mubr.msk.bf16.mxu0 %vm8147_vm13, %v5190_v29  ;;  %vm8150_vm0 = vmmov %vm8149_vm10 }
0x1793   : > { %6063 = vmatmul.mubr.msk.bf16.gmra.mrb[88].mxu0 %vm8148_vm9, %v5193_v7  ;;  %vm8151_vm7 = vmmov %vm8150_vm0 }
0x1794   : > { %vm8152_vm2 = vmmov %vm8150_vm0 }
0x1795   : > { %vm8153_vm8 = vmmov %vm8150_vm0 }
0x1796   : > { %vm8154_vm3 = vmmov %vm8150_vm0 }
0x1797   : > { %vm8155_vm4 = vmmov %vm8150_vm0 }
0x1798   : > { %vm8156_vm1 = vmmov %vm8150_vm0 }
0x1799   : > { %vm8157_vm15 = vmmov %vm8150_vm0 }
0x179a   : > { %vm8158_vm11 = vmmov %vm8150_vm0 }
0x179b   : > { %vm8159_vm14 = vmmov %vm8150_vm0 }
0x179c   : > { %vm8160_vm12 = vmmov %vm8150_vm0 }
0x179d   : > { %vm8161_vm6 = vmmov %vm8150_vm0 }
0x179e   : > { %vm8162_vm5 = vmmov %vm8150_vm0 }
0x179f   : > { %vm8163_vm13 = vmmov %vm8150_vm0 }
0x1846   : > { %v6052_v52 = vpop.f32.mrb[76].mxu0 }
0x1847   : > { %v5273_v16 = vadd.f32 %v6052_v52, %v5582_v25  ;;  %v5264_v31 = vpop.f32.mrb[77].mxu0 }
0x1848   : > { %v5265_v57 = vadd.f32 %v5582_v25, %v5264_v31  ;;  %v6053_v14 = vpop.f32.mrb[78].mxu0 }
0x1849   : > { %v5328_v61 = vmax.f32 %v5273_v16, 0.0  ;;  %v5276_v45 = vadd.f32 %v6053_v14, %v5582_v25  ;;  %v5267_v59 = vpop.f32.mrb[79].mxu0 }
0x184a   : > { %v5326_v30 = vmax.f32 %v5265_v57, 0.0  ;;  %v5268_v27 = vadd.f32 %v5582_v25, %v5267_v59 }
0x184b   : > { %5343 = vst.msk [vmem:[%s7970_s22 + $0x10] sm:$0xff] %vm8149_vm10, %v5328_v61  ;;  %v5329_v51 = vmax.f32 %v5276_v45, 0.0 }
0x184c   : > { %5341 = vst.msk [vmem:[%s7970_s22] sm:$0xff] %vm8150_vm0, %v5326_v30  ;;  %v5327_v47 = vmax.f32 %v5268_v27, 0.0 }
0x184d   : > { %5344 = vst.msk [vmem:[%s7970_s22 + $0x18] sm:$0xff] %vm8151_vm7, %v5329_v51 }
0x184e   : > { %5342 = vst.msk [vmem:[%s7970_s22 + $0x8] sm:$0xff] %vm8152_vm2, %v5327_v47 }
0x1852   : > { %v6056_v23 = vpop.f32.mrb[80].mxu0 }
0x1853   : > { %v5289_v46 = vadd.f32 %v6056_v23, %v5582_v25  ;;  %v5280_v6 = vpop.f32.mrb[81].mxu0 }
0x1854   : > { %v5281_v12 = vadd.f32 %v5582_v25, %v5280_v6  ;;  %v6057_v50 = vpop.f32.mrb[82].mxu0 }
0x1855   : > { %v5332_v18 = vmax.f32 %v5289_v46, 0.0  ;;  %v5292_v54 = vadd.f32 %v6057_v50, %v5582_v25  ;;  %v5283_v60 = vpop.f32.mrb[83].mxu0 }
0x1856   : > { %v5330_v41 = vmax.f32 %v5281_v12, 0.0  ;;  %v5284_v5 = vadd.f32 %v5582_v25, %v5283_v60 }
0x1857   : > { %5347 = vst.msk [vmem:[%s7970_s22 + $0x30] sm:$0xff] %vm8153_vm8, %v5332_v18  ;;  %v5333_v8 = vmax.f32 %v5292_v54, 0.0 }
0x1858   : > { %5345 = vst.msk [vmem:[%s7970_s22 + $0x20] sm:$0xff] %vm8154_vm3, %v5330_v41  ;;  %v5331_v21 = vmax.f32 %v5284_v5, 0.0 }
0x1859   : > { %5348 = vst.msk [vmem:[%s7970_s22 + $0x38] sm:$0xff] %vm8155_vm4, %v5333_v8 }
0x185a   : > { %5346 = vst.msk [vmem:[%s7970_s22 + $0x28] sm:$0xff] %vm8156_vm1, %v5331_v21 }
0x185e   : > { %v6060_v56 = vpop.f32.mrb[84].mxu0 }
0x185f   : > { %v5305_v2 = vadd.f32 %v6060_v56, %v5582_v25  ;;  %v5296_v13 = vpop.f32.mrb[85].mxu0 }
0x1860   : > { %v5297_v26 = vadd.f32 %v5582_v25, %v5296_v13  ;;  %v6061_v43 = vpop.f32.mrb[86].mxu0 }
0x1861   : > { %v5336_v17 = vmax.f32 %v5305_v2, 0.0  ;;  %v5308_v20 = vadd.f32 %v6061_v43, %v5582_v25  ;;  %v5299_v10 = vpop.f32.mrb[87].mxu0 }
0x1862   : > { %v5334_v19 = vmax.f32 %v5297_v26, 0.0  ;;  %v5300_v35 = vadd.f32 %v5582_v25, %v5299_v10 }
0x1863   : > { %5351 = vst.msk [vmem:[%s7970_s22 + $0x50] sm:$0xff] %vm8157_vm15, %v5336_v17  ;;  %v5337_v63 = vmax.f32 %v5308_v20, 0.0 }
0x1864   : > { %5349 = vst.msk [vmem:[%s7970_s22 + $0x40] sm:$0xff] %vm8158_vm11, %v5334_v19  ;;  %v5335_v53 = vmax.f32 %v5300_v35, 0.0 }
0x1865   : > { %5352 = vst.msk [vmem:[%s7970_s22 + $0x58] sm:$0xff] %vm8159_vm14, %v5337_v63 }
0x1866   : > { %5350 = vst.msk [vmem:[%s7970_s22 + $0x48] sm:$0xff] %vm8160_vm12, %v5335_v53  ;;  %v6064_v4 = vpop.f32.mrb[88].mxu0 }
0x1867   : > { %v5321_v28 = vadd.f32 %v6064_v4, %v5582_v25  ;;  %v5312_v48 = vpop.f32.mrb[89].mxu0 }
0x1868   : > { %v5313_v49 = vadd.f32 %v5582_v25, %v5312_v48  ;;  %v6065_v0 = vpop.f32.mrb[90].mxu0 }
0x1869   : > { %v5340_v22 = vmax.f32 %v5321_v28, 0.0  ;;  %v5315_v36 = vpop.f32.mrb[91].mxu0 }
0x186a   : > { %v5338_v15 = vmax.f32 %v5313_v49, 0.0  ;;  %v5316_v38 = vadd.f32 %v5582_v25, %v5315_v36 }
0x186b   : > { %5355 = vst.msk [vmem:[%s7970_s22 + $0x70] sm:$0xff] %vm8161_vm6, %v5340_v22 }
0x186c   : > { %5353 = vst.msk [vmem:[%s7970_s22 + $0x60] sm:$0xff] %vm8162_vm5, %v5338_v15  ;;  %v5339_v34 = vmax.f32 %v5316_v38, 0.0 }
0x186e   : > { %5354 = vst.msk [vmem:[%s7970_s22 + $0x68] sm:$0xff] %vm8163_vm13, %v5339_v34 }
0x186f PF: > { %s15_s18 = sadd.s32 1, %s6224_s18  }
0x1870   : > { %p12_p4 = scmp.ge.s32.totalorder %s15_s18, 4  }
0x1872   :  { %14 = sbr.rel (!%p12_p4) target bundleno = 1 (0x1), region = 70 }

</bundles_post_ra>
